<compile_context>
chip_gen: v5e
topology: v5e:2x2
jax: 0.10.0
libtpu: 0.0.40
codegen_flags: <defaults>
</compile_context>

<pallas_src>
import functools

import jax
import jax.numpy as jnp
from jax.experimental import pallas as pl
from jax.experimental.pallas import tpu as pltpu


def _round_up(x, m):
    return ((x + m - 1) // m) * m


# ----------------------------------------------------------------------------
# Pallas GEMM kernel: out = relu?(A @ B + bias)
#   A (block_m, K) bf16, B (K, Np) bf16, bias (1, Np) f32, out f32.
#   K is the full array dim (no padding); accumulation + epilogue in f32.
# ----------------------------------------------------------------------------
def _gemm_bias_kernel(a_ref, b_ref, bias_ref, o_ref, *, relu):
    acc = jnp.dot(a_ref[...], b_ref[...], preferred_element_type=jnp.float32)
    acc = acc + bias_ref[...]
    if relu:
        acc = jnp.maximum(acc, 0.0)
    o_ref[...] = acc


def pallas_matmul_bias(a, b, bias, *, relu=False, trim_cols=True):
    """a: (M, K), b: (K, N), bias: (N,) -> (M, N)  (or (M, Np) if trim_cols=False)."""
    a = a.astype(jnp.float32)
    M, K = a.shape
    K2, N = b.shape
    assert K == K2, (K, K2)
    Np = _round_up(N, 128)  # lane-dense output; weights are tiny so pad is cheap

    # Right-size the M grid (no big padded-A materialization):
    #  - small M: one step, block_m = M (full-dim block, no row padding)
    #  - larger M: >=2 steps (v7x has 2 TensorCores), block_m multiple of 16
    if M <= 256:
        block_m, n_steps, Mp = M, 1, M
    else:
        n_steps = max(2, -(-M // 512))
        block_m = _round_up(-(-M // n_steps), 16)
        Mp = n_steps * block_m

    a_p = a if Mp == M else jnp.pad(a, ((0, Mp - M), (0, 0)))
    a_p = a_p.astype(jnp.bfloat16)                 # K is NOT padded
    b_p = b if Np == N else jnp.pad(b, ((0, 0), (0, Np - N)))
    b_p = b_p.astype(jnp.bfloat16)
    bias_p = bias.astype(jnp.float32)
    if Np != N:
        bias_p = jnp.pad(bias_p, (0, Np - N))
    bias_p = bias_p.reshape(1, Np)

    out = pl.pallas_call(
        functools.partial(_gemm_bias_kernel, relu=relu),
        out_shape=jax.ShapeDtypeStruct((Mp, Np), jnp.float32),
        grid_spec=pltpu.PrefetchScalarGridSpec(
            num_scalar_prefetch=0,
            grid=(n_steps,),
            in_specs=[
                pl.BlockSpec((block_m, K), lambda i: (i, 0)),
                pl.BlockSpec((K, Np), lambda i: (0, 0)),   # weights stay resident
                pl.BlockSpec((1, Np), lambda i: (0, 0)),
            ],
            out_specs=pl.BlockSpec((block_m, Np), lambda i: (i, 0)),
        ),
        compiler_params=pltpu.CompilerParams(
            dimension_semantics=("parallel",)),
    )(a_p, b_p, bias_p)

    if Mp != M:
        out = out[:M]
    if trim_cols and Np != N:
        out = out[:, :N]
    return out


# ----------------------------------------------------------------------------
# Regular Conv2d (3x3) via NHWC im2col + Pallas GEMM
# ----------------------------------------------------------------------------
def conv2d(x, weight, bias, *, stride=1, pad=0, relu=False, trim_cols=True):
    # x: (N, H, W, C); weight: (Cout, Cin, kh, kw); bias: (Cout,)
    N, H, W, C = x.shape
    Cout, _, kh, kw = weight.shape
    Ho = (H + 2 * pad - kh) // stride + 1
    Wo = (W + 2 * pad - kw) // stride + 1
    xp = jnp.pad(x, ((0, 0), (pad, pad), (pad, pad), (0, 0)))

    cols = []
    for i in range(kh):
        for j in range(kw):
            cols.append(xp[:, i:i + stride * (Ho - 1) + 1:stride,
                              j:j + stride * (Wo - 1) + 1:stride, :])
    # K ordering (tap, c) to match weight.transpose(2,3,1,0).reshape(kh*kw*C, Cout)
    patches = jnp.stack(cols, axis=3)                    # (N, Ho, Wo, 9, C)
    patches = patches.reshape(N * Ho * Wo, kh * kw * C)

    w2 = jnp.transpose(weight, (2, 3, 1, 0)).reshape(kh * kw * C, Cout)
    out = pallas_matmul_bias(patches, w2, bias, relu=relu, trim_cols=trim_cols)
    return out.reshape(N, Ho, Wo, out.shape[1])


# ----------------------------------------------------------------------------
# Deformable Conv2d (torchvision semantics), NHWC.
# Bilinear sampling = ONE channels-last row gather (36 corner samples fused);
# the 9-tap x Cin reduction GEMM runs in the Pallas kernel.
# TODO(synk): the row gather could itself become a Pallas kernel
#             (PrefetchScalarGridSpec / manual make_async_copy row gather)
#             instead of an XLA gather.
# ----------------------------------------------------------------------------
def deform_conv2d(x, offsets, weight, *, stride=1, pad=1, relu=False):
    # x: (N, H, W, C); offsets: (N, Ho, Wo, >=18) with channels (dy0,dx0,dy1,dx1,...)
    # weight: (Cout, C, 3, 3), bias=False
    N, H, W, C = x.shape
    Cout = weight.shape[0]
    kh = kw = 3
    K = kh * kw
    Ho = (H + 2 * pad - kh) // stride + 1
    Wo = (W + 2 * pad - kw) // stride + 1

    off_y = offsets[..., 0:2 * K:2]                      # (N, Ho, Wo, 9)
    off_x = offsets[..., 1:2 * K:2]                      # (N, Ho, Wo, 9)

    ki = (jnp.arange(K) // kw).astype(jnp.float32)       # (9,)
    kj = (jnp.arange(K) % kw).astype(jnp.float32)
    base_y = (jnp.arange(Ho) * stride - pad).astype(jnp.float32)
    base_x = (jnp.arange(Wo) * stride - pad).astype(jnp.float32)

    py = base_y[None, :, None, None] + ki[None, None, None, :] + off_y  # (N,Ho,Wo,9)
    px = base_x[None, None, :, None] + kj[None, None, None, :] + off_x

    y0 = jnp.floor(py)
    x0 = jnp.floor(px)
    ly = py - y0
    lx = px - x0
    hy = 1.0 - ly
    hx = 1.0 - lx

    # 4 bilinear corners, stacked on a leading axis.
    ys = jnp.stack([y0, y0, y0 + 1.0, y0 + 1.0], axis=0)       # (4, N, Ho, Wo, 9)
    xs = jnp.stack([x0, x0 + 1.0, x0, x0 + 1.0], axis=0)
    wts = jnp.stack([hy * hx, hy * lx, ly * hx, ly * lx], axis=0)
    # per-corner zero-padding mask (matches torchvision DeformConv2d)
    ok = ((ys >= 0) & (ys <= H - 1) & (xs >= 0) & (xs <= W - 1)).astype(x.dtype)
    wts = wts * ok

    yc = jnp.clip(ys, 0, H - 1).astype(jnp.int32)
    xc = jnp.clip(xs, 0, W - 1).astype(jnp.int32)
    idx = (yc * W + xc).transpose(1, 0, 2, 3, 4).reshape(N, 4 * Ho * Wo * K)

    # One gather of lane-contiguous C-wide rows from (N, H*W, C).
    x_flat = x.reshape(N, H * W, C)
    v = jax.vmap(lambda xf, ix: jnp.take(xf, ix, axis=0, mode="clip"))(x_flat, idx)
    v = v.reshape(N, 4, Ho, Wo, K, C)

    wts = wts.transpose(1, 0, 2, 3, 4)[..., None]              # (N,4,Ho,Wo,9,1)
    val = (v * wts).sum(axis=1)                                # (N,Ho,Wo,9,C)

    patches = val.reshape(N * Ho * Wo, K * C)
    w2 = jnp.transpose(weight, (2, 3, 1, 0)).reshape(K * C, Cout)
    out = pallas_matmul_bias(patches, w2, jnp.zeros((Cout,), jnp.float32),
                             relu=relu, trim_cols=True)
    return out.reshape(N, Ho, Wo, out.shape[1])


# ----------------------------------------------------------------------------
# Channels-last glue ops (BatchNorm training-mode batch stats, AvgPool)
# TODO(synk): BN-affine fusion into the GEMM epilogue needs the global batch
#             stats (a cross-row reduction over the whole layer output), so
#             the normalize/affine stays as a lane-dense XLA op.
# ----------------------------------------------------------------------------
def batchnorm_nhwc(x, gamma, beta, eps=1e-5):
    mean = x.mean(axis=(0, 1, 2))
    var = ((x - mean) ** 2).mean(axis=(0, 1, 2))
    inv = jax.lax.rsqrt(var + eps)
    return (x - mean) * (inv * gamma) + beta


def avgpool_nhwc(x, k):
    N, H, W, C = x.shape
    Ho, Wo = H // k, W // k
    x = x[:, :Ho * k, :Wo * k, :].reshape(N, Ho, k, Wo, k, C)
    return x.mean(axis=(2, 4))


# ----------------------------------------------------------------------------
# Model parameters (deterministic init) and forward pass
# ----------------------------------------------------------------------------
def init_params(key):
    def nrm(key, shape, scale=0.05):
        return scale * jax.random.normal(key, shape, dtype=jnp.float32)

    keys = jax.random.split(key, 16)
    p = {}
    # features[0]: Conv2d(1, 32, 3x3), bias=True
    p["conv1_w"] = nrm(keys[0], (32, 1, 3, 3))
    p["conv1_b"] = nrm(keys[1], (32,))
    p["bn1_g"] = jnp.ones((32,), jnp.float32)
    p["bn1_b"] = jnp.zeros((32,), jnp.float32)
    # DeformConv(32, 64, stride=2)
    p["dc1_off_w"] = nrm(keys[2], (18, 32, 3, 3))
    p["dc1_off_b"] = nrm(keys[3], (18,))
    p["dc1_w"] = nrm(keys[4], (64, 32, 3, 3))
    p["bn2_g"] = jnp.ones((64,), jnp.float32)
    p["bn2_b"] = jnp.zeros((64,), jnp.float32)
    # DeformConv(64, 128, stride=1)
    p["dc2_off_w"] = nrm(keys[5], (18, 64, 3, 3))
    p["dc2_off_b"] = nrm(keys[6], (18,))
    p["dc2_w"] = nrm(keys[7], (128, 64, 3, 3))
    p["bn3_g"] = jnp.ones((128,), jnp.float32)
    p["bn3_b"] = jnp.zeros((128,), jnp.float32)
    # DeformConv(128, 128, stride=2)
    p["dc3_off_w"] = nrm(keys[8], (18, 128, 3, 3))
    p["dc3_off_b"] = nrm(keys[9], (18,))
    p["dc3_w"] = nrm(keys[10], (128, 128, 3, 3))
    p["bn4_g"] = jnp.ones((128,), jnp.float32)
    p["bn4_b"] = jnp.zeros((128,), jnp.float32)
    # classify: Linear(128, 10)
    p["fc_w"] = nrm(keys[11], (10, 128))
    p["fc_b"] = nrm(keys[12], (10,))
    return p


def deform_block(x, off_w, off_b, w, *, stride):
    # offset_net: Conv2d(C, 18, 3, pad=1, stride=stride, bias=True)
    # keep the lane-dense 128-padded output; only channels 0..17 are consumed.
    offsets = conv2d(x, off_w, off_b, stride=stride, pad=1, relu=False,
                     trim_cols=False)
    # deform_conv: DeformConv2d(C, Cout, 3, pad=1, stride=stride, bias=False)
    # (module's ReLU after DeformConv is fused into the GEMM epilogue)
    return deform_conv2d(x, offsets, w, stride=stride, pad=1, relu=True)


def deformed_conv_model_forward(params, x):
    p = params
    h = jnp.transpose(x, (0, 2, 3, 1))          # NCHW -> NHWC once at entry
    # Conv2d(1,32,3) -> ReLU (fused) -> BatchNorm2d(32)
    h = conv2d(h, p["conv1_w"], p["conv1_b"], stride=1, pad=0, relu=True)
    h = batchnorm_nhwc(h, p["bn1_g"], p["bn1_b"])
    # DeformConv(32,64,stride=2) -> ReLU (fused) -> BN(64)
    h = deform_block(h, p["dc1_off_w"], p["dc1_off_b"], p["dc1_w"], stride=2)
    h = batchnorm_nhwc(h, p["bn2_g"], p["bn2_b"])
    # DeformConv(64,128) -> ReLU -> BN(128)
    h = deform_block(h, p["dc2_off_w"], p["dc2_off_b"], p["dc2_w"], stride=1)
    h = batchnorm_nhwc(h, p["bn3_g"], p["bn3_b"])
    # DeformConv(128,128,stride=2) -> ReLU -> BN(128)
    h = deform_block(h, p["dc3_off_w"], p["dc3_off_b"], p["dc3_w"], stride=2)
    h = batchnorm_nhwc(h, p["bn4_g"], p["bn4_b"])
    # AvgPool2d(4) -> view(-1, 128)
    h = avgpool_nhwc(h, 4)
    h = h.reshape(-1, 128)
    # Linear(128, 10)
    logits = pallas_matmul_bias(h, p["fc_w"].T, p["fc_b"], relu=False)
    return logits


if __name__ == "__main__":
    key = jax.random.PRNGKey(0)
    pkey, xkey = jax.random.split(key)
    params = init_params(pkey)
    # Input: NCHW, spatial 20x20 so that AvgPool2d(4) yields 1x1 (as for MNIST).
    x = jax.random.normal(xkey, (2, 1, 20, 20), dtype=jnp.float32)

    fwd = jax.jit(deformed_conv_model_forward)
    out = fwd(params, x)
    out = jax.block_until_ready(out)
    assert out.shape == (2, 10), out.shape
    assert bool(jnp.all(jnp.isfinite(out)))
    print("KERNEL_OK")
</pallas_src>

<mosaic_0001>
module attributes {stable_mosaic.version = 11 : i64} {
  func.func @_gemm_bias_kernel(%arg0: i32, %arg1: memref<336x9xbf16, #tpu.memory_space<vmem>>, %arg2: memref<9x128xbf16, #tpu.memory_space<vmem>>, %arg3: memref<1x128xf32, #tpu.memory_space<vmem>>, %arg4: memref<336x128xf32, #tpu.memory_space<vmem>>) attributes {dimension_semantics = [#tpu.dimension_semantics<parallel>], iteration_bounds = array<i64: 2>, scalar_prefetch = 0 : i64, scratch_operands = 0 : i64, tpu.core_type = #tpu.core_type<tc>, window_params = [{transform_indices = @transform_0, window_bounds = array<i64: 336, 9>}, {pipeline_mode = #tpu.pipeline_mode<synchronous>, transform_indices = @transform_1, window_bounds = array<i64: 9, 128>}, {pipeline_mode = #tpu.pipeline_mode<synchronous>, transform_indices = @transform_2, window_bounds = array<i64: 1, 128>}, {transform_indices = @transform_3, window_bounds = array<i64: 336, 128>}]} {
    %c0 = arith.constant 0 : index
    %c0_0 = arith.constant 0 : index
    %0 = vector.load %arg1[%c0, %c0_0] : memref<336x9xbf16, #tpu.memory_space<vmem>>, vector<336x9xbf16>
    %c0_1 = arith.constant 0 : index
    %c0_2 = arith.constant 0 : index
    %1 = vector.load %arg2[%c0_1, %c0_2] : memref<9x128xbf16, #tpu.memory_space<vmem>>, vector<9x128xbf16>
    %cst = arith.constant dense<0.000000e+00> : vector<336x128xf32>
    %2 = tpu.matmul %0, %1, %cst {dimension_numbers = #tpu.dot_dimension_numbers<[1], [0], [0], [1], [0, 0, 1, 1], [], []>} : vector<336x9xbf16>, vector<9x128xbf16>, vector<336x128xf32> -> vector<336x128xf32>
    %c0_3 = arith.constant 0 : index
    %c0_4 = arith.constant 0 : index
    %3 = vector.load %arg3[%c0_3, %c0_4] : memref<1x128xf32, #tpu.memory_space<vmem>>, vector<1x128xf32>
    %4 = vector.broadcast %3 : vector<1x128xf32> to vector<336x128xf32>
    %5 = arith.addf %2, %4 : vector<336x128xf32>
    %cst_5 = arith.constant 0.000000e+00 : f32
    %6 = vector.broadcast %cst_5 : f32 to vector<336x128xf32>
    %7 = arith.maximumf %5, %6 : vector<336x128xf32>
    %c0_6 = arith.constant 0 : index
    %c0_7 = arith.constant 0 : index
    %8 = vector.load %arg4[%c0_6, %c0_7] : memref<336x128xf32, #tpu.memory_space<vmem>>, vector<336x128xf32>
    tpu.vector_store %arg4[%c0_6, %c0_7], %7 {strides = array<i32>} : memref<336x128xf32, #tpu.memory_space<vmem>>, vector<336x128xf32>,
    return
  }
  func.func @transform_0(%arg0: i32) -> (i32, i32) {
    %c0_i32 = arith.constant 0 : i32
    %c0_i32_0 = arith.constant 0 : i32
    return %arg0, %c0_i32 : i32, i32
  }
  func.func @transform_1(%arg0: i32) -> (i32, i32) {
    %c0_i32 = arith.constant 0 : i32
    %c0_i32_0 = arith.constant 0 : i32
    %c0_i32_1 = arith.constant 0 : i32
    return %c0_i32, %c0_i32_0 : i32, i32
  }
  func.func @transform_2(%arg0: i32) -> (i32, i32) {
    %c0_i32 = arith.constant 0 : i32
    %c0_i32_0 = arith.constant 0 : i32
    %c0_i32_1 = arith.constant 0 : i32
    return %c0_i32, %c0_i32_0 : i32, i32
  }
  func.func @transform_3(%arg0: i32) -> (i32, i32) {
    %c0_i32 = arith.constant 0 : i32
    %c0_i32_0 = arith.constant 0 : i32
    return %arg0, %c0_i32 : i32, i32
  }
}

module attributes {stable_mosaic.version = 11 : i64} {
  func.func @_gemm_bias_kernel(%arg0: i32, %arg1: memref<162x288xbf16, #tpu.memory_space<vmem>>, %arg2: memref<288x128xbf16, #tpu.memory_space<vmem>>, %arg3: memref<1x128xf32, #tpu.memory_space<vmem>>, %arg4: memref<162x128xf32, #tpu.memory_space<vmem>>) attributes {dimension_semantics = [#tpu.dimension_semantics<parallel>], iteration_bounds = array<i64: 1>, scalar_prefetch = 0 : i64, scratch_operands = 0 : i64, tpu.core_type = #tpu.core_type<tc>, window_params = [{transform_indices = @transform_0, window_bounds = array<i64: 162, 288>}, {pipeline_mode = #tpu.pipeline_mode<synchronous>, transform_indices = @transform_1, window_bounds = array<i64: 288, 128>}, {pipeline_mode = #tpu.pipeline_mode<synchronous>, transform_indices = @transform_2, window_bounds = array<i64: 1, 128>}, {transform_indices = @transform_3, window_bounds = array<i64: 162, 128>}]} {
    %c0 = arith.constant 0 : index
    %c0_0 = arith.constant 0 : index
    %0 = vector.load %arg1[%c0, %c0_0] : memref<162x288xbf16, #tpu.memory_space<vmem>>, vector<162x288xbf16>
    %c0_1 = arith.constant 0 : index
    %c0_2 = arith.constant 0 : index
    %1 = vector.load %arg2[%c0_1, %c0_2] : memref<288x128xbf16, #tpu.memory_space<vmem>>, vector<288x128xbf16>
    %cst = arith.constant dense<0.000000e+00> : vector<162x128xf32>
    %2 = tpu.matmul %0, %1, %cst {dimension_numbers = #tpu.dot_dimension_numbers<[1], [0], [0], [1], [0, 0, 1, 1], [], []>} : vector<162x288xbf16>, vector<288x128xbf16>, vector<162x128xf32> -> vector<162x128xf32>
    %c0_3 = arith.constant 0 : index
    %c0_4 = arith.constant 0 : index
    %3 = vector.load %arg3[%c0_3, %c0_4] : memref<1x128xf32, #tpu.memory_space<vmem>>, vector<1x128xf32>
    %4 = vector.broadcast %3 : vector<1x128xf32> to vector<162x128xf32>
    %5 = arith.addf %2, %4 : vector<162x128xf32>
    %c0_5 = arith.constant 0 : index
    %c0_6 = arith.constant 0 : index
    %6 = vector.load %arg4[%c0_5, %c0_6] : memref<162x128xf32, #tpu.memory_space<vmem>>, vector<162x128xf32>
    tpu.vector_store %arg4[%c0_5, %c0_6], %5 {strides = array<i32>} : memref<162x128xf32, #tpu.memory_space<vmem>>, vector<162x128xf32>,
    return
  }
  func.func @transform_0(%arg0: i32) -> (i32, i32) {
    %c0_i32 = arith.constant 0 : i32
    %c0_i32_0 = arith.constant 0 : i32
    return %arg0, %c0_i32 : i32, i32
  }
  func.func @transform_1(%arg0: i32) -> (i32, i32) {
    %c0_i32 = arith.constant 0 : i32
    %c0_i32_0 = arith.constant 0 : i32
    %c0_i32_1 = arith.constant 0 : i32
    return %c0_i32, %c0_i32_0 : i32, i32
  }
  func.func @transform_2(%arg0: i32) -> (i32, i32) {
    %c0_i32 = arith.constant 0 : i32
    %c0_i32_0 = arith.constant 0 : i32
    %c0_i32_1 = arith.constant 0 : i32
    return %c0_i32, %c0_i32_0 : i32, i32
  }
  func.func @transform_3(%arg0: i32) -> (i32, i32) {
    %c0_i32 = arith.constant 0 : i32
    %c0_i32_0 = arith.constant 0 : i32
    return %arg0, %c0_i32 : i32, i32
  }
}

module attributes {stable_mosaic.version = 11 : i64} {
  func.func @_gemm_bias_kernel(%arg0: i32, %arg1: memref<162x288xbf16, #tpu.memory_space<vmem>>, %arg2: memref<288x128xbf16, #tpu.memory_space<vmem>>, %arg3: memref<1x128xf32, #tpu.memory_space<vmem>>, %arg4: memref<162x128xf32, #tpu.memory_space<vmem>>) attributes {dimension_semantics = [#tpu.dimension_semantics<parallel>], iteration_bounds = array<i64: 1>, scalar_prefetch = 0 : i64, scratch_operands = 0 : i64, tpu.core_type = #tpu.core_type<tc>, window_params = [{transform_indices = @transform_0, window_bounds = array<i64: 162, 288>}, {pipeline_mode = #tpu.pipeline_mode<synchronous>, transform_indices = @transform_1, window_bounds = array<i64: 288, 128>}, {pipeline_mode = #tpu.pipeline_mode<synchronous>, transform_indices = @transform_2, window_bounds = array<i64: 1, 128>}, {transform_indices = @transform_3, window_bounds = array<i64: 162, 128>}]} {
    %c0 = arith.constant 0 : index
    %c0_0 = arith.constant 0 : index
    %0 = vector.load %arg1[%c0, %c0_0] : memref<162x288xbf16, #tpu.memory_space<vmem>>, vector<162x288xbf16>
    %c0_1 = arith.constant 0 : index
    %c0_2 = arith.constant 0 : index
    %1 = vector.load %arg2[%c0_1, %c0_2] : memref<288x128xbf16, #tpu.memory_space<vmem>>, vector<288x128xbf16>
    %cst = arith.constant dense<0.000000e+00> : vector<162x128xf32>
    %2 = tpu.matmul %0, %1, %cst {dimension_numbers = #tpu.dot_dimension_numbers<[1], [0], [0], [1], [0, 0, 1, 1], [], []>} : vector<162x288xbf16>, vector<288x128xbf16>, vector<162x128xf32> -> vector<162x128xf32>
    %c0_3 = arith.constant 0 : index
    %c0_4 = arith.constant 0 : index
    %3 = vector.load %arg3[%c0_3, %c0_4] : memref<1x128xf32, #tpu.memory_space<vmem>>, vector<1x128xf32>
    %4 = vector.broadcast %3 : vector<1x128xf32> to vector<162x128xf32>
    %5 = arith.addf %2, %4 : vector<162x128xf32>
    %cst_5 = arith.constant 0.000000e+00 : f32
    %6 = vector.broadcast %cst_5 : f32 to vector<162x128xf32>
    %7 = arith.maximumf %5, %6 : vector<162x128xf32>
    %c0_6 = arith.constant 0 : index
    %c0_7 = arith.constant 0 : index
    %8 = vector.load %arg4[%c0_6, %c0_7] : memref<162x128xf32, #tpu.memory_space<vmem>>, vector<162x128xf32>
    tpu.vector_store %arg4[%c0_6, %c0_7], %7 {strides = array<i32>} : memref<162x128xf32, #tpu.memory_space<vmem>>, vector<162x128xf32>,
    return
  }
  func.func @transform_0(%arg0: i32) -> (i32, i32) {
    %c0_i32 = arith.constant 0 : i32
    %c0_i32_0 = arith.constant 0 : i32
    return %arg0, %c0_i32 : i32, i32
  }
  func.func @transform_1(%arg0: i32) -> (i32, i32) {
    %c0_i32 = arith.constant 0 : i32
    %c0_i32_0 = arith.constant 0 : i32
    %c0_i32_1 = arith.constant 0 : i32
    return %c0_i32, %c0_i32_0 : i32, i32
  }
  func.func @transform_2(%arg0: i32) -> (i32, i32) {
    %c0_i32 = arith.constant 0 : i32
    %c0_i32_0 = arith.constant 0 : i32
    %c0_i32_1 = arith.constant 0 : i32
    return %c0_i32, %c0_i32_0 : i32, i32
  }
  func.func @transform_3(%arg0: i32) -> (i32, i32) {
    %c0_i32 = arith.constant 0 : i32
    %c0_i32_0 = arith.constant 0 : i32
    return %arg0, %c0_i32 : i32, i32
  }
}

module attributes {stable_mosaic.version = 11 : i64} {
  func.func @_gemm_bias_kernel(%arg0: i32, %arg1: memref<162x576xbf16, #tpu.memory_space<vmem>>, %arg2: memref<576x128xbf16, #tpu.memory_space<vmem>>, %arg3: memref<1x128xf32, #tpu.memory_space<vmem>>, %arg4: memref<162x128xf32, #tpu.memory_space<vmem>>) attributes {dimension_semantics = [#tpu.dimension_semantics<parallel>], iteration_bounds = array<i64: 1>, scalar_prefetch = 0 : i64, scratch_operands = 0 : i64, tpu.core_type = #tpu.core_type<tc>, window_params = [{transform_indices = @transform_0, window_bounds = array<i64: 162, 576>}, {pipeline_mode = #tpu.pipeline_mode<synchronous>, transform_indices = @transform_1, window_bounds = array<i64: 576, 128>}, {pipeline_mode = #tpu.pipeline_mode<synchronous>, transform_indices = @transform_2, window_bounds = array<i64: 1, 128>}, {transform_indices = @transform_3, window_bounds = array<i64: 162, 128>}]} {
    %c0 = arith.constant 0 : index
    %c0_0 = arith.constant 0 : index
    %0 = vector.load %arg1[%c0, %c0_0] : memref<162x576xbf16, #tpu.memory_space<vmem>>, vector<162x576xbf16>
    %c0_1 = arith.constant 0 : index
    %c0_2 = arith.constant 0 : index
    %1 = vector.load %arg2[%c0_1, %c0_2] : memref<576x128xbf16, #tpu.memory_space<vmem>>, vector<576x128xbf16>
    %cst = arith.constant dense<0.000000e+00> : vector<162x128xf32>
    %2 = tpu.matmul %0, %1, %cst {dimension_numbers = #tpu.dot_dimension_numbers<[1], [0], [0], [1], [0, 0, 1, 1], [], []>} : vector<162x576xbf16>, vector<576x128xbf16>, vector<162x128xf32> -> vector<162x128xf32>
    %c0_3 = arith.constant 0 : index
    %c0_4 = arith.constant 0 : index
    %3 = vector.load %arg3[%c0_3, %c0_4] : memref<1x128xf32, #tpu.memory_space<vmem>>, vector<1x128xf32>
    %4 = vector.broadcast %3 : vector<1x128xf32> to vector<162x128xf32>
    %5 = arith.addf %2, %4 : vector<162x128xf32>
    %c0_5 = arith.constant 0 : index
    %c0_6 = arith.constant 0 : index
    %6 = vector.load %arg4[%c0_5, %c0_6] : memref<162x128xf32, #tpu.memory_space<vmem>>, vector<162x128xf32>
    tpu.vector_store %arg4[%c0_5, %c0_6], %5 {strides = array<i32>} : memref<162x128xf32, #tpu.memory_space<vmem>>, vector<162x128xf32>,
    return
  }
  func.func @transform_0(%arg0: i32) -> (i32, i32) {
    %c0_i32 = arith.constant 0 : i32
    %c0_i32_0 = arith.constant 0 : i32
    return %arg0, %c0_i32 : i32, i32
  }
  func.func @transform_1(%arg0: i32) -> (i32, i32) {
    %c0_i32 = arith.constant 0 : i32
    %c0_i32_0 = arith.constant 0 : i32
    %c0_i32_1 = arith.constant 0 : i32
    return %c0_i32, %c0_i32_0 : i32, i32
  }
  func.func @transform_2(%arg0: i32) -> (i32, i32) {
    %c0_i32 = arith.constant 0 : i32
    %c0_i32_0 = arith.constant 0 : i32
    %c0_i32_1 = arith.constant 0 : i32
    return %c0_i32, %c0_i32_0 : i32, i32
  }
  func.func @transform_3(%arg0: i32) -> (i32, i32) {
    %c0_i32 = arith.constant 0 : i32
    %c0_i32_0 = arith.constant 0 : i32
    return %arg0, %c0_i32 : i32, i32
  }
}

module attributes {stable_mosaic.version = 11 : i64} {
  func.func @_gemm_bias_kernel(%arg0: i32, %arg1: memref<162x576xbf16, #tpu.memory_space<vmem>>, %arg2: memref<576x128xbf16, #tpu.memory_space<vmem>>, %arg3: memref<1x128xf32, #tpu.memory_space<vmem>>, %arg4: memref<162x128xf32, #tpu.memory_space<vmem>>) attributes {dimension_semantics = [#tpu.dimension_semantics<parallel>], iteration_bounds = array<i64: 1>, scalar_prefetch = 0 : i64, scratch_operands = 0 : i64, tpu.core_type = #tpu.core_type<tc>, window_params = [{transform_indices = @transform_0, window_bounds = array<i64: 162, 576>}, {pipeline_mode = #tpu.pipeline_mode<synchronous>, transform_indices = @transform_1, window_bounds = array<i64: 576, 128>}, {pipeline_mode = #tpu.pipeline_mode<synchronous>, transform_indices = @transform_2, window_bounds = array<i64: 1, 128>}, {transform_indices = @transform_3, window_bounds = array<i64: 162, 128>}]} {
    %c0 = arith.constant 0 : index
    %c0_0 = arith.constant 0 : index
    %0 = vector.load %arg1[%c0, %c0_0] : memref<162x576xbf16, #tpu.memory_space<vmem>>, vector<162x576xbf16>
    %c0_1 = arith.constant 0 : index
    %c0_2 = arith.constant 0 : index
    %1 = vector.load %arg2[%c0_1, %c0_2] : memref<576x128xbf16, #tpu.memory_space<vmem>>, vector<576x128xbf16>
    %cst = arith.constant dense<0.000000e+00> : vector<162x128xf32>
    %2 = tpu.matmul %0, %1, %cst {dimension_numbers = #tpu.dot_dimension_numbers<[1], [0], [0], [1], [0, 0, 1, 1], [], []>} : vector<162x576xbf16>, vector<576x128xbf16>, vector<162x128xf32> -> vector<162x128xf32>
    %c0_3 = arith.constant 0 : index
    %c0_4 = arith.constant 0 : index
    %3 = vector.load %arg3[%c0_3, %c0_4] : memref<1x128xf32, #tpu.memory_space<vmem>>, vector<1x128xf32>
    %4 = vector.broadcast %3 : vector<1x128xf32> to vector<162x128xf32>
    %5 = arith.addf %2, %4 : vector<162x128xf32>
    %cst_5 = arith.constant 0.000000e+00 : f32
    %6 = vector.broadcast %cst_5 : f32 to vector<162x128xf32>
    %7 = arith.maximumf %5, %6 : vector<162x128xf32>
    %c0_6 = arith.constant 0 : index
    %c0_7 = arith.constant 0 : index
    %8 = vector.load %arg4[%c0_6, %c0_7] : memref<162x128xf32, #tpu.memory_space<vmem>>, vector<162x128xf32>
    tpu.vector_store %arg4[%c0_6, %c0_7], %7 {strides = array<i32>} : memref<162x128xf32, #tpu.memory_space<vmem>>, vector<162x128xf32>,
    return
  }
  func.func @transform_0(%arg0: i32) -> (i32, i32) {
    %c0_i32 = arith.constant 0 : i32
    %c0_i32_0 = arith.constant 0 : i32
    return %arg0, %c0_i32 : i32, i32
  }
  func.func @transform_1(%arg0: i32) -> (i32, i32) {
    %c0_i32 = arith.constant 0 : i32
    %c0_i32_0 = arith.constant 0 : i32
    %c0_i32_1 = arith.constant 0 : i32
    return %c0_i32, %c0_i32_0 : i32, i32
  }
  func.func @transform_2(%arg0: i32) -> (i32, i32) {
    %c0_i32 = arith.constant 0 : i32
    %c0_i32_0 = arith.constant 0 : i32
    %c0_i32_1 = arith.constant 0 : i32
    return %c0_i32, %c0_i32_0 : i32, i32
  }
  func.func @transform_3(%arg0: i32) -> (i32, i32) {
    %c0_i32 = arith.constant 0 : i32
    %c0_i32_0 = arith.constant 0 : i32
    return %arg0, %c0_i32 : i32, i32
  }
}

module attributes {stable_mosaic.version = 11 : i64} {
  func.func @_gemm_bias_kernel(%arg0: i32, %arg1: memref<50x1152xbf16, #tpu.memory_space<vmem>>, %arg2: memref<1152x128xbf16, #tpu.memory_space<vmem>>, %arg3: memref<1x128xf32, #tpu.memory_space<vmem>>, %arg4: memref<50x128xf32, #tpu.memory_space<vmem>>) attributes {dimension_semantics = [#tpu.dimension_semantics<parallel>], iteration_bounds = array<i64: 1>, scalar_prefetch = 0 : i64, scratch_operands = 0 : i64, tpu.core_type = #tpu.core_type<tc>, window_params = [{transform_indices = @transform_0, window_bounds = array<i64: 50, 1152>}, {pipeline_mode = #tpu.pipeline_mode<synchronous>, transform_indices = @transform_1, window_bounds = array<i64: 1152, 128>}, {pipeline_mode = #tpu.pipeline_mode<synchronous>, transform_indices = @transform_2, window_bounds = array<i64: 1, 128>}, {transform_indices = @transform_3, window_bounds = array<i64: 50, 128>}]} {
    %c0 = arith.constant 0 : index
    %c0_0 = arith.constant 0 : index
    %0 = vector.load %arg1[%c0, %c0_0] : memref<50x1152xbf16, #tpu.memory_space<vmem>>, vector<50x1152xbf16>
    %c0_1 = arith.constant 0 : index
    %c0_2 = arith.constant 0 : index
    %1 = vector.load %arg2[%c0_1, %c0_2] : memref<1152x128xbf16, #tpu.memory_space<vmem>>, vector<1152x128xbf16>
    %cst = arith.constant dense<0.000000e+00> : vector<50x128xf32>
    %2 = tpu.matmul %0, %1, %cst {dimension_numbers = #tpu.dot_dimension_numbers<[1], [0], [0], [1], [0, 0, 1, 1], [], []>} : vector<50x1152xbf16>, vector<1152x128xbf16>, vector<50x128xf32> -> vector<50x128xf32>
    %c0_3 = arith.constant 0 : index
    %c0_4 = arith.constant 0 : index
    %3 = vector.load %arg3[%c0_3, %c0_4] : memref<1x128xf32, #tpu.memory_space<vmem>>, vector<1x128xf32>
    %4 = vector.broadcast %3 : vector<1x128xf32> to vector<50x128xf32>
    %5 = arith.addf %2, %4 : vector<50x128xf32>
    %c0_5 = arith.constant 0 : index
    %c0_6 = arith.constant 0 : index
    %6 = vector.load %arg4[%c0_5, %c0_6] : memref<50x128xf32, #tpu.memory_space<vmem>>, vector<50x128xf32>
    tpu.vector_store %arg4[%c0_5, %c0_6], %5 {strides = array<i32>} : memref<50x128xf32, #tpu.memory_space<vmem>>, vector<50x128xf32>,
    return
  }
  func.func @transform_0(%arg0: i32) -> (i32, i32) {
    %c0_i32 = arith.constant 0 : i32
    %c0_i32_0 = arith.constant 0 : i32
    return %arg0, %c0_i32 : i32, i32
  }
  func.func @transform_1(%arg0: i32) -> (i32, i32) {
    %c0_i32 = arith.constant 0 : i32
    %c0_i32_0 = arith.constant 0 : i32
    %c0_i32_1 = arith.constant 0 : i32
    return %c0_i32, %c0_i32_0 : i32, i32
  }
  func.func @transform_2(%arg0: i32) -> (i32, i32) {
    %c0_i32 = arith.constant 0 : i32
    %c0_i32_0 = arith.constant 0 : i32
    %c0_i32_1 = arith.constant 0 : i32
    return %c0_i32, %c0_i32_0 : i32, i32
  }
  func.func @transform_3(%arg0: i32) -> (i32, i32) {
    %c0_i32 = arith.constant 0 : i32
    %c0_i32_0 = arith.constant 0 : i32
    return %arg0, %c0_i32 : i32, i32
  }
}

module attributes {stable_mosaic.version = 11 : i64} {
  func.func @_gemm_bias_kernel(%arg0: i32, %arg1: memref<50x1152xbf16, #tpu.memory_space<vmem>>, %arg2: memref<1152x128xbf16, #tpu.memory_space<vmem>>, %arg3: memref<1x128xf32, #tpu.memory_space<vmem>>, %arg4: memref<50x128xf32, #tpu.memory_space<vmem>>) attributes {dimension_semantics = [#tpu.dimension_semantics<parallel>], iteration_bounds = array<i64: 1>, scalar_prefetch = 0 : i64, scratch_operands = 0 : i64, tpu.core_type = #tpu.core_type<tc>, window_params = [{transform_indices = @transform_0, window_bounds = array<i64: 50, 1152>}, {pipeline_mode = #tpu.pipeline_mode<synchronous>, transform_indices = @transform_1, window_bounds = array<i64: 1152, 128>}, {pipeline_mode = #tpu.pipeline_mode<synchronous>, transform_indices = @transform_2, window_bounds = array<i64: 1, 128>}, {transform_indices = @transform_3, window_bounds = array<i64: 50, 128>}]} {
    %c0 = arith.constant 0 : index
    %c0_0 = arith.constant 0 : index
    %0 = vector.load %arg1[%c0, %c0_0] : memref<50x1152xbf16, #tpu.memory_space<vmem>>, vector<50x1152xbf16>
    %c0_1 = arith.constant 0 : index
    %c0_2 = arith.constant 0 : index
    %1 = vector.load %arg2[%c0_1, %c0_2] : memref<1152x128xbf16, #tpu.memory_space<vmem>>, vector<1152x128xbf16>
    %cst = arith.constant dense<0.000000e+00> : vector<50x128xf32>
    %2 = tpu.matmul %0, %1, %cst {dimension_numbers = #tpu.dot_dimension_numbers<[1], [0], [0], [1], [0, 0, 1, 1], [], []>} : vector<50x1152xbf16>, vector<1152x128xbf16>, vector<50x128xf32> -> vector<50x128xf32>
    %c0_3 = arith.constant 0 : index
    %c0_4 = arith.constant 0 : index
    %3 = vector.load %arg3[%c0_3, %c0_4] : memref<1x128xf32, #tpu.memory_space<vmem>>, vector<1x128xf32>
    %4 = vector.broadcast %3 : vector<1x128xf32> to vector<50x128xf32>
    %5 = arith.addf %2, %4 : vector<50x128xf32>
    %cst_5 = arith.constant 0.000000e+00 : f32
    %6 = vector.broadcast %cst_5 : f32 to vector<50x128xf32>
    %7 = arith.maximumf %5, %6 : vector<50x128xf32>
    %c0_6 = arith.constant 0 : index
    %c0_7 = arith.constant 0 : index
    %8 = vector.load %arg4[%c0_6, %c0_7] : memref<50x128xf32, #tpu.memory_space<vmem>>, vector<50x128xf32>
    tpu.vector_store %arg4[%c0_6, %c0_7], %7 {strides = array<i32>} : memref<50x128xf32, #tpu.memory_space<vmem>>, vector<50x128xf32>,
    return
  }
  func.func @transform_0(%arg0: i32) -> (i32, i32) {
    %c0_i32 = arith.constant 0 : i32
    %c0_i32_0 = arith.constant 0 : i32
    return %arg0, %c0_i32 : i32, i32
  }
  func.func @transform_1(%arg0: i32) -> (i32, i32) {
    %c0_i32 = arith.constant 0 : i32
    %c0_i32_0 = arith.constant 0 : i32
    %c0_i32_1 = arith.constant 0 : i32
    return %c0_i32, %c0_i32_0 : i32, i32
  }
  func.func @transform_2(%arg0: i32) -> (i32, i32) {
    %c0_i32 = arith.constant 0 : i32
    %c0_i32_0 = arith.constant 0 : i32
    %c0_i32_1 = arith.constant 0 : i32
    return %c0_i32, %c0_i32_0 : i32, i32
  }
  func.func @transform_3(%arg0: i32) -> (i32, i32) {
    %c0_i32 = arith.constant 0 : i32
    %c0_i32_0 = arith.constant 0 : i32
    return %arg0, %c0_i32 : i32, i32
  }
}

module attributes {stable_mosaic.version = 11 : i64} {
  func.func @_gemm_bias_kernel(%arg0: i32, %arg1: memref<2x128xbf16, #tpu.memory_space<vmem>>, %arg2: memref<128x128xbf16, #tpu.memory_space<vmem>>, %arg3: memref<1x128xf32, #tpu.memory_space<vmem>>, %arg4: memref<2x128xf32, #tpu.memory_space<vmem>>) attributes {dimension_semantics = [#tpu.dimension_semantics<parallel>], iteration_bounds = array<i64: 1>, scalar_prefetch = 0 : i64, scratch_operands = 0 : i64, tpu.core_type = #tpu.core_type<tc>, window_params = [{transform_indices = @transform_0, window_bounds = array<i64: 2, 128>}, {pipeline_mode = #tpu.pipeline_mode<synchronous>, transform_indices = @transform_1, window_bounds = array<i64: 128, 128>}, {pipeline_mode = #tpu.pipeline_mode<synchronous>, transform_indices = @transform_2, window_bounds = array<i64: 1, 128>}, {transform_indices = @transform_3, window_bounds = array<i64: 2, 128>}]} {
    %c0 = arith.constant 0 : index
    %c0_0 = arith.constant 0 : index
    %0 = vector.load %arg1[%c0, %c0_0] : memref<2x128xbf16, #tpu.memory_space<vmem>>, vector<2x128xbf16>
    %c0_1 = arith.constant 0 : index
    %c0_2 = arith.constant 0 : index
    %1 = vector.load %arg2[%c0_1, %c0_2] : memref<128x128xbf16, #tpu.memory_space<vmem>>, vector<128x128xbf16>
    %cst = arith.constant dense<0.000000e+00> : vector<2x128xf32>
    %2 = tpu.matmul %0, %1, %cst {dimension_numbers = #tpu.dot_dimension_numbers<[1], [0], [0], [1], [0, 0, 1, 1], [], []>} : vector<2x128xbf16>, vector<128x128xbf16>, vector<2x128xf32> -> vector<2x128xf32>
    %c0_3 = arith.constant 0 : index
    %c0_4 = arith.constant 0 : index
    %3 = vector.load %arg3[%c0_3, %c0_4] : memref<1x128xf32, #tpu.memory_space<vmem>>, vector<1x128xf32>
    %4 = vector.broadcast %3 : vector<1x128xf32> to vector<2x128xf32>
    %5 = arith.addf %2, %4 : vector<2x128xf32>
    %c0_5 = arith.constant 0 : index
    %c0_6 = arith.constant 0 : index
    %6 = vector.load %arg4[%c0_5, %c0_6] : memref<2x128xf32, #tpu.memory_space<vmem>>, vector<2x128xf32>
    tpu.vector_store %arg4[%c0_5, %c0_6], %5 {strides = array<i32>} : memref<2x128xf32, #tpu.memory_space<vmem>>, vector<2x128xf32>,
    return
  }
  func.func @transform_0(%arg0: i32) -> (i32, i32) {
    %c0_i32 = arith.constant 0 : i32
    %c0_i32_0 = arith.constant 0 : i32
    return %arg0, %c0_i32 : i32, i32
  }
  func.func @transform_1(%arg0: i32) -> (i32, i32) {
    %c0_i32 = arith.constant 0 : i32
    %c0_i32_0 = arith.constant 0 : i32
    %c0_i32_1 = arith.constant 0 : i32
    return %c0_i32, %c0_i32_0 : i32, i32
  }
  func.func @transform_2(%arg0: i32) -> (i32, i32) {
    %c0_i32 = arith.constant 0 : i32
    %c0_i32_0 = arith.constant 0 : i32
    %c0_i32_1 = arith.constant 0 : i32
    return %c0_i32, %c0_i32_0 : i32, i32
  }
  func.func @transform_3(%arg0: i32) -> (i32, i32) {
    %c0_i32 = arith.constant 0 : i32
    %c0_i32_0 = arith.constant 0 : i32
    return %arg0, %c0_i32 : i32, i32
  }
}

</mosaic_0001>

<bundles_post_ra>
// kernel: deformed_conv_model_forward.8
= control target key start
LH: loop header
LB: loop body
LE: loop exit
PB: predicated region body
PF: predicated region fallthrough
CT: control target
= control target key end

     0   :  { %s840_s12 = smov 0   ;;  %s1002_s0 = inlined_call_operand.vmem [shape: bf16[672,9], index: 0, kind: input, shape index: {}]   ;;  %s1003_s1 = inlined_call_operand.vmem [shape: bf16[9,128], index: 1, kind: input, shape index: {}]   ;;  %s1004_s2 = inlined_call_operand.vmem [shape: f32[1,128], index: 2, kind: input, shape index: {}]   ;;  %s1005_s3 = inlined_call_operand.vmem [shape: f32[672,128], index: 3, kind: output, shape index: {}]  }
   0x1 LB: > { %s658_s13 = sadd.s32 4294967295, %s817_s12   ;;  %p662_p0 = scmp.ge.s32.totalorder %s817_s12, 1  ;;  %s817_s12 = sphi %s840_s12, %s13_s12  }
   0x2   : > { %p138_p1 = scmp.lt.s32.totalorder %s817_s12, 3 }
   0x4   : > { %p139_p2 = pnand %p662_p0, %p138_p1 }
   0x5   : > { %s162_s18 = smul.u32 (!%p139_p2), 42, %s658_s13 }
   0x6   : > { %142 = sbr.rel (%p139_p2) target bundleno = 246 (0xf6), region = 32 }
   0x7   : > { %p163_p3 = scmp.lt.s32.totalorder (!%p139_p2), %s162_s18, 83 }
   0xb   : > { %v751_v0 = vld [vmem:[%s1003_s1] sm:$0xf]  ;;  %v797_v1 = vld [vmem:[%s1003_s1] sm:$0x10]  ;;  %vm397_vm0 = vcmask 1043456   ;;  %vm398_vm1 = vcmask 1044480  }
   0xc   : > { %v752_v2 = vor.u32 %v797_v1, %v751_v0  ;;  %v819_v3 = vmov 65535   ;;  %s1007_s18 = smov (!%p163_p3, %s162_s18), 83  ;;  %vm333_vm2 = vcmask 72704   ;;  %v907_v28 = vld [vmem:[%s1004_s2] ss:$0 sm:$0xff] }
   0xd   : > { %v399_v4 = vsel %vm397_vm0, 4294967295, %v819_v3  ;;  %s663_s19 = sshll.u32 %s1007_s18, 2  ;;  %s664_s25 = sshll.u32 %s1007_s18, 3 }
   0xe   : > { %v400_v5 = vsel %vm398_vm1, %v399_v4, 0  ;;  %s860_s22 = scalar_lea.vmem %s1002_s0, %s663_s19  ;;  %s915_s28 = scalar_lea.vmem %s1005_s3, %s664_s25 }
   0xf   : > { %v402_v6 = vand.u32 %v752_v2, %v400_v5  ;;  %v776_v7 = vld [vmem:[%s860_s22] sm:$0xff]  ;;  %v782_v8 = vld [vmem:[%s860_s22 + $0x30] sm:$0xff]  ;;  %v777_v11 = vld [vmem:[%s860_s22 + $0x8] sm:$0xff] }
  0x10   : > { %v788_v9 = vld [vmem:[%s860_s22 + $0x60] sm:$0xff]  ;;  %v794_v10 = vld [vmem:[%s860_s22 + $0x90] sm:$0xff]  ;;  %v783_v12 = vld [vmem:[%s860_s22 + $0x38] sm:$0xff] }
  0x11   : > { %411 = vmatpush.bf16.msra.mxu0 %v402_v6  ;;  %798 = vmatpush.bf16.msra.mxu1 %v402_v6  ;;  %v789_v13 = vld [vmem:[%s860_s22 + $0x68] sm:$0xff]  ;;  %v795_v14 = vld [vmem:[%s860_s22 + $0x98] sm:$0xff]  ;;  %v778_v15 = vld [vmem:[%s860_s22 + $0x10] sm:$0xff] }
  0x12   : > { %799 = vmatpush.bf16.msra.mxu2 %v402_v6  ;;  %800 = vmatpush.bf16.msra.mxu3 %v402_v6  ;;  %v784_v16 = vld [vmem:[%s860_s22 + $0x40] sm:$0xff]  ;;  %v790_v17 = vld [vmem:[%s860_s22 + $0x70] sm:$0xff]  ;;  %v779_v19 = vld [vmem:[%s860_s22 + $0x18] sm:$0xff] }
  0x13   : > { %v796_v18 = vld [vmem:[%s860_s22 + $0xa0] sm:$0xff]  ;;  %v785_v20 = vld [vmem:[%s860_s22 + $0x48] sm:$0xff]  ;;  %v791_v21 = vld [vmem:[%s860_s22 + $0x78] sm:$0xff] }
  0x14   : > { %753 = vmatmul.msk.bf16.vlgmr.msra.gmra.mxu0 %vm333_vm2, %v776_v7  ;;  %759 = vmatmul.msk.bf16.vlgmr.msra.gmra.mxu1 %vm333_vm2, %v782_v8  ;;  %v780_v22 = vld [vmem:[%s860_s22 + $0x20] sm:$0xff]  ;;  %v786_v23 = vld [vmem:[%s860_s22 + $0x50] sm:$0xff]  ;;  %v781_v25 = vld [vmem:[%s860_s22 + $0x28] sm:$0xff] }
  0x15   : > { %765 = vmatmul.msk.bf16.vlgmr.msra.gmra.mxu2 %vm333_vm2, %v788_v9  ;;  %771 = vmatmul.msk.bf16.vlgmr.msra.gmra.mxu3 %vm333_vm2, %v794_v10  ;;  %v792_v24 = vld [vmem:[%s860_s22 + $0x80] sm:$0xff]  ;;  %v787_v26 = vld [vmem:[%s860_s22 + $0x58] sm:$0xff]  ;;  %v793_v27 = vld [vmem:[%s860_s22 + $0x88] sm:$0xff] }
  0x24   : > { %754 = vmatmul.msk.bf16.gmra.mxu0 %vm333_vm2, %v777_v11  ;;  %760 = vmatmul.msk.bf16.gmra.mxu1 %vm333_vm2, %v783_v12 }
  0x25   : > { %766 = vmatmul.msk.bf16.gmra.mxu2 %vm333_vm2, %v789_v13  ;;  %772 = vmatmul.msk.bf16.gmra.mxu3 %vm333_vm2, %v795_v14 }
  0x34   : > { %755 = vmatmul.msk.bf16.gmra.mxu0 %vm333_vm2, %v778_v15  ;;  %761 = vmatmul.msk.bf16.gmra.mxu1 %vm333_vm2, %v784_v16 }
  0x35   : > { %767 = vmatmul.msk.bf16.gmra.mxu2 %vm333_vm2, %v790_v17  ;;  %773 = vmatmul.msk.bf16.gmra.mxu3 %vm333_vm2, %v796_v18 }
  0x44   : > { %756 = vmatmul.msk.bf16.gmra.mxu0 %vm333_vm2, %v779_v19  ;;  %762 = vmatmul.msk.bf16.gmra.mxu1 %vm333_vm2, %v785_v20 }
  0x45   : > { %768 = vmatmul.msk.bf16.gmra.mxu2 %vm333_vm2, %v791_v21 }
  0x54   : > { %757 = vmatmul.msk.bf16.gmra.mxu0 %vm333_vm2, %v780_v22  ;;  %763 = vmatmul.msk.bf16.gmra.mxu1 %vm333_vm2, %v786_v23 }
  0x55   : > { %769 = vmatmul.msk.bf16.gmra.mxu2 %vm333_vm2, %v792_v24 }
  0x64   : > { %758 = vmatmul.msk.bf16.gmra.mxu0 %vm333_vm2, %v781_v25  ;;  %764 = vmatmul.msk.bf16.gmra.mxu1 %vm333_vm2, %v787_v26 }
  0x65   : > { %770 = vmatmul.msk.bf16.gmra.mxu2 %vm333_vm2, %v793_v27 }
  0x91   : > { %v413_v29 = vpop.f32.mrf.mxu0  ;;  %v443_v30 = vpop.f32.mrf.mxu1 }
  0x92   : > { %v414_v31 = vadd.f32 %v907_v28, %v413_v29  ;;  %v444_v32 = vadd.f32 %v907_v28, %v443_v30 }
  0x94   : > { %v518_v33 = vmax.f32 %v414_v31, 0.0  ;;  %v530_v34 = vmax.f32 %v444_v32, 0.0 }
  0x96   : > { %560 = vst [vmem:[%s915_s28] sm:$0xff] %v518_v33 }
  0x97   : > { %572 = vst [vmem:[%s915_s28 + $0x60] sm:$0xff] %v530_v34 }
  0x98   : > { %v473_v35 = vpop.f32.mrf.mxu2  ;;  %v503_v45 = vpop.f32.mrf.mxu3 }
  0x99   : > { %v474_v36 = vadd.f32 %v907_v28, %v473_v35  ;;  %v415_v37 = vpop.f32.mrf.mxu0  ;;  %v445_v38 = vpop.f32.mrf.mxu1  ;;  %v504_v54 = vadd.f32 %v907_v28, %v503_v45 }
  0x9a   : > { %v416_v39 = vadd.f32 %v907_v28, %v415_v37  ;;  %v446_v40 = vadd.f32 %v907_v28, %v445_v38 }
  0x9b   : > { %v542_v41 = vmax.f32 %v474_v36, 0.0  ;;  %v554_v55 = vmax.f32 %v504_v54, 0.0 }
  0x9c   : > { %v519_v42 = vmax.f32 %v416_v39, 0.0  ;;  %v531_v43 = vmax.f32 %v446_v40, 0.0 }
  0x9d   : > { %584 = vst [vmem:[%s915_s28 + $0xc0] sm:$0xff] %v542_v41 }
  0x9e   : > { %561 = vst [vmem:[%s915_s28 + $0x8] sm:$0xff] %v519_v42 }
  0x9f   : > { %573 = vst [vmem:[%s915_s28 + $0x68] sm:$0xff] %v531_v43 }
  0xa0   : > { %v475_v44 = vpop.f32.mrf.mxu2  ;;  %v505_v57 = vpop.f32.mrf.mxu3  ;;  %596 = vst [vmem:[%s915_s28 + $0x120] sm:$0xff] %v554_v55 }
  0xa1   : > { %v476_v46 = vadd.f32 %v907_v28, %v475_v44  ;;  %v418_v47 = vpop.f32.mrf.mxu0  ;;  %v448_v48 = vpop.f32.mrf.mxu1  ;;  %v506_v61 = vadd.f32 %v907_v28, %v505_v57 }
  0xa2   : > { %v419_v49 = vadd.f32 %v907_v28, %v418_v47  ;;  %v449_v50 = vadd.f32 %v907_v28, %v448_v48 }
  0xa3   : > { %v543_v51 = vmax.f32 %v476_v46, 0.0  ;;  %v555_v3 = vmax.f32 %v506_v61, 0.0 }
  0xa4   : > { %v520_v52 = vmax.f32 %v419_v49, 0.0  ;;  %v532_v53 = vmax.f32 %v449_v50, 0.0 }
  0xa5   : > { %585 = vst [vmem:[%s915_s28 + $0xc8] sm:$0xff] %v543_v51 }
  0xa6   : > { %562 = vst [vmem:[%s915_s28 + $0x10] sm:$0xff] %v520_v52 }
  0xa7   : > { %574 = vst [vmem:[%s915_s28 + $0x70] sm:$0xff] %v532_v53 }
  0xa8   : > { %v478_v56 = vpop.f32.mrf.mxu2  ;;  %597 = vst [vmem:[%s915_s28 + $0x128] sm:$0xff] %v555_v3  ;;  %v508_v5 = vpop.f32.mrf.mxu3 }
  0xa9   : > { %v479_v58 = vadd.f32 %v907_v28, %v478_v56  ;;  %v420_v59 = vpop.f32.mrf.mxu0  ;;  %v450_v60 = vpop.f32.mrf.mxu1  ;;  %v509_v14 = vadd.f32 %v907_v28, %v508_v5 }
  0xaa   : > { %v421_v62 = vadd.f32 %v907_v28, %v420_v59  ;;  %v451_v63 = vadd.f32 %v907_v28, %v450_v60 }
  0xab   : > { %v544_v0 = vmax.f32 %v479_v58, 0.0  ;;  %v556_v15 = vmax.f32 %v509_v14, 0.0 }
  0xac   : > { %v521_v1 = vmax.f32 %v421_v62, 0.0  ;;  %v533_v2 = vmax.f32 %v451_v63, 0.0 }
  0xad   : > { %586 = vst [vmem:[%s915_s28 + $0xd0] sm:$0xff] %v544_v0 }
  0xae   : > { %563 = vst [vmem:[%s915_s28 + $0x18] sm:$0xff] %v521_v1 }
  0xaf   : > { %575 = vst [vmem:[%s915_s28 + $0x78] sm:$0xff] %v533_v2 }
  0xb0   : > { %v480_v4 = vpop.f32.mrf.mxu2  ;;  %v510_v17 = vpop.f32.mrf.mxu3  ;;  %598 = vst [vmem:[%s915_s28 + $0x130] sm:$0xff] %v556_v15 }
  0xb1   : > { %v481_v6 = vadd.f32 %v907_v28, %v480_v4  ;;  %v423_v7 = vpop.f32.mrf.mxu0  ;;  %v453_v8 = vpop.f32.mrf.mxu1  ;;  %v511_v21 = vadd.f32 %v907_v28, %v510_v17 }
  0xb2   : > { %v424_v9 = vadd.f32 %v907_v28, %v423_v7  ;;  %v454_v10 = vadd.f32 %v907_v28, %v453_v8 }
  0xb3   : > { %v545_v11 = vmax.f32 %v481_v6, 0.0  ;;  %v557_v27 = vmax.f32 %v511_v21, 0.0 }
  0xb4   : > { %v522_v12 = vmax.f32 %v424_v9, 0.0  ;;  %v534_v13 = vmax.f32 %v454_v10, 0.0 }
  0xb5   : > { %587 = vst [vmem:[%s915_s28 + $0xd8] sm:$0xff] %v545_v11 }
  0xb6   : > { %564 = vst [vmem:[%s915_s28 + $0x20] sm:$0xff] %v522_v12 }
  0xb7   : > { %576 = vst [vmem:[%s915_s28 + $0x80] sm:$0xff] %v534_v13 }
  0xb8   : > { %v483_v16 = vpop.f32.mrf.mxu2  ;;  %599 = vst [vmem:[%s915_s28 + $0x138] sm:$0xff] %v557_v27  ;;  %v513_v30 = vpop.f32.mrf.mxu3 }
  0xb9   : > { %v484_v18 = vadd.f32 %v907_v28, %v483_v16  ;;  %v425_v19 = vpop.f32.mrf.mxu0  ;;  %v455_v20 = vpop.f32.mrf.mxu1  ;;  %v514_v39 = vadd.f32 %v907_v28, %v513_v30 }
  0xba   : > { %v426_v22 = vadd.f32 %v907_v28, %v425_v19  ;;  %v456_v23 = vadd.f32 %v907_v28, %v455_v20 }
  0xbb   : > { %v546_v24 = vmax.f32 %v484_v18, 0.0  ;;  %v558_v40 = vmax.f32 %v514_v39, 0.0 }
  0xbc   : > { %v523_v25 = vmax.f32 %v426_v22, 0.0  ;;  %v535_v26 = vmax.f32 %v456_v23, 0.0 }
  0xbd   : > { %588 = vst [vmem:[%s915_s28 + $0xe0] sm:$0xff] %v546_v24 }
  0xbe   : > { %565 = vst [vmem:[%s915_s28 + $0x28] sm:$0xff] %v523_v25 }
  0xbf   : > { %577 = vst [vmem:[%s915_s28 + $0x88] sm:$0xff] %v535_v26 }
  0xc0   : > { %v485_v29 = vpop.f32.mrf.mxu2  ;;  %v515_v42 = vpop.f32.mrf.mxu3  ;;  %600 = vst [vmem:[%s915_s28 + $0x140] sm:$0xff] %v558_v40 }
  0xc1   : > { %v486_v31 = vadd.f32 %v907_v28, %v485_v29  ;;  %v428_v32 = vpop.f32.mrf.mxu0  ;;  %v458_v33 = vpop.f32.mrf.mxu1  ;;  %v516_v46 = vadd.f32 %v907_v28, %v515_v42 }
  0xc2   : > { %v429_v34 = vadd.f32 %v907_v28, %v428_v32  ;;  %v459_v35 = vadd.f32 %v907_v28, %v458_v33 }
  0xc3   : > { %v547_v36 = vmax.f32 %v486_v31, 0.0  ;;  %v559_v52 = vmax.f32 %v516_v46, 0.0 }
  0xc4   : > { %v524_v37 = vmax.f32 %v429_v34, 0.0  ;;  %v536_v38 = vmax.f32 %v459_v35, 0.0 }
  0xc5   : > { %589 = vst [vmem:[%s915_s28 + $0xe8] sm:$0xff] %v547_v36 }
  0xc6   : > { %566 = vst [vmem:[%s915_s28 + $0x30] sm:$0xff] %v524_v37 }
  0xc7   : > { %578 = vst [vmem:[%s915_s28 + $0x90] sm:$0xff] %v536_v38 }
  0xc8   : > { %v488_v41 = vpop.f32.mrf.mxu2  ;;  %601 = vst [vmem:[%s915_s28 + $0x148] sm:$0xff] %v559_v52 }
  0xc9   : > { %v489_v43 = vadd.f32 %v907_v28, %v488_v41  ;;  %v430_v44 = vpop.f32.mrf.mxu0  ;;  %v460_v45 = vpop.f32.mrf.mxu1 }
  0xca   : > { %v431_v47 = vadd.f32 %v907_v28, %v430_v44  ;;  %v461_v48 = vadd.f32 %v907_v28, %v460_v45 }
  0xcb   : > { %v548_v49 = vmax.f32 %v489_v43, 0.0 }
  0xcc   : > { %v525_v50 = vmax.f32 %v431_v47, 0.0  ;;  %v537_v51 = vmax.f32 %v461_v48, 0.0 }
  0xcd   : > { %590 = vst [vmem:[%s915_s28 + $0xf0] sm:$0xff] %v548_v49 }
  0xce   : > { %567 = vst [vmem:[%s915_s28 + $0x38] sm:$0xff] %v525_v50 }
  0xcf   : > { %579 = vst [vmem:[%s915_s28 + $0x98] sm:$0xff] %v537_v51 }
  0xd0   : > { %v490_v53 = vpop.f32.mrf.mxu2 }
  0xd1   : > { %v491_v54 = vadd.f32 %v907_v28, %v490_v53  ;;  %v433_v55 = vpop.f32.mrf.mxu0  ;;  %v463_v56 = vpop.f32.mrf.mxu1 }
  0xd2   : > { %v434_v57 = vadd.f32 %v907_v28, %v433_v55  ;;  %v464_v58 = vadd.f32 %v907_v28, %v463_v56 }
  0xd3   : > { %v549_v59 = vmax.f32 %v491_v54, 0.0 }
  0xd4   : > { %v526_v60 = vmax.f32 %v434_v57, 0.0  ;;  %v538_v61 = vmax.f32 %v464_v58, 0.0 }
  0xd5   : > { %591 = vst [vmem:[%s915_s28 + $0xf8] sm:$0xff] %v549_v59 }
  0xd6   : > { %568 = vst [vmem:[%s915_s28 + $0x40] sm:$0xff] %v526_v60 }
  0xd7   : > { %580 = vst [vmem:[%s915_s28 + $0xa0] sm:$0xff] %v538_v61 }
  0xd8   : > { %v493_v62 = vpop.f32.mrf.mxu2 }
  0xd9   : > { %v494_v63 = vadd.f32 %v907_v28, %v493_v62  ;;  %v435_v0 = vpop.f32.mrf.mxu0  ;;  %v465_v1 = vpop.f32.mrf.mxu1 }
  0xda   : > { %v436_v2 = vadd.f32 %v907_v28, %v435_v0  ;;  %v466_v3 = vadd.f32 %v907_v28, %v465_v1 }
  0xdb   : > { %v550_v4 = vmax.f32 %v494_v63, 0.0 }
  0xdc   : > { %v527_v5 = vmax.f32 %v436_v2, 0.0  ;;  %v539_v6 = vmax.f32 %v466_v3, 0.0 }
  0xdd   : > { %592 = vst [vmem:[%s915_s28 + $0x100] sm:$0xff] %v550_v4 }
  0xde   : > { %569 = vst [vmem:[%s915_s28 + $0x48] sm:$0xff] %v527_v5 }
  0xdf   : > { %581 = vst [vmem:[%s915_s28 + $0xa8] sm:$0xff] %v539_v6 }
  0xe0   : > { %v495_v7 = vpop.f32.mrf.mxu2 }
  0xe1   : > { %v496_v8 = vadd.f32 %v907_v28, %v495_v7  ;;  %v438_v9 = vpop.f32.mrf.mxu0  ;;  %v468_v10 = vpop.f32.mrf.mxu1 }
  0xe2   : > { %v439_v11 = vadd.f32 %v907_v28, %v438_v9  ;;  %v469_v12 = vadd.f32 %v907_v28, %v468_v10 }
  0xe3   : > { %v551_v13 = vmax.f32 %v496_v8, 0.0 }
  0xe4   : > { %v528_v14 = vmax.f32 %v439_v11, 0.0  ;;  %v540_v15 = vmax.f32 %v469_v12, 0.0 }
  0xe5   : > { %593 = vst [vmem:[%s915_s28 + $0x108] sm:$0xff] %v551_v13 }
  0xe6   : > { %570 = vst [vmem:[%s915_s28 + $0x50] sm:$0xff] %v528_v14 }
  0xe7   : > { %582 = vst [vmem:[%s915_s28 + $0xb0] sm:$0xff] %v540_v15 }
  0xe8   : > { %v498_v16 = vpop.f32.mrf.mxu2 }
  0xe9   : > { %v499_v17 = vadd.f32 %v907_v28, %v498_v16  ;;  %v440_v18 = vpop.f32.mrf.mxu0  ;;  %v470_v19 = vpop.f32.mrf.mxu1 }
  0xea   : > { %v441_v20 = vadd.f32 %v907_v28, %v440_v18  ;;  %v471_v21 = vadd.f32 %v907_v28, %v470_v19 }
  0xeb   : > { %v552_v22 = vmax.f32 %v499_v17, 0.0 }
  0xec   : > { %v529_v23 = vmax.f32 %v441_v20, 0.0  ;;  %v541_v24 = vmax.f32 %v471_v21, 0.0 }
  0xed   : > { %594 = vst [vmem:[%s915_s28 + $0x110] sm:$0xff] %v552_v22 }
  0xee   : > { %571 = vst [vmem:[%s915_s28 + $0x58] sm:$0xff] %v529_v23 }
  0xef   : > { %583 = vst [vmem:[%s915_s28 + $0xb8] sm:$0xff] %v541_v24 }
  0xf0   : > { %v500_v25 = vpop.f32.mrf.mxu2 }
  0xf1   : > { %v501_v26 = vadd.f32 %v907_v28, %v500_v25 }
  0xf3   : > { %v553_v27 = vmax.f32 %v501_v26, 0.0 }
  0xf5   : > { %595 = vst [vmem:[%s915_s28 + $0x118] sm:$0xff] %v553_v27 }
  0xf6 PF: > { %s13_s12 = sadd.s32 1, %s817_s12  }
  0xf7   : > { %p10_p4 = scmp.ge.s32.totalorder %s13_s12, 4  }
  0xf9   :  { %12 = sbr.rel (!%p10_p4) target bundleno = 1 (0x1), region = 62 }

// kernel: deformed_conv_model_forward.9
= control target key start
LH: loop header
LB: loop body
LE: loop exit
PB: predicated region body
PF: predicated region fallthrough
CT: control target
= control target key end

     0   :  { %vm365_vm0 = vcmask 261120   ;;  %s1272_s1 = inlined_call_operand.vmem [shape: bf16[288,128], index: 1, kind: input, shape index: {}]   ;;  %s1273_s0 = inlined_call_operand.vmem [shape: bf16[162,288], index: 0, kind: input, shape index: {}]   ;;  %s1274_s2 = inlined_call_operand.vmem [shape: f32[1,128], index: 2, kind: input, shape index: {}]   ;;  %s1275_s3 = inlined_call_operand.vmem [shape: f32[162,128], index: 3, kind: output, shape index: {}]  }
   0x1   :  { %v853_v0 = vld [vmem:[%s1272_s1 + $0x38] sm:$0xff]  ;;  %v909_v1 = vld [vmem:[%s1272_s1 + $0x88] sm:$0xff]  ;;  %v852_v3 = vld [vmem:[%s1272_s1 + $0x30] sm:$0xff] }
   0x2   :  { %v861_v2 = vld [vmem:[%s1272_s1 + $0x78] sm:$0xff]  ;;  %399 = vmatpush.bf16.msra.mxu0 %v853_v0  ;;  %864 = vmatpush.bf16.msra.mxu3 %v853_v0  ;;  %v920_v4 = vld [vmem:[%s1272_s1 + $0x80] sm:$0xff]  ;;  %v860_v5 = vld [vmem:[%s1272_s1 + $0x70] sm:$0xff] }
   0x3   :  { %531 = vmatpush.bf16.msra.mxu2 %v909_v1  ;;  %462 = vmatpush.bf16.msra.mxu1 %v861_v2  ;;  %v623_v6 = vld [vmem:[%s1273_s0 + $0x8] sm:$0xf]  ;;  %v818_v7 = vld [vmem:[%s1273_s0 + $0x10] sm:$0xf0]  ;;  %v850_v11 = vld [vmem:[%s1272_s1 + $0x20] sm:$0xff] }
   0x4   :  { %v624_v8 = vor.u32 %v818_v7, %v623_v6  ;;  %v851_v9 = vld [vmem:[%s1272_s1 + $0x28] sm:$0xff]  ;;  %v858_v12 = vld [vmem:[%s1272_s1 + $0x60] sm:$0xff]  ;;  %v849_v13 = vld [vmem:[%s1272_s1 + $0x18] sm:$0xff] }
   0x5   :  { %v859_v10 = vld [vmem:[%s1272_s1 + $0x68] sm:$0xff]  ;;  %v857_v14 = vld [vmem:[%s1272_s1 + $0x58] sm:$0xff]  ;;  %v848_v15 = vld [vmem:[%s1272_s1 + $0x10] sm:$0xff] }
   0x6   :  { %400 = vmatpush.bf16.msra.mxu0 %v852_v3  ;;  %865 = vmatpush.bf16.msra.mxu3 %v852_v3  ;;  %v856_v16 = vld [vmem:[%s1272_s1 + $0x50] sm:$0xff]  ;;  %v635_v17 = vld [vmem:[%s1273_s0 + $0x20] sm:$0xf]  ;;  %v821_v18 = vld [vmem:[%s1273_s0 + $0x28] sm:$0xf0] }
   0x7   :  { %532 = vmatpush.bf16.msra.mxu2 %v920_v4  ;;  %463 = vmatpush.bf16.msra.mxu1 %v860_v5  ;;  %v636_v19 = vor.u32 %v821_v18, %v635_v17  ;;  %v847_v20 = vld [vmem:[%s1272_s1 + $0x8] sm:$0xff]  ;;  %v846_v22 = vld [vmem:[%s1272_s1] sm:$0xff]  ;;  %v617_v29 = vld [vmem:[%s1273_s0 + $0xc] sm:$0xf0] }
   0x8   :  { %v855_v21 = vld [vmem:[%s1272_s1 + $0x48] sm:$0xff]  ;;  %v854_v23 = vld [vmem:[%s1272_s1 + $0x40] sm:$0xff]  ;;  %v647_v33 = vld [vmem:[%s1273_s0 + $0x38] sm:$0xf] }
   0x9   :  { %v615_v24 = vld [vmem:[%s1273_s0] sm:$0xf]  ;;  %v817_v25 = vld [vmem:[%s1273_s0 + $0x8] sm:$0xf0]  ;;  %v816_v28 = vld [vmem:[%s1273_s0 + $0x4] sm:$0xf] }
   0xa   :  { %805 = vmatmul.msk.bf16.vlgmr.msra.gmra.mxu2 %vm365_vm0, %v624_v8  ;;  %401 = vmatpush.bf16.msra.mxu0 %v851_v9  ;;  %v711_v26 = vld [vmem:[%s1273_s0 + $0xc0] sm:$0xf]  ;;  %v841_v27 = vld [vmem:[%s1273_s0 + $0xc8] sm:$0xf0]  ;;  %v616_v30 = vor.u32 %v817_v25, %v615_v24  ;;  %v620_v32 = vor.u32 %v816_v28, %v617_v29  ;;  %v824_v34 = vld [vmem:[%s1273_s0 + $0x40] sm:$0xf0] }
   0xb   :  { %866 = vmatpush.bf16.msra.mxu3 %v851_v9  ;;  %464 = vmatpush.bf16.msra.mxu1 %v859_v10  ;;  %v712_v31 = vor.u32 %v841_v27, %v711_v26  ;;  %v648_v35 = vor.u32 %v824_v34, %v647_v33  ;;  %v627_v36 = vld [vmem:[%s1273_s0 + $0x18] sm:$0xf]  ;;  %v820_v37 = vld [vmem:[%s1273_s0 + $0x20] sm:$0xf0]  ;;  %v819_v40 = vld [vmem:[%s1273_s0 + $0x1c] sm:$0xf] }
   0xc   :  { %v723_v38 = vld [vmem:[%s1273_s0 + $0xd8] sm:$0xf]  ;;  %v844_v39 = vld [vmem:[%s1273_s0 + $0xe0] sm:$0xf0]  ;;  %v629_v41 = vld [vmem:[%s1273_s0 + $0x24] sm:$0xf0]  ;;  %v628_v42 = vor.u32 %v820_v37, %v627_v36 }
   0xd   :  { %v724_v43 = vor.u32 %v844_v39, %v723_v38  ;;  %v632_v44 = vor.u32 %v819_v40, %v629_v41  ;;  %v659_v45 = vld [vmem:[%s1273_s0 + $0x50] sm:$0xf]  ;;  %v827_v46 = vld [vmem:[%s1273_s0 + $0x58] sm:$0xf0]  ;;  %v822_v52 = vld [vmem:[%s1273_s0 + $0x34] sm:$0xf] }
   0xe   :  { %402 = vmatpush.bf16.msra.mxu0 %v850_v11  ;;  %v660_v47 = vor.u32 %v827_v46, %v659_v45  ;;  %v55_v48 = vld [vmem:[%s1273_s0 + $0xf0] sm:$0x11]  ;;  %v823_v50 = vld [vmem:[%s1273_s0 + $0x38] sm:$0xf0]  ;;  %v641_v53 = vld [vmem:[%s1273_s0 + $0x3c] sm:$0xf0] }
   0xf   :  { %867 = vmatpush.bf16.msra.mxu3 %v850_v11  ;;  %465 = vmatpush.bf16.msra.mxu1 %v858_v12  ;;  %v639_v49 = vld [vmem:[%s1273_s0 + $0x30] sm:$0xf]  ;;  %v199_v51 = vunpack.c.l.b16 %v55_v48  ;;  %v644_v56 = vor.u32 %v822_v52, %v641_v53  ;;  %v671_v57 = vld [vmem:[%s1273_s0 + $0x68] sm:$0xf]  ;;  %v830_v58 = vld [vmem:[%s1273_s0 + $0x70] sm:$0xf0] }
  0x10   :  { %v640_v54 = vor.u32 %v823_v50, %v639_v49  ;;  %v672_v59 = vor.u32 %v830_v58, %v671_v57  ;;  %v651_v60 = vld [vmem:[%s1273_s0 + $0x48] sm:$0xf]  ;;  %v826_v61 = vld [vmem:[%s1273_s0 + $0x50] sm:$0xf0]  ;;  %v840_v62 = vld [vmem:[%s1273_s0 + $0xc4] sm:$0xf] }
  0x11   :  { %v232_v55 = vpack.c.b16 %v199_v51, %v199_v51  ;;  %v713_v63 = vld [vmem:[%s1273_s0 + $0xcc] sm:$0xf0]  ;;  %v825_v0 = vld [vmem:[%s1273_s0 + $0x4c] sm:$0xf]  ;;  %v663_v8 = vld [vmem:[%s1273_s0 + $0x60] sm:$0xf] }
  0x12   :  { %403 = vmatpush.bf16.msra.mxu0 %v849_v13  ;;  %v716_v3 = vor.u32 %v840_v62, %v713_v63  ;;  %v833_v6 = vld [vmem:[%s1273_s0 + $0x88] sm:$0xf0]  ;;  %v725_v11 = vld [vmem:[%s1273_s0 + $0xe4] sm:$0xf0]  ;;  %v695_v17 = vld [vmem:[%s1273_s0 + $0x98] sm:$0xf] }
  0x13   :  { %868 = vmatpush.bf16.msra.mxu3 %v849_v13  ;;  %466 = vmatpush.bf16.msra.mxu1 %v857_v14  ;;  %v829_v9 = vld [vmem:[%s1273_s0 + $0x68] sm:$0xf0]  ;;  %v665_v13 = vld [vmem:[%s1273_s0 + $0x6c] sm:$0xf0]  ;;  %v836_v18 = vld [vmem:[%s1273_s0 + $0xa0] sm:$0xf0] }
  0x14   :  { %v677_v24 = vld [vmem:[%s1273_s0 + $0x84] sm:$0xf0]  ;;  %v707_v28 = vld [vmem:[%s1273_s0 + $0xb0] sm:$0xf]  ;;  %v839_v29 = vld [vmem:[%s1273_s0 + $0xb8] sm:$0xf0] }
  0x15   :  { %v835_v33 = vld [vmem:[%s1273_s0 + $0x98] sm:$0xf0]  ;;  %v689_v36 = vld [vmem:[%s1273_s0 + $0x9c] sm:$0xf0]  ;;  %v719_v40 = vld [vmem:[%s1273_s0 + $0xc8] sm:$0xf] }
  0x16   :  { %404 = vmatpush.bf16.msra.mxu0 %v848_v15  ;;  %v842_v41 = vld [vmem:[%s1273_s0 + $0xd0] sm:$0xf0]  ;;  %v837_v45 = vld [vmem:[%s1273_s0 + $0xac] sm:$0xf]  ;;  %v701_v46 = vld [vmem:[%s1273_s0 + $0xb4] sm:$0xf0] }
  0x17   :  { %869 = vmatpush.bf16.msra.mxu3 %v848_v15  ;;  %467 = vmatpush.bf16.msra.mxu1 %v856_v16  ;;  %v704_v49 = vor.u32 %v837_v45, %v701_v46  ;;  %v731_v50 = vld [vmem:[%s1273_s0 + $0xe0] sm:$0xf]  ;;  %v845_v51 = vld [vmem:[%s1273_s0 + $0xe8] sm:$0xf0] }
  0x18   :  { %v732_v53 = vor.u32 %v845_v51, %v731_v50 }
  0x1a   :  { %806 = vmatmul.msk.bf16.gmra.mxu2 %vm365_vm0, %v636_v19  ;;  %405 = vmatpush.bf16.msra.mxu0 %v847_v20  ;;  %v696_v19 = vor.u32 %v836_v18, %v695_v17 }
  0x1b   :  { %870 = vmatpush.bf16.msra.mxu3 %v847_v20  ;;  %468 = vmatpush.bf16.msra.mxu1 %v855_v21  ;;  %v675_v20 = vld [vmem:[%s1273_s0 + $0x78] sm:$0xf] }
  0x1e   :  { %406 = vmatpush.bf16.msra.mxu0 %v846_v22 }
  0x1f   :  { %871 = vmatpush.bf16.msra.mxu3 %v846_v22  ;;  %469 = vmatpush.bf16.msra.mxu1 %v854_v23  ;;  %v200_v22 = vunpack.c.h.b16 %v55_v48 }
  0x21   :  { %407 = vmatmul.bf16.vlgmr.msra.gmra.mxu0 %v616_v30  ;;  %v233_v26 = vpack.c.b16 %v200_v22, %v200_v22  ;;  %v708_v30 = vor.u32 %v839_v29, %v707_v28 }
  0x22   :  { %447 = vmatmul.bf16.vlgmr.msra.gmra.mxu3 %v712_v31  ;;  %470 = vmatmul.bf16.vlgmr.msra.gmra.mxu1 %v620_v32  ;;  %v56_v31 = vld [vmem:[%s1273_s0 + $0xf8] sm:$0x1]  ;;  %v687_v32 = vld [vmem:[%s1273_s0 + $0x90] sm:$0xf] }
  0x23   :  { %872 = vmatpush.bf16.msrb.mxu3 %v861_v2  ;;  %v652_v2 = vor.u32 %v826_v61, %v651_v60  ;;  %v201_v34 = vunpack.c.l.b16 %v56_v31  ;;  %v688_v37 = vor.u32 %v835_v33, %v687_v32 }
  0x25   :  { %v234_v38 = vpack.c.b16 %v201_v34, %v201_v34 }
  0x27   :  { %873 = vmatpush.bf16.msrb.mxu3 %v860_v5  ;;  %v683_v5 = vld [vmem:[%s1273_s0 + $0x80] sm:$0xf] }
  0x28   :  { %v684_v7 = vor.u32 %v833_v6, %v683_v5 }
  0x2a   :  { %807 = vmatmul.msk.bf16.gmra.mxu2 %vm365_vm0, %v648_v35  ;;  %v834_v35 = vld [vmem:[%s1273_s0 + $0x94] sm:$0xf] }
  0x2b   :  { %874 = vmatpush.bf16.msrb.mxu3 %v859_v10  ;;  %v843_v10 = vld [vmem:[%s1273_s0 + $0xdc] sm:$0xf]  ;;  %v692_v39 = vor.u32 %v834_v35, %v689_v36 }
  0x2c   :  { %v728_v15 = vor.u32 %v843_v10, %v725_v11 }
  0x2f   :  { %875 = vmatpush.bf16.msrb.mxu3 %v858_v12  ;;  %v828_v12 = vld [vmem:[%s1273_s0 + $0x64] sm:$0xf] }
  0x31   :  { %412 = vmatmul.bf16.gmra.mxu0 %v628_v42  ;;  %v720_v42 = vor.u32 %v842_v41, %v719_v40 }
  0x32   :  { %452 = vmatmul.bf16.gmra.mxu3 %v724_v43  ;;  %475 = vmatmul.bf16.gmra.mxu1 %v632_v44  ;;  %v699_v43 = vld [vmem:[%s1273_s0 + $0xa8] sm:$0xf]  ;;  %v838_v44 = vld [vmem:[%s1273_s0 + $0xb0] sm:$0xf0] }
  0x33   :  { %876 = vmatpush.bf16.msrb.mxu3 %v857_v14  ;;  %v664_v14 = vor.u32 %v829_v9, %v663_v8  ;;  %v700_v48 = vor.u32 %v838_v44, %v699_v43 }
  0x37   :  { %877 = vmatpush.bf16.msrb.mxu3 %v856_v16  ;;  %v668_v16 = vor.u32 %v828_v12, %v665_v13 }
  0x3a   :  { %808 = vmatmul.msk.bf16.gmra.mxu2 %vm365_vm0, %v660_v47 }
  0x3b   :  { %878 = vmatpush.bf16.msrb.mxu3 %v855_v21  ;;  %v832_v21 = vld [vmem:[%s1273_s0 + $0x80] sm:$0xf0] }
  0x3c   :  { %v676_v25 = vor.u32 %v832_v21, %v675_v20 }
  0x3f   :  { %879 = vmatpush.bf16.msrb.mxu3 %v854_v23  ;;  %v831_v23 = vld [vmem:[%s1273_s0 + $0x7c] sm:$0xf] }
  0x40   :  { %v680_v27 = vor.u32 %v831_v23, %v677_v24 }
  0x41   :  { %417 = vmatmul.bf16.gmra.mxu0 %v640_v54  ;;  %v1165_v54 = vld [vmem:[%s1274_s2] ss:$0 sm:$0xff] }
  0x42   :  { %457 = vmatmul.bf16.gmra.mxu3 %v232_v55  ;;  %480 = vmatmul.bf16.gmra.mxu1 %v644_v56 }
  0x43   :  { %880 = vmatpush.bf16.msra.mxu3 %v909_v1  ;;  %v653_v1 = vld [vmem:[%s1273_s0 + $0x54] sm:$0xf0] }
  0x47   :  { %881 = vmatpush.bf16.msra.mxu3 %v920_v4  ;;  %v656_v4 = vor.u32 %v825_v0, %v653_v1 }
  0x4a   :  { %809 = vmatmul.msk.bf16.gmra.mxu2 %vm365_vm0, %v672_v59 }
  0x51   :  { %422 = vmatmul.bf16.gmra.mxu0 %v652_v2 }
  0x52   :  { %510 = vmatmul.bf16.vlgmr.msrb.gmra.mxu3 %v716_v3  ;;  %485 = vmatmul.bf16.gmra.mxu1 %v656_v4 }
  0x5a   :  { %810 = vmatmul.msk.bf16.gmra.mxu2 %vm365_vm0, %v684_v7 }
  0x61   :  { %427 = vmatmul.bf16.gmra.mxu0 %v664_v14 }
  0x62   :  { %515 = vmatmul.bf16.gmra.mxu3 %v728_v15  ;;  %490 = vmatmul.bf16.gmra.mxu1 %v668_v16 }
  0x6a   :  { %811 = vmatmul.msk.bf16.gmra.mxu2 %vm365_vm0, %v696_v19 }
  0x71   :  { %432 = vmatmul.bf16.gmra.mxu0 %v676_v25 }
  0x72   :  { %520 = vmatmul.bf16.gmra.mxu3 %v233_v26  ;;  %495 = vmatmul.bf16.gmra.mxu1 %v680_v27 }
  0x7a   :  { %812 = vmatmul.msk.bf16.gmra.mxu2 %vm365_vm0, %v708_v30 }
  0x81   :  { %437 = vmatmul.bf16.gmra.mxu0 %v688_v37 }
  0x82   :  { %815 = vmatmul.msk.bf16.vlgmr.msra.gmra.mxu3 %vm365_vm0, %v234_v38  ;;  %500 = vmatmul.bf16.gmra.mxu1 %v692_v39 }
  0x8a   :  { %813 = vmatmul.msk.bf16.gmra.mxu2 %vm365_vm0, %v720_v42 }
  0x8d   :  { %v534_v47 = vpop.f32.mrf.mxu2 }
  0x91   :  { %442 = vmatmul.bf16.gmra.mxu0 %v700_v48 }
  0x92   :  { %505 = vmatmul.bf16.gmra.mxu1 %v704_v49 }
  0x95   :  { %v536_v52 = vpop.f32.mrf.mxu2 }
  0x9a   :  { %814 = vmatmul.msk.bf16.gmra.mxu2 %vm365_vm0, %v732_v53 }
  0x9d   :  { %v539_v55 = vpop.f32.mrf.mxu2 }
  0x9e   :  { %v408_v56 = vpop.f32.mrf.mxu0 }
  0x9f   :  { %v409_v57 = vadd.f32 %v1165_v54, %v408_v56  ;;  %v471_v58 = vpop.f32.mrf.mxu1 }
  0xa1   :  { %v472_v59 = vadd.f32 %v471_v58, %v409_v57 }
  0xa3   :  { %v535_v60 = vadd.f32 %v534_v47, %v472_v59 }
  0xa5   :  { %588 = vst [vmem:[%s1275_s3] sm:$0xff] %v535_v60  ;;  %v1171_v61 = vpop.f32.mrf.mxu3  ;;  %v541_v62 = vpop.f32.mrf.mxu2 }
  0xa6   :  { %v410_v63 = vpop.f32.mrf.mxu0 }
  0xa7   :  { %v411_v0 = vadd.f32 %v1165_v54, %v410_v63  ;;  %v473_v1 = vpop.f32.mrf.mxu1 }
  0xa9   :  { %v474_v2 = vadd.f32 %v473_v1, %v411_v0 }
  0xab   :  { %v537_v3 = vadd.f32 %v536_v52, %v474_v2 }
  0xad   :  { %589 = vst [vmem:[%s1275_s3 + $0x8] sm:$0xff] %v537_v3  ;;  %v1177_v4 = vpop.f32.mrf.mxu3  ;;  %v544_v5 = vpop.f32.mrf.mxu2 }
  0xae   :  { %v413_v6 = vpop.f32.mrf.mxu0 }
  0xaf   :  { %v414_v7 = vadd.f32 %v1165_v54, %v413_v6  ;;  %v476_v8 = vpop.f32.mrf.mxu1 }
  0xb1   :  { %v477_v9 = vadd.f32 %v476_v8, %v414_v7 }
  0xb3   :  { %v540_v10 = vadd.f32 %v539_v55, %v477_v9 }
  0xb5   :  { %590 = vst [vmem:[%s1275_s3 + $0x10] sm:$0xff] %v540_v10  ;;  %v1183_v11 = vpop.f32.mrf.mxu3  ;;  %v546_v12 = vpop.f32.mrf.mxu2 }
  0xb6   :  { %v415_v13 = vpop.f32.mrf.mxu0 }
  0xb7   :  { %v416_v14 = vadd.f32 %v1165_v54, %v415_v13  ;;  %v478_v15 = vpop.f32.mrf.mxu1 }
  0xb9   :  { %v479_v16 = vadd.f32 %v478_v15, %v416_v14 }
  0xbb   :  { %v542_v17 = vadd.f32 %v541_v62, %v479_v16 }
  0xbd   :  { %591 = vst [vmem:[%s1275_s3 + $0x18] sm:$0xff] %v542_v17  ;;  %v1189_v18 = vpop.f32.mrf.mxu3  ;;  %v549_v19 = vpop.f32.mrf.mxu2 }
  0xbe   :  { %v418_v20 = vpop.f32.mrf.mxu0 }
  0xbf   :  { %v419_v21 = vadd.f32 %v1165_v54, %v418_v20  ;;  %v481_v22 = vpop.f32.mrf.mxu1 }
  0xc1   :  { %v482_v23 = vadd.f32 %v481_v22, %v419_v21 }
  0xc3   :  { %v545_v24 = vadd.f32 %v544_v5, %v482_v23 }
  0xc5   :  { %592 = vst [vmem:[%s1275_s3 + $0x20] sm:$0xff] %v545_v24  ;;  %v458_v25 = vpop.f32.mrf.mxu3  ;;  %v551_v26 = vpop.f32.mrf.mxu2 }
  0xc6   :  { %v420_v27 = vpop.f32.mrf.mxu0  ;;  %v459_v21 = vadd.f32 %v1165_v54, %v458_v25  ;;  %v449_v25 = vadd.f32 %v1165_v54, %v1171_v61  ;;  %v451_v61 = vadd.f32 %v1165_v54, %v1177_v4  ;;  %v454_v4 = vadd.f32 %v1165_v54, %v1183_v11 }
  0xc7   :  { %v421_v28 = vadd.f32 %v1165_v54, %v420_v27  ;;  %v483_v29 = vpop.f32.mrf.mxu1 }
  0xc9   :  { %v484_v30 = vadd.f32 %v483_v29, %v421_v28 }
  0xcb   :  { %v547_v31 = vadd.f32 %v546_v12, %v484_v30 }
  0xcd   :  { %593 = vst [vmem:[%s1275_s3 + $0x28] sm:$0xff] %v547_v31  ;;  %v460_v32 = vpop.f32.mrf.mxu3  ;;  %v554_v33 = vpop.f32.mrf.mxu2 }
  0xce   :  { %v423_v34 = vpop.f32.mrf.mxu0 }
  0xcf   :  { %v424_v35 = vadd.f32 %v1165_v54, %v423_v34  ;;  %v486_v36 = vpop.f32.mrf.mxu1 }
  0xd1   :  { %v487_v37 = vadd.f32 %v486_v36, %v424_v35 }
  0xd3   :  { %v550_v38 = vadd.f32 %v549_v19, %v487_v37 }
  0xd5   :  { %594 = vst [vmem:[%s1275_s3 + $0x30] sm:$0xff] %v550_v38  ;;  %v511_v39 = vpop.f32.mrf.mxu3  ;;  %v556_v40 = vpop.f32.mrf.mxu2 }
  0xd6   :  { %v425_v41 = vpop.f32.mrf.mxu0 }
  0xd7   :  { %v426_v42 = vadd.f32 %v1165_v54, %v425_v41  ;;  %v488_v43 = vpop.f32.mrf.mxu1 }
  0xd9   :  { %v489_v44 = vadd.f32 %v488_v43, %v426_v42 }
  0xdb   :  { %v552_v45 = vadd.f32 %v551_v26, %v489_v44 }
  0xdd   :  { %595 = vst [vmem:[%s1275_s3 + $0x38] sm:$0xff] %v552_v45  ;;  %v1207_v46 = vpop.f32.mrf.mxu3  ;;  %v559_v47 = vpop.f32.mrf.mxu2 }
  0xde   :  { %v428_v48 = vpop.f32.mrf.mxu0  ;;  %v514_v42 = vadd.f32 %v1207_v46, %v451_v61 }
  0xdf   :  { %v429_v49 = vadd.f32 %v1165_v54, %v428_v48  ;;  %v491_v50 = vpop.f32.mrf.mxu1 }
  0xe1   :  { %v492_v51 = vadd.f32 %v491_v50, %v429_v49 }
  0xe3   :  { %v555_v52 = vadd.f32 %v554_v33, %v492_v51  ;;  %v512_v33 = vadd.f32 %v511_v39, %v449_v25 }
  0xe5   :  { %596 = vst [vmem:[%s1275_s3 + $0x40] sm:$0xff] %v555_v52  ;;  %v1213_v53 = vpop.f32.mrf.mxu3  ;;  %v561_v55 = vpop.f32.mrf.mxu2 }
  0xe6   :  { %v430_v56 = vpop.f32.mrf.mxu0  ;;  %v517_v46 = vadd.f32 %v1213_v53, %v454_v4 }
  0xe7   :  { %v431_v57 = vadd.f32 %v1165_v54, %v430_v56  ;;  %v493_v58 = vpop.f32.mrf.mxu1 }
  0xe9   :  { %v494_v59 = vadd.f32 %v493_v58, %v431_v57 }
  0xeb   :  { %v557_v60 = vadd.f32 %v556_v40, %v494_v59 }
  0xed   :  { %597 = vst [vmem:[%s1275_s3 + $0x48] sm:$0xff] %v557_v60  ;;  %v1219_v62 = vpop.f32.mrf.mxu3  ;;  %v564_v63 = vpop.f32.mrf.mxu2 }
  0xee   :  { %v433_v0 = vpop.f32.mrf.mxu0 }
  0xef   :  { %v434_v1 = vadd.f32 %v1165_v54, %v433_v0  ;;  %v496_v2 = vpop.f32.mrf.mxu1 }
  0xf1   :  { %v497_v3 = vadd.f32 %v496_v2, %v434_v1 }
  0xf3   :  { %v560_v5 = vadd.f32 %v559_v47, %v497_v3 }
  0xf5   :  { %598 = vst [vmem:[%s1275_s3 + $0x50] sm:$0xff] %v560_v5  ;;  %v521_v6 = vpop.f32.mrf.mxu3  ;;  %v566_v7 = vpop.f32.mrf.mxu2 }
  0xf6   :  { %v435_v8 = vpop.f32.mrf.mxu0  ;;  %v522_v23 = vadd.f32 %v521_v6, %v459_v21 }
  0xf7   :  { %v436_v9 = vadd.f32 %v1165_v54, %v435_v8  ;;  %v498_v10 = vpop.f32.mrf.mxu1 }
  0xf9   :  { %v499_v12 = vadd.f32 %v498_v10, %v436_v9 }
  0xfb   :  { %v562_v13 = vadd.f32 %v561_v55, %v499_v12  ;;  %v456_v55 = vadd.f32 %v1165_v54, %v1189_v18 }
  0xfd   :  { %599 = vst [vmem:[%s1275_s3 + $0x58] sm:$0xff] %v562_v13  ;;  %v523_v14 = vpop.f32.mrf.mxu3  ;;  %v569_v15 = vpop.f32.mrf.mxu2  ;;  %v519_v56 = vadd.f32 %v1219_v62, %v456_v55 }
  0xfe   :  { %v438_v16 = vpop.f32.mrf.mxu0 }
  0xff   :  { %v439_v17 = vadd.f32 %v1165_v54, %v438_v16  ;;  %v501_v19 = vpop.f32.mrf.mxu1 }
 0x101   :  { %v502_v20 = vadd.f32 %v501_v19, %v439_v17 }
 0x103   :  { %v565_v22 = vadd.f32 %v564_v63, %v502_v20 }
 0x105   :  { %600 = vst [vmem:[%s1275_s3 + $0x60] sm:$0xff] %v565_v22  ;;  %v571_v24 = vpop.f32.mrf.mxu2  ;;  %v584_v26 = vpop.f32.mrf.mxu3 }
 0x106   :  { %v585_v27 = vadd.f32 %v584_v26, %v522_v23  ;;  %v440_v28 = vpop.f32.mrf.mxu0 }
 0x107   :  { %v441_v29 = vadd.f32 %v1165_v54, %v440_v28  ;;  %v503_v30 = vpop.f32.mrf.mxu1 }
 0x108   :  { %608 = vst [vmem:[%s1275_s3 + $0xa0] sm:$0x3] %v585_v27 }
 0x109   :  { %v504_v31 = vadd.f32 %v503_v30, %v441_v29 }
 0x10b   :  { %v567_v32 = vadd.f32 %v566_v7, %v504_v31 }
 0x10d   :  { %601 = vst [vmem:[%s1275_s3 + $0x68] sm:$0xff] %v567_v32  ;;  %v574_v34 = vpop.f32.mrf.mxu2  ;;  %v586_v35 = vpop.f32.mrf.mxu3 }
 0x10e   :  { %v575_v36 = vadd.f32 %v574_v34, %v512_v33  ;;  %v443_v37 = vpop.f32.mrf.mxu0 }
 0x10f   :  { %v444_v38 = vadd.f32 %v1165_v54, %v443_v37  ;;  %v506_v40 = vpop.f32.mrf.mxu1 }
 0x110   :  { %604 = vst [vmem:[%s1275_s3 + $0x80] sm:$0xff] %v575_v36 }
 0x111   :  { %v507_v41 = vadd.f32 %v506_v40, %v444_v38 }
 0x113   :  { %v570_v39 = vadd.f32 %v569_v15, %v507_v41 }
 0x115   :  { %602 = vst [vmem:[%s1275_s3 + $0x70] sm:$0xff] %v570_v39  ;;  %v576_v43 = vpop.f32.mrf.mxu2 }
 0x116   :  { %v577_v44 = vadd.f32 %v576_v43, %v514_v42  ;;  %v445_v45 = vpop.f32.mrf.mxu0 }
 0x117   :  { %v446_v47 = vadd.f32 %v1165_v54, %v445_v45  ;;  %v508_v48 = vpop.f32.mrf.mxu1 }
 0x118   :  { %605 = vst [vmem:[%s1275_s3 + $0x88] sm:$0xff] %v577_v44 }
 0x119   :  { %v509_v49 = vadd.f32 %v508_v48, %v446_v47 }
 0x11b   :  { %v572_v50 = vadd.f32 %v571_v24, %v509_v49 }
 0x11d   :  { %603 = vst [vmem:[%s1275_s3 + $0x78] sm:$0xff] %v572_v50  ;;  %v579_v51 = vpop.f32.mrf.mxu2 }
 0x11e   :  { %v580_v52 = vadd.f32 %v579_v51, %v517_v46 }
 0x120   :  { %606 = vst [vmem:[%s1275_s3 + $0x90] sm:$0xff] %v580_v52 }
 0x125   :  { %v581_v57 = vpop.f32.mrf.mxu2 }
 0x126   :  { %v582_v11 = vadd.f32 %v581_v57, %v519_v56 }
 0x128   :  { %607 = vst [vmem:[%s1275_s3 + $0x98] sm:$0xff] %v582_v11 }

// kernel: deformed_conv_model_forward.10
= control target key start
LH: loop header
LB: loop body
LE: loop exit
PB: predicated region body
PF: predicated region fallthrough
CT: control target
= control target key end

     0   :  { %vm365_vm0 = vcmask 261120   ;;  %s1299_s1 = inlined_call_operand.vmem [shape: bf16[288,128], index: 1, kind: input, shape index: {}]   ;;  %s1300_s0 = inlined_call_operand.vmem [shape: bf16[162,288], index: 0, kind: input, shape index: {}]   ;;  %s1301_s2 = inlined_call_operand.vmem [shape: f32[1,128], index: 2, kind: input, shape index: {}]   ;;  %s1302_s3 = inlined_call_operand.vmem [shape: f32[162,128], index: 3, kind: output, shape index: {}]  }
   0x1   :  { %v874_v0 = vld [vmem:[%s1299_s1 + $0x38] sm:$0xff]  ;;  %v930_v1 = vld [vmem:[%s1299_s1 + $0x88] sm:$0xff]  ;;  %v873_v3 = vld [vmem:[%s1299_s1 + $0x30] sm:$0xff] }
   0x2   :  { %v882_v2 = vld [vmem:[%s1299_s1 + $0x78] sm:$0xff]  ;;  %399 = vmatpush.bf16.msra.mxu0 %v874_v0  ;;  %885 = vmatpush.bf16.msra.mxu3 %v874_v0  ;;  %v941_v4 = vld [vmem:[%s1299_s1 + $0x80] sm:$0xff]  ;;  %v881_v5 = vld [vmem:[%s1299_s1 + $0x70] sm:$0xff] }
   0x3   :  { %531 = vmatpush.bf16.msra.mxu2 %v930_v1  ;;  %462 = vmatpush.bf16.msra.mxu1 %v882_v2  ;;  %v644_v6 = vld [vmem:[%s1300_s0 + $0x8] sm:$0xf]  ;;  %v839_v7 = vld [vmem:[%s1300_s0 + $0x10] sm:$0xf0]  ;;  %v871_v11 = vld [vmem:[%s1299_s1 + $0x20] sm:$0xff] }
   0x4   :  { %v645_v8 = vor.u32 %v839_v7, %v644_v6  ;;  %v872_v9 = vld [vmem:[%s1299_s1 + $0x28] sm:$0xff]  ;;  %v879_v12 = vld [vmem:[%s1299_s1 + $0x60] sm:$0xff]  ;;  %v870_v13 = vld [vmem:[%s1299_s1 + $0x18] sm:$0xff] }
   0x5   :  { %v880_v10 = vld [vmem:[%s1299_s1 + $0x68] sm:$0xff]  ;;  %v878_v14 = vld [vmem:[%s1299_s1 + $0x58] sm:$0xff]  ;;  %v869_v15 = vld [vmem:[%s1299_s1 + $0x10] sm:$0xff] }
   0x6   :  { %400 = vmatpush.bf16.msra.mxu0 %v873_v3  ;;  %886 = vmatpush.bf16.msra.mxu3 %v873_v3  ;;  %v877_v16 = vld [vmem:[%s1299_s1 + $0x50] sm:$0xff]  ;;  %v656_v17 = vld [vmem:[%s1300_s0 + $0x20] sm:$0xf]  ;;  %v842_v18 = vld [vmem:[%s1300_s0 + $0x28] sm:$0xf0] }
   0x7   :  { %532 = vmatpush.bf16.msra.mxu2 %v941_v4  ;;  %463 = vmatpush.bf16.msra.mxu1 %v881_v5  ;;  %v657_v19 = vor.u32 %v842_v18, %v656_v17  ;;  %v868_v20 = vld [vmem:[%s1299_s1 + $0x8] sm:$0xff]  ;;  %v867_v22 = vld [vmem:[%s1299_s1] sm:$0xff]  ;;  %v638_v29 = vld [vmem:[%s1300_s0 + $0xc] sm:$0xf0] }
   0x8   :  { %v876_v21 = vld [vmem:[%s1299_s1 + $0x48] sm:$0xff]  ;;  %v875_v23 = vld [vmem:[%s1299_s1 + $0x40] sm:$0xff]  ;;  %v668_v33 = vld [vmem:[%s1300_s0 + $0x38] sm:$0xf] }
   0x9   :  { %v636_v24 = vld [vmem:[%s1300_s0] sm:$0xf]  ;;  %v838_v25 = vld [vmem:[%s1300_s0 + $0x8] sm:$0xf0]  ;;  %v837_v28 = vld [vmem:[%s1300_s0 + $0x4] sm:$0xf] }
   0xa   :  { %826 = vmatmul.msk.bf16.vlgmr.msra.gmra.mxu2 %vm365_vm0, %v645_v8  ;;  %401 = vmatpush.bf16.msra.mxu0 %v872_v9  ;;  %v732_v26 = vld [vmem:[%s1300_s0 + $0xc0] sm:$0xf]  ;;  %v862_v27 = vld [vmem:[%s1300_s0 + $0xc8] sm:$0xf0]  ;;  %v637_v30 = vor.u32 %v838_v25, %v636_v24  ;;  %v641_v32 = vor.u32 %v837_v28, %v638_v29  ;;  %v845_v34 = vld [vmem:[%s1300_s0 + $0x40] sm:$0xf0] }
   0xb   :  { %887 = vmatpush.bf16.msra.mxu3 %v872_v9  ;;  %464 = vmatpush.bf16.msra.mxu1 %v880_v10  ;;  %v733_v31 = vor.u32 %v862_v27, %v732_v26  ;;  %v669_v35 = vor.u32 %v845_v34, %v668_v33  ;;  %v648_v36 = vld [vmem:[%s1300_s0 + $0x18] sm:$0xf]  ;;  %v841_v37 = vld [vmem:[%s1300_s0 + $0x20] sm:$0xf0]  ;;  %v840_v40 = vld [vmem:[%s1300_s0 + $0x1c] sm:$0xf] }
   0xc   :  { %v744_v38 = vld [vmem:[%s1300_s0 + $0xd8] sm:$0xf]  ;;  %v865_v39 = vld [vmem:[%s1300_s0 + $0xe0] sm:$0xf0]  ;;  %v650_v41 = vld [vmem:[%s1300_s0 + $0x24] sm:$0xf0]  ;;  %v649_v42 = vor.u32 %v841_v37, %v648_v36 }
   0xd   :  { %v745_v43 = vor.u32 %v865_v39, %v744_v38  ;;  %v653_v44 = vor.u32 %v840_v40, %v650_v41  ;;  %v680_v45 = vld [vmem:[%s1300_s0 + $0x50] sm:$0xf]  ;;  %v848_v46 = vld [vmem:[%s1300_s0 + $0x58] sm:$0xf0]  ;;  %v843_v52 = vld [vmem:[%s1300_s0 + $0x34] sm:$0xf] }
   0xe   :  { %402 = vmatpush.bf16.msra.mxu0 %v871_v11  ;;  %v681_v47 = vor.u32 %v848_v46, %v680_v45  ;;  %v55_v48 = vld [vmem:[%s1300_s0 + $0xf0] sm:$0x11]  ;;  %v844_v50 = vld [vmem:[%s1300_s0 + $0x38] sm:$0xf0]  ;;  %v662_v53 = vld [vmem:[%s1300_s0 + $0x3c] sm:$0xf0] }
   0xf   :  { %888 = vmatpush.bf16.msra.mxu3 %v871_v11  ;;  %465 = vmatpush.bf16.msra.mxu1 %v879_v12  ;;  %v660_v49 = vld [vmem:[%s1300_s0 + $0x30] sm:$0xf]  ;;  %v199_v51 = vunpack.c.l.b16 %v55_v48  ;;  %v665_v56 = vor.u32 %v843_v52, %v662_v53  ;;  %v692_v57 = vld [vmem:[%s1300_s0 + $0x68] sm:$0xf]  ;;  %v851_v58 = vld [vmem:[%s1300_s0 + $0x70] sm:$0xf0] }
  0x10   :  { %v661_v54 = vor.u32 %v844_v50, %v660_v49  ;;  %v693_v59 = vor.u32 %v851_v58, %v692_v57  ;;  %v672_v60 = vld [vmem:[%s1300_s0 + $0x48] sm:$0xf]  ;;  %v847_v61 = vld [vmem:[%s1300_s0 + $0x50] sm:$0xf0]  ;;  %v861_v62 = vld [vmem:[%s1300_s0 + $0xc4] sm:$0xf] }
  0x11   :  { %v232_v55 = vpack.c.b16 %v199_v51, %v199_v51  ;;  %v734_v63 = vld [vmem:[%s1300_s0 + $0xcc] sm:$0xf0]  ;;  %v846_v0 = vld [vmem:[%s1300_s0 + $0x4c] sm:$0xf]  ;;  %v684_v8 = vld [vmem:[%s1300_s0 + $0x60] sm:$0xf] }
  0x12   :  { %403 = vmatpush.bf16.msra.mxu0 %v870_v13  ;;  %v737_v3 = vor.u32 %v861_v62, %v734_v63  ;;  %v854_v6 = vld [vmem:[%s1300_s0 + $0x88] sm:$0xf0]  ;;  %v746_v11 = vld [vmem:[%s1300_s0 + $0xe4] sm:$0xf0]  ;;  %v716_v17 = vld [vmem:[%s1300_s0 + $0x98] sm:$0xf] }
  0x13   :  { %889 = vmatpush.bf16.msra.mxu3 %v870_v13  ;;  %466 = vmatpush.bf16.msra.mxu1 %v878_v14  ;;  %v850_v9 = vld [vmem:[%s1300_s0 + $0x68] sm:$0xf0]  ;;  %v686_v13 = vld [vmem:[%s1300_s0 + $0x6c] sm:$0xf0]  ;;  %v857_v18 = vld [vmem:[%s1300_s0 + $0xa0] sm:$0xf0] }
  0x14   :  { %v698_v24 = vld [vmem:[%s1300_s0 + $0x84] sm:$0xf0]  ;;  %v728_v28 = vld [vmem:[%s1300_s0 + $0xb0] sm:$0xf]  ;;  %v860_v29 = vld [vmem:[%s1300_s0 + $0xb8] sm:$0xf0] }
  0x15   :  { %v856_v33 = vld [vmem:[%s1300_s0 + $0x98] sm:$0xf0]  ;;  %v710_v36 = vld [vmem:[%s1300_s0 + $0x9c] sm:$0xf0]  ;;  %v740_v40 = vld [vmem:[%s1300_s0 + $0xc8] sm:$0xf] }
  0x16   :  { %404 = vmatpush.bf16.msra.mxu0 %v869_v15  ;;  %v863_v41 = vld [vmem:[%s1300_s0 + $0xd0] sm:$0xf0]  ;;  %v858_v45 = vld [vmem:[%s1300_s0 + $0xac] sm:$0xf]  ;;  %v722_v46 = vld [vmem:[%s1300_s0 + $0xb4] sm:$0xf0] }
  0x17   :  { %890 = vmatpush.bf16.msra.mxu3 %v869_v15  ;;  %467 = vmatpush.bf16.msra.mxu1 %v877_v16  ;;  %v725_v49 = vor.u32 %v858_v45, %v722_v46  ;;  %v752_v50 = vld [vmem:[%s1300_s0 + $0xe0] sm:$0xf]  ;;  %v866_v51 = vld [vmem:[%s1300_s0 + $0xe8] sm:$0xf0] }
  0x18   :  { %v753_v53 = vor.u32 %v866_v51, %v752_v50 }
  0x1a   :  { %827 = vmatmul.msk.bf16.gmra.mxu2 %vm365_vm0, %v657_v19  ;;  %405 = vmatpush.bf16.msra.mxu0 %v868_v20  ;;  %v717_v19 = vor.u32 %v857_v18, %v716_v17 }
  0x1b   :  { %891 = vmatpush.bf16.msra.mxu3 %v868_v20  ;;  %468 = vmatpush.bf16.msra.mxu1 %v876_v21  ;;  %v696_v20 = vld [vmem:[%s1300_s0 + $0x78] sm:$0xf] }
  0x1e   :  { %406 = vmatpush.bf16.msra.mxu0 %v867_v22 }
  0x1f   :  { %892 = vmatpush.bf16.msra.mxu3 %v867_v22  ;;  %469 = vmatpush.bf16.msra.mxu1 %v875_v23  ;;  %v200_v22 = vunpack.c.h.b16 %v55_v48 }
  0x21   :  { %407 = vmatmul.bf16.vlgmr.msra.gmra.mxu0 %v637_v30  ;;  %v233_v26 = vpack.c.b16 %v200_v22, %v200_v22  ;;  %v729_v30 = vor.u32 %v860_v29, %v728_v28 }
  0x22   :  { %447 = vmatmul.bf16.vlgmr.msra.gmra.mxu3 %v733_v31  ;;  %470 = vmatmul.bf16.vlgmr.msra.gmra.mxu1 %v641_v32  ;;  %v56_v31 = vld [vmem:[%s1300_s0 + $0xf8] sm:$0x1]  ;;  %v708_v32 = vld [vmem:[%s1300_s0 + $0x90] sm:$0xf] }
  0x23   :  { %893 = vmatpush.bf16.msrb.mxu3 %v882_v2  ;;  %v673_v2 = vor.u32 %v847_v61, %v672_v60  ;;  %v201_v34 = vunpack.c.l.b16 %v56_v31  ;;  %v709_v37 = vor.u32 %v856_v33, %v708_v32 }
  0x25   :  { %v234_v38 = vpack.c.b16 %v201_v34, %v201_v34 }
  0x27   :  { %894 = vmatpush.bf16.msrb.mxu3 %v881_v5  ;;  %v704_v5 = vld [vmem:[%s1300_s0 + $0x80] sm:$0xf] }
  0x28   :  { %v705_v7 = vor.u32 %v854_v6, %v704_v5 }
  0x2a   :  { %828 = vmatmul.msk.bf16.gmra.mxu2 %vm365_vm0, %v669_v35  ;;  %v855_v35 = vld [vmem:[%s1300_s0 + $0x94] sm:$0xf] }
  0x2b   :  { %895 = vmatpush.bf16.msrb.mxu3 %v880_v10  ;;  %v864_v10 = vld [vmem:[%s1300_s0 + $0xdc] sm:$0xf]  ;;  %v713_v39 = vor.u32 %v855_v35, %v710_v36 }
  0x2c   :  { %v749_v15 = vor.u32 %v864_v10, %v746_v11 }
  0x2f   :  { %896 = vmatpush.bf16.msrb.mxu3 %v879_v12  ;;  %v849_v12 = vld [vmem:[%s1300_s0 + $0x64] sm:$0xf] }
  0x31   :  { %412 = vmatmul.bf16.gmra.mxu0 %v649_v42  ;;  %v741_v42 = vor.u32 %v863_v41, %v740_v40 }
  0x32   :  { %452 = vmatmul.bf16.gmra.mxu3 %v745_v43  ;;  %475 = vmatmul.bf16.gmra.mxu1 %v653_v44  ;;  %v720_v43 = vld [vmem:[%s1300_s0 + $0xa8] sm:$0xf]  ;;  %v859_v44 = vld [vmem:[%s1300_s0 + $0xb0] sm:$0xf0] }
  0x33   :  { %897 = vmatpush.bf16.msrb.mxu3 %v878_v14  ;;  %v685_v14 = vor.u32 %v850_v9, %v684_v8  ;;  %v721_v48 = vor.u32 %v859_v44, %v720_v43 }
  0x37   :  { %898 = vmatpush.bf16.msrb.mxu3 %v877_v16  ;;  %v689_v16 = vor.u32 %v849_v12, %v686_v13 }
  0x3a   :  { %829 = vmatmul.msk.bf16.gmra.mxu2 %vm365_vm0, %v681_v47 }
  0x3b   :  { %899 = vmatpush.bf16.msrb.mxu3 %v876_v21  ;;  %v853_v21 = vld [vmem:[%s1300_s0 + $0x80] sm:$0xf0] }
  0x3c   :  { %v697_v25 = vor.u32 %v853_v21, %v696_v20 }
  0x3f   :  { %900 = vmatpush.bf16.msrb.mxu3 %v875_v23  ;;  %v852_v23 = vld [vmem:[%s1300_s0 + $0x7c] sm:$0xf] }
  0x40   :  { %v701_v27 = vor.u32 %v852_v23, %v698_v24 }
  0x41   :  { %417 = vmatmul.bf16.gmra.mxu0 %v661_v54  ;;  %v1186_v54 = vld [vmem:[%s1301_s2] ss:$0 sm:$0xff] }
  0x42   :  { %457 = vmatmul.bf16.gmra.mxu3 %v232_v55  ;;  %480 = vmatmul.bf16.gmra.mxu1 %v665_v56 }
  0x43   :  { %901 = vmatpush.bf16.msra.mxu3 %v930_v1  ;;  %v674_v1 = vld [vmem:[%s1300_s0 + $0x54] sm:$0xf0] }
  0x47   :  { %902 = vmatpush.bf16.msra.mxu3 %v941_v4  ;;  %v677_v4 = vor.u32 %v846_v0, %v674_v1 }
  0x4a   :  { %830 = vmatmul.msk.bf16.gmra.mxu2 %vm365_vm0, %v693_v59 }
  0x51   :  { %422 = vmatmul.bf16.gmra.mxu0 %v673_v2 }
  0x52   :  { %510 = vmatmul.bf16.vlgmr.msrb.gmra.mxu3 %v737_v3  ;;  %485 = vmatmul.bf16.gmra.mxu1 %v677_v4 }
  0x5a   :  { %831 = vmatmul.msk.bf16.gmra.mxu2 %vm365_vm0, %v705_v7 }
  0x61   :  { %427 = vmatmul.bf16.gmra.mxu0 %v685_v14 }
  0x62   :  { %515 = vmatmul.bf16.gmra.mxu3 %v749_v15  ;;  %490 = vmatmul.bf16.gmra.mxu1 %v689_v16 }
  0x6a   :  { %832 = vmatmul.msk.bf16.gmra.mxu2 %vm365_vm0, %v717_v19 }
  0x71   :  { %432 = vmatmul.bf16.gmra.mxu0 %v697_v25 }
  0x72   :  { %520 = vmatmul.bf16.gmra.mxu3 %v233_v26  ;;  %495 = vmatmul.bf16.gmra.mxu1 %v701_v27 }
  0x7a   :  { %833 = vmatmul.msk.bf16.gmra.mxu2 %vm365_vm0, %v729_v30 }
  0x81   :  { %437 = vmatmul.bf16.gmra.mxu0 %v709_v37 }
  0x82   :  { %836 = vmatmul.msk.bf16.vlgmr.msra.gmra.mxu3 %vm365_vm0, %v234_v38  ;;  %500 = vmatmul.bf16.gmra.mxu1 %v713_v39 }
  0x8a   :  { %834 = vmatmul.msk.bf16.gmra.mxu2 %vm365_vm0, %v741_v42 }
  0x8d   :  { %v534_v47 = vpop.f32.mrf.mxu2 }
  0x91   :  { %442 = vmatmul.bf16.gmra.mxu0 %v721_v48 }
  0x92   :  { %505 = vmatmul.bf16.gmra.mxu1 %v725_v49 }
  0x95   :  { %v536_v52 = vpop.f32.mrf.mxu2 }
  0x9a   :  { %835 = vmatmul.msk.bf16.gmra.mxu2 %vm365_vm0, %v753_v53 }
  0x9d   :  { %v539_v55 = vpop.f32.mrf.mxu2 }
  0x9e   :  { %v408_v56 = vpop.f32.mrf.mxu0 }
  0x9f   :  { %v409_v57 = vadd.f32 %v1186_v54, %v408_v56  ;;  %v471_v58 = vpop.f32.mrf.mxu1 }
  0xa1   :  { %v472_v59 = vadd.f32 %v471_v58, %v409_v57 }
  0xa3   :  { %v535_v60 = vadd.f32 %v534_v47, %v472_v59 }
  0xa5   :  { %v588_v61 = vmax.f32 %v535_v60, 0.0  ;;  %v1189_v62 = vpop.f32.mrf.mxu3  ;;  %v541_v63 = vpop.f32.mrf.mxu2 }
  0xa6   :  { %v410_v0 = vpop.f32.mrf.mxu0 }
  0xa7   :  { %609 = vst [vmem:[%s1302_s3] sm:$0xff] %v588_v61  ;;  %v411_v1 = vadd.f32 %v1186_v54, %v410_v0  ;;  %v473_v2 = vpop.f32.mrf.mxu1 }
  0xa9   :  { %v474_v3 = vadd.f32 %v473_v2, %v411_v1 }
  0xab   :  { %v537_v4 = vadd.f32 %v536_v52, %v474_v3 }
  0xad   :  { %v589_v5 = vmax.f32 %v537_v4, 0.0  ;;  %v1195_v6 = vpop.f32.mrf.mxu3  ;;  %v544_v7 = vpop.f32.mrf.mxu2 }
  0xae   :  { %v413_v8 = vpop.f32.mrf.mxu0 }
  0xaf   :  { %610 = vst [vmem:[%s1302_s3 + $0x8] sm:$0xff] %v589_v5  ;;  %v414_v9 = vadd.f32 %v1186_v54, %v413_v8  ;;  %v476_v10 = vpop.f32.mrf.mxu1 }
  0xb1   :  { %v477_v11 = vadd.f32 %v476_v10, %v414_v9 }
  0xb3   :  { %v540_v12 = vadd.f32 %v539_v55, %v477_v11 }
  0xb5   :  { %v590_v13 = vmax.f32 %v540_v12, 0.0  ;;  %v1201_v14 = vpop.f32.mrf.mxu3  ;;  %v546_v15 = vpop.f32.mrf.mxu2 }
  0xb6   :  { %v415_v16 = vpop.f32.mrf.mxu0 }
  0xb7   :  { %611 = vst [vmem:[%s1302_s3 + $0x10] sm:$0xff] %v590_v13  ;;  %v416_v17 = vadd.f32 %v1186_v54, %v415_v16  ;;  %v478_v18 = vpop.f32.mrf.mxu1 }
  0xb9   :  { %v479_v19 = vadd.f32 %v478_v18, %v416_v17 }
  0xbb   :  { %v542_v20 = vadd.f32 %v541_v63, %v479_v19 }
  0xbd   :  { %v591_v21 = vmax.f32 %v542_v20, 0.0  ;;  %v1207_v22 = vpop.f32.mrf.mxu3  ;;  %v549_v23 = vpop.f32.mrf.mxu2 }
  0xbe   :  { %v418_v24 = vpop.f32.mrf.mxu0 }
  0xbf   :  { %612 = vst [vmem:[%s1302_s3 + $0x18] sm:$0xff] %v591_v21  ;;  %v419_v25 = vadd.f32 %v1186_v54, %v418_v24  ;;  %v481_v26 = vpop.f32.mrf.mxu1 }
  0xc1   :  { %v482_v27 = vadd.f32 %v481_v26, %v419_v25 }
  0xc3   :  { %v545_v28 = vadd.f32 %v544_v7, %v482_v27 }
  0xc5   :  { %v592_v29 = vmax.f32 %v545_v28, 0.0  ;;  %v1213_v30 = vpop.f32.mrf.mxu3  ;;  %v551_v31 = vpop.f32.mrf.mxu2 }
  0xc6   :  { %v420_v32 = vpop.f32.mrf.mxu0 }
  0xc7   :  { %613 = vst [vmem:[%s1302_s3 + $0x20] sm:$0xff] %v592_v29  ;;  %v421_v33 = vadd.f32 %v1186_v54, %v420_v32  ;;  %v483_v34 = vpop.f32.mrf.mxu1 }
  0xc9   :  { %v484_v35 = vadd.f32 %v483_v34, %v421_v33  ;;  %v459_v34 = vadd.f32 %v1186_v54, %v1213_v30 }
  0xcb   :  { %v547_v36 = vadd.f32 %v546_v15, %v484_v35 }
  0xcd   :  { %v593_v37 = vmax.f32 %v547_v36, 0.0  ;;  %v460_v38 = vpop.f32.mrf.mxu3  ;;  %v554_v39 = vpop.f32.mrf.mxu2 }
  0xce   :  { %v423_v40 = vpop.f32.mrf.mxu0 }
  0xcf   :  { %614 = vst [vmem:[%s1302_s3 + $0x28] sm:$0xff] %v593_v37  ;;  %v424_v41 = vadd.f32 %v1186_v54, %v423_v40  ;;  %v486_v42 = vpop.f32.mrf.mxu1 }
  0xd1   :  { %v487_v43 = vadd.f32 %v486_v42, %v424_v41 }
  0xd3   :  { %v550_v44 = vadd.f32 %v549_v23, %v487_v43 }
  0xd5   :  { %v594_v45 = vmax.f32 %v550_v44, 0.0  ;;  %v1223_v46 = vpop.f32.mrf.mxu3  ;;  %v556_v47 = vpop.f32.mrf.mxu2 }
  0xd6   :  { %v425_v48 = vpop.f32.mrf.mxu0 }
  0xd7   :  { %615 = vst [vmem:[%s1302_s3 + $0x30] sm:$0xff] %v594_v45  ;;  %v426_v49 = vadd.f32 %v1186_v54, %v425_v48  ;;  %v488_v50 = vpop.f32.mrf.mxu1 }
  0xd9   :  { %v489_v51 = vadd.f32 %v488_v50, %v426_v49 }
  0xdb   :  { %v552_v52 = vadd.f32 %v551_v31, %v489_v51 }
  0xdd   :  { %v595_v53 = vmax.f32 %v552_v52, 0.0  ;;  %v1229_v55 = vpop.f32.mrf.mxu3  ;;  %v559_v56 = vpop.f32.mrf.mxu2 }
  0xde   :  { %v428_v57 = vpop.f32.mrf.mxu0 }
  0xdf   :  { %616 = vst [vmem:[%s1302_s3 + $0x38] sm:$0xff] %v595_v53  ;;  %v429_v58 = vadd.f32 %v1186_v54, %v428_v57  ;;  %v491_v59 = vpop.f32.mrf.mxu1 }
  0xe1   :  { %v492_v60 = vadd.f32 %v491_v59, %v429_v58  ;;  %v451_v59 = vadd.f32 %v1186_v54, %v1195_v6 }
  0xe3   :  { %v555_v61 = vadd.f32 %v554_v39, %v492_v60  ;;  %v514_v60 = vadd.f32 %v1229_v55, %v451_v59 }
  0xe5   :  { %v596_v63 = vmax.f32 %v555_v61, 0.0  ;;  %v1235_v0 = vpop.f32.mrf.mxu3  ;;  %v561_v1 = vpop.f32.mrf.mxu2 }
  0xe6   :  { %v430_v2 = vpop.f32.mrf.mxu0 }
  0xe7   :  { %617 = vst [vmem:[%s1302_s3 + $0x40] sm:$0xff] %v596_v63  ;;  %v431_v3 = vadd.f32 %v1186_v54, %v430_v2  ;;  %v493_v4 = vpop.f32.mrf.mxu1 }
  0xe9   :  { %v494_v5 = vadd.f32 %v493_v4, %v431_v3 }
  0xeb   :  { %v557_v7 = vadd.f32 %v556_v47, %v494_v5  ;;  %v449_v47 = vadd.f32 %v1186_v54, %v1189_v62 }
  0xed   :  { %v597_v8 = vmax.f32 %v557_v7, 0.0  ;;  %v1241_v9 = vpop.f32.mrf.mxu3  ;;  %v564_v10 = vpop.f32.mrf.mxu2  ;;  %v512_v48 = vadd.f32 %v1223_v46, %v449_v47  ;;  %v454_v7 = vadd.f32 %v1186_v54, %v1201_v14 }
  0xee   :  { %v433_v11 = vpop.f32.mrf.mxu0 }
  0xef   :  { %618 = vst [vmem:[%s1302_s3 + $0x48] sm:$0xff] %v597_v8  ;;  %v434_v12 = vadd.f32 %v1186_v54, %v433_v11  ;;  %v496_v13 = vpop.f32.mrf.mxu1  ;;  %v517_v8 = vadd.f32 %v1235_v0, %v454_v7 }
  0xf1   :  { %v497_v15 = vadd.f32 %v496_v13, %v434_v12 }
  0xf3   :  { %v560_v16 = vadd.f32 %v559_v56, %v497_v15  ;;  %v456_v15 = vadd.f32 %v1186_v54, %v1207_v22 }
  0xf5   :  { %v598_v17 = vmax.f32 %v560_v16, 0.0  ;;  %v521_v18 = vpop.f32.mrf.mxu3  ;;  %v566_v19 = vpop.f32.mrf.mxu2  ;;  %v519_v14 = vadd.f32 %v1241_v9, %v456_v15 }
  0xf6   :  { %v435_v20 = vpop.f32.mrf.mxu0  ;;  %v522_v36 = vadd.f32 %v521_v18, %v459_v34 }
  0xf7   :  { %619 = vst [vmem:[%s1302_s3 + $0x50] sm:$0xff] %v598_v17  ;;  %v436_v21 = vadd.f32 %v1186_v54, %v435_v20  ;;  %v498_v23 = vpop.f32.mrf.mxu1 }
  0xf9   :  { %v499_v24 = vadd.f32 %v498_v23, %v436_v21 }
  0xfb   :  { %v562_v25 = vadd.f32 %v561_v1, %v499_v24 }
  0xfd   :  { %v599_v26 = vmax.f32 %v562_v25, 0.0  ;;  %v523_v27 = vpop.f32.mrf.mxu3  ;;  %v569_v28 = vpop.f32.mrf.mxu2 }
  0xfe   :  { %v438_v29 = vpop.f32.mrf.mxu0 }
  0xff   :  { %620 = vst [vmem:[%s1302_s3 + $0x58] sm:$0xff] %v599_v26  ;;  %v439_v31 = vadd.f32 %v1186_v54, %v438_v29  ;;  %v501_v32 = vpop.f32.mrf.mxu1 }
 0x101   :  { %v502_v33 = vadd.f32 %v501_v32, %v439_v31 }
 0x103   :  { %v565_v35 = vadd.f32 %v564_v10, %v502_v33 }
 0x105   :  { %v600_v37 = vmax.f32 %v565_v35, 0.0  ;;  %v571_v38 = vpop.f32.mrf.mxu2  ;;  %v584_v39 = vpop.f32.mrf.mxu3 }
 0x106   :  { %v585_v40 = vadd.f32 %v584_v39, %v522_v36  ;;  %v440_v41 = vpop.f32.mrf.mxu0 }
 0x107   :  { %621 = vst [vmem:[%s1302_s3 + $0x60] sm:$0xff] %v600_v37  ;;  %v441_v42 = vadd.f32 %v1186_v54, %v440_v41  ;;  %v503_v43 = vpop.f32.mrf.mxu1 }
 0x108   :  { %v608_v44 = vmax.f32 %v585_v40, 0.0 }
 0x109   :  { %v504_v45 = vadd.f32 %v503_v43, %v441_v42 }
 0x10a   :  { %629 = vst [vmem:[%s1302_s3 + $0xa0] sm:$0x3] %v608_v44 }
 0x10b   :  { %v567_v30 = vadd.f32 %v566_v19, %v504_v45 }
 0x10d   :  { %v601_v49 = vmax.f32 %v567_v30, 0.0  ;;  %v574_v50 = vpop.f32.mrf.mxu2  ;;  %v586_v51 = vpop.f32.mrf.mxu3 }
 0x10e   :  { %v575_v52 = vadd.f32 %v574_v50, %v512_v48  ;;  %v443_v53 = vpop.f32.mrf.mxu0 }
 0x10f   :  { %622 = vst [vmem:[%s1302_s3 + $0x68] sm:$0xff] %v601_v49  ;;  %v444_v56 = vadd.f32 %v1186_v54, %v443_v53  ;;  %v506_v57 = vpop.f32.mrf.mxu1 }
 0x110   :  { %v604_v62 = vmax.f32 %v575_v52, 0.0 }
 0x111   :  { %v507_v58 = vadd.f32 %v506_v57, %v444_v56 }
 0x112   :  { %625 = vst [vmem:[%s1302_s3 + $0x80] sm:$0xff] %v604_v62 }
 0x113   :  { %v570_v46 = vadd.f32 %v569_v28, %v507_v58 }
 0x115   :  { %v602_v61 = vmax.f32 %v570_v46, 0.0  ;;  %v576_v63 = vpop.f32.mrf.mxu2 }
 0x116   :  { %v577_v1 = vadd.f32 %v576_v63, %v514_v60  ;;  %v445_v2 = vpop.f32.mrf.mxu0 }
 0x117   :  { %623 = vst [vmem:[%s1302_s3 + $0x70] sm:$0xff] %v602_v61  ;;  %v446_v3 = vadd.f32 %v1186_v54, %v445_v2  ;;  %v508_v4 = vpop.f32.mrf.mxu1 }
 0x118   :  { %v605_v5 = vmax.f32 %v577_v1, 0.0 }
 0x119   :  { %v509_v6 = vadd.f32 %v508_v4, %v446_v3 }
 0x11a   :  { %626 = vst [vmem:[%s1302_s3 + $0x88] sm:$0xff] %v605_v5 }
 0x11b   :  { %v572_v55 = vadd.f32 %v571_v38, %v509_v6 }
 0x11d   :  { %v603_v10 = vmax.f32 %v572_v55, 0.0  ;;  %v579_v11 = vpop.f32.mrf.mxu2 }
 0x11e   :  { %v580_v12 = vadd.f32 %v579_v11, %v517_v8 }
 0x11f   :  { %624 = vst [vmem:[%s1302_s3 + $0x78] sm:$0xff] %v603_v10 }
 0x120   :  { %v606_v13 = vmax.f32 %v580_v12, 0.0 }
 0x122   :  { %627 = vst [vmem:[%s1302_s3 + $0x90] sm:$0xff] %v606_v13 }
 0x125   :  { %v581_v16 = vpop.f32.mrf.mxu2 }
 0x126   :  { %v582_v17 = vadd.f32 %v581_v16, %v519_v14 }
 0x128   :  { %v607_v0 = vmax.f32 %v582_v17, 0.0 }
 0x12a   :  { %628 = vst [vmem:[%s1302_s3 + $0x98] sm:$0xff] %v607_v0 }

// kernel: deformed_conv_model_forward.11
= control target key start
LH: loop header
LB: loop body
LE: loop exit
PB: predicated region body
PF: predicated region fallthrough
CT: control target
= control target key end

     0   :  { %vm637_vm0 = vcmask 523264   ;;  %s2081_s1 = inlined_call_operand.vmem [shape: bf16[576,128], index: 1, kind: input, shape index: {}]   ;;  %s2082_s2 = inlined_call_operand.vmem [shape: f32[1,128], index: 2, kind: input, shape index: {}]   ;;  %s2083_s0 = inlined_call_operand.vmem [shape: bf16[162,576], index: 0, kind: input, shape index: {}]   ;;  %s2084_s3 = inlined_call_operand.vmem [shape: f32[162,128], index: 3, kind: output, shape index: {}]  }
   0x1   :  { %v1423_v0 = vld [vmem:[%s2081_s1 + $0x38] sm:$0xff]  ;;  %v1422_v1 = vld [vmem:[%s2081_s1 + $0x30] sm:$0xff]  ;;  %v1421_v2 = vld [vmem:[%s2081_s1 + $0x28] sm:$0xff] }
   0x2   :  { %671 = vmatpush.bf16.msra.mxu0 %v1423_v0  ;;  %1452 = vmatpush.bf16.msra.mxu1 %v1423_v0  ;;  %v1420_v3 = vld [vmem:[%s2081_s1 + $0x20] sm:$0xff]  ;;  %v1419_v4 = vld [vmem:[%s2081_s1 + $0x18] sm:$0xff]  ;;  %v1418_v5 = vld [vmem:[%s2081_s1 + $0x10] sm:$0xff] }
   0x3   :  { %1454 = vmatpush.bf16.msra.mxu3 %v1423_v0  ;;  %1453 = vmatpush.bf16.msra.mxu2 %v1423_v0  ;;  %v1417_v6 = vld [vmem:[%s2081_s1 + $0x8] sm:$0xff]  ;;  %v1416_v7 = vld [vmem:[%s2081_s1] sm:$0xff]  ;;  %v1368_v9 = vld [vmem:[%s2083_s0 + $0x10] sm:$0xf0] }
   0x4   :  { %v1013_v8 = vld [vmem:[%s2083_s0] sm:$0xf]  ;;  %v1073_v10 = vld [vmem:[%s2083_s0 + $0x78] sm:$0xf]  ;;  %v1383_v11 = vld [vmem:[%s2083_s0 + $0x88] sm:$0xf0] }
   0x5   :  { %v1173_v12 = vld [vmem:[%s2083_s0 + $0x140] sm:$0xf]  ;;  %v1408_v13 = vld [vmem:[%s2083_s0 + $0x150] sm:$0xf0]  ;;  %v1447_v14 = vld [vmem:[%s2081_s1 + $0xf8] sm:$0xff]  ;;  %v1014_v18 = vor.u32 %v1368_v9, %v1013_v8  ;;  %v1074_v19 = vor.u32 %v1383_v11, %v1073_v10 }
   0x6   :  { %672 = vmatpush.bf16.msra.mxu0 %v1422_v1  ;;  %1455 = vmatpush.bf16.msra.mxu1 %v1422_v1  ;;  %v1431_v15 = vld [vmem:[%s2081_s1 + $0x78] sm:$0xff]  ;;  %v1133_v16 = vld [vmem:[%s2083_s0 + $0xf0] sm:$0xf]  ;;  %v1398_v17 = vld [vmem:[%s2083_s0 + $0x100] sm:$0xf0]  ;;  %v1174_v20 = vor.u32 %v1408_v13, %v1173_v12 }
   0x7   :  { %1457 = vmatpush.bf16.msra.mxu3 %v1422_v1  ;;  %1456 = vmatpush.bf16.msra.mxu2 %v1422_v1  ;;  %v1451_v21 = vld [vmem:[%s2081_s1 + $0x118] sm:$0xff]  ;;  %v1134_v22 = vor.u32 %v1398_v17, %v1133_v16  ;;  %v1446_v23 = vld [vmem:[%s2081_s1 + $0xf0] sm:$0xff]  ;;  %v1445_v27 = vld [vmem:[%s2081_s1 + $0xe8] sm:$0xff] }
   0x8   :  { %v1439_v24 = vld [vmem:[%s2081_s1 + $0xb8] sm:$0xff]  ;;  %v1430_v25 = vld [vmem:[%s2081_s1 + $0x70] sm:$0xff]  ;;  %v1429_v29 = vld [vmem:[%s2081_s1 + $0x68] sm:$0xff] }
   0x9   :  { %v1450_v26 = vld [vmem:[%s2081_s1 + $0x110] sm:$0xff]  ;;  %v1449_v30 = vld [vmem:[%s2081_s1 + $0x108] sm:$0xff]  ;;  %v1444_v32 = vld [vmem:[%s2081_s1 + $0xe0] sm:$0xff] }
   0xa   :  { %673 = vmatpush.bf16.msra.mxu0 %v1421_v2  ;;  %1458 = vmatpush.bf16.msra.mxu1 %v1421_v2  ;;  %v1438_v28 = vld [vmem:[%s2081_s1 + $0xb0] sm:$0xff]  ;;  %v1437_v31 = vld [vmem:[%s2081_s1 + $0xa8] sm:$0xff]  ;;  %v1373_v34 = vld [vmem:[%s2083_s0 + $0x38] sm:$0xf0] }
   0xb   :  { %1460 = vmatpush.bf16.msra.mxu3 %v1421_v2  ;;  %1459 = vmatpush.bf16.msra.mxu2 %v1421_v2  ;;  %v1033_v33 = vld [vmem:[%s2083_s0 + $0x28] sm:$0xf]  ;;  %v1428_v35 = vld [vmem:[%s2081_s1 + $0x60] sm:$0xff]  ;;  %v1388_v37 = vld [vmem:[%s2083_s0 + $0xb0] sm:$0xf0] }
   0xc   :  { %v1093_v36 = vld [vmem:[%s2083_s0 + $0xa0] sm:$0xf]  ;;  %v1193_v39 = vld [vmem:[%s2083_s0 + $0x168] sm:$0xf]  ;;  %v1413_v40 = vld [vmem:[%s2083_s0 + $0x178] sm:$0xf0]  ;;  %v1034_v45 = vor.u32 %v1373_v34, %v1033_v33 }
   0xd   :  { %v1448_v38 = vld [vmem:[%s2081_s1 + $0x100] sm:$0xff]  ;;  %v1153_v42 = vld [vmem:[%s2083_s0 + $0x118] sm:$0xf]  ;;  %v1403_v43 = vld [vmem:[%s2083_s0 + $0x128] sm:$0xf0]  ;;  %v1094_v46 = vor.u32 %v1388_v37, %v1093_v36  ;;  %v1194_v47 = vor.u32 %v1413_v40, %v1193_v39 }
   0xe   :  { %674 = vmatpush.bf16.msra.mxu0 %v1420_v3  ;;  %1461 = vmatpush.bf16.msra.mxu1 %v1420_v3  ;;  %v1436_v41 = vld [vmem:[%s2081_s1 + $0xa0] sm:$0xff]  ;;  %v1443_v44 = vld [vmem:[%s2081_s1 + $0xd8] sm:$0xff]  ;;  %v1154_v49 = vor.u32 %v1403_v43, %v1153_v42  ;;  %v1442_v51 = vld [vmem:[%s2081_s1 + $0xd0] sm:$0xff] }
   0xf   :  { %1463 = vmatpush.bf16.msra.mxu3 %v1420_v3  ;;  %1462 = vmatpush.bf16.msra.mxu2 %v1420_v3  ;;  %v1427_v48 = vld [vmem:[%s2081_s1 + $0x58] sm:$0xff]  ;;  %v1426_v52 = vld [vmem:[%s2081_s1 + $0x50] sm:$0xff]  ;;  %v1441_v54 = vld [vmem:[%s2081_s1 + $0xc8] sm:$0xff] }
  0x10   :  { %v1435_v50 = vld [vmem:[%s2081_s1 + $0x98] sm:$0xff]  ;;  %v1434_v53 = vld [vmem:[%s2081_s1 + $0x90] sm:$0xff]  ;;  %v1425_v55 = vld [vmem:[%s2081_s1 + $0x48] sm:$0xff] }
  0x11   :  { %v1644_v56 = vld [vmem:[%s2083_s0 + $0x190] sm:$0x11]  ;;  %v1433_v57 = vld [vmem:[%s2081_s1 + $0x88] sm:$0xff]  ;;  %v1440_v58 = vld [vmem:[%s2081_s1 + $0xc0] sm:$0xff] }
  0x12   :  { %675 = vmatpush.bf16.msra.mxu0 %v1419_v4  ;;  %1464 = vmatpush.bf16.msra.mxu1 %v1419_v4  ;;  %v1053_v59 = vld [vmem:[%s2083_s0 + $0x50] sm:$0xf]  ;;  %v1378_v60 = vld [vmem:[%s2083_s0 + $0x60] sm:$0xf0]  ;;  %v1113_v61 = vld [vmem:[%s2083_s0 + $0xc8] sm:$0xf]  ;;  %v317_v63 = vunpack.c.l.b16 %v1644_v56 }
  0x13   :  { %1466 = vmatpush.bf16.msra.mxu3 %v1419_v4  ;;  %1465 = vmatpush.bf16.msra.mxu2 %v1419_v4  ;;  %v1393_v62 = vld [vmem:[%s2083_s0 + $0xd8] sm:$0xf0]  ;;  %v1424_v0 = vld [vmem:[%s2081_s1 + $0x40] sm:$0xff]  ;;  %v1021_v2 = vld [vmem:[%s2083_s0 + $0x8] sm:$0xf]  ;;  %v1054_v4 = vor.u32 %v1378_v60, %v1053_v59 }
  0x14   :  { %v1432_v1 = vld [vmem:[%s2081_s1 + $0x80] sm:$0xff]  ;;  %v1369_v3 = vld [vmem:[%s2083_s0 + $0x18] sm:$0xf0]  ;;  %v1015_v9 = vld [vmem:[%s2083_s0 + $0x14] sm:$0xf0] }
  0x15   :  { %v1366_v8 = vld [vmem:[%s2083_s0 + $0x4] sm:$0xf]  ;;  %v1029_v10 = vld [vmem:[%s2083_s0 + $0x10] sm:$0xf]  ;;  %v1367_v12 = vld [vmem:[%s2083_s0 + $0xc] sm:$0xf] }
  0x16   :  { %676 = vmatpush.bf16.msra.mxu0 %v1418_v5  ;;  %1467 = vmatpush.bf16.msra.mxu1 %v1418_v5  ;;  %v1370_v11 = vld [vmem:[%s2083_s0 + $0x20] sm:$0xf0]  ;;  %v1023_v13 = vld [vmem:[%s2083_s0 + $0x1c] sm:$0xf0]  ;;  %v1018_v16 = vor.u32 %v1366_v8, %v1015_v9  ;;  %v1055_v33 = vld [vmem:[%s2083_s0 + $0x64] sm:$0xf0] }
  0x17   :  { %1469 = vmatpush.bf16.msra.mxu3 %v1418_v5  ;;  %1468 = vmatpush.bf16.msra.mxu2 %v1418_v5  ;;  %v1114_v5 = vor.u32 %v1393_v62, %v1113_v61  ;;  %v1030_v17 = vor.u32 %v1370_v11, %v1029_v10  ;;  %v1069_v34 = vld [vmem:[%s2083_s0 + $0x60] sm:$0xf]  ;;  %v1377_v36 = vld [vmem:[%s2083_s0 + $0x5c] sm:$0xf]  ;;  %v1063_v37 = vld [vmem:[%s2083_s0 + $0x6c] sm:$0xf0] }
  0x18   :  { %v1384_v39 = vld [vmem:[%s2083_s0 + $0x90] sm:$0xf0]  ;;  %v1066_v42 = vor.u32 %v1377_v36, %v1063_v37  ;;  %v1109_v59 = vld [vmem:[%s2083_s0 + $0xb0] sm:$0xf]  ;;  %v1390_v60 = vld [vmem:[%s2083_s0 + $0xc0] sm:$0xf0] }
  0x19   :  { %v1387_v61 = vld [vmem:[%s2083_s0 + $0xac] sm:$0xf]  ;;  %v1103_v62 = vld [vmem:[%s2083_s0 + $0xbc] sm:$0xf0]  ;;  %v1392_v9 = vld [vmem:[%s2083_s0 + $0xd4] sm:$0xf] }
  0x1a   :  { %677 = vmatpush.bf16.msra.mxu0 %v1417_v6  ;;  %1470 = vmatpush.bf16.msra.mxu1 %v1417_v6  ;;  %v1395_v8 = vld [vmem:[%s2083_s0 + $0xe8] sm:$0xf0]  ;;  %v1123_v10 = vld [vmem:[%s2083_s0 + $0xe4] sm:$0xf0]  ;;  %v1141_v11 = vld [vmem:[%s2083_s0 + $0xf8] sm:$0xf] }
  0x1b   :  { %1472 = vmatpush.bf16.msra.mxu3 %v1417_v6  ;;  %1471 = vmatpush.bf16.msra.mxu2 %v1417_v6  ;;  %v372_v6 = vpack.c.b16 %v317_v63, %v317_v63  ;;  %v1121_v63 = vld [vmem:[%s2083_s0 + $0xd0] sm:$0xf] }
  0x1e   :  { %678 = vmatpush.bf16.msra.mxu0 %v1416_v7  ;;  %1473 = vmatpush.bf16.msra.mxu1 %v1416_v7 }
  0x1f   :  { %1475 = vmatpush.bf16.msra.mxu3 %v1416_v7  ;;  %1474 = vmatpush.bf16.msra.mxu2 %v1416_v7  ;;  %v1022_v7 = vor.u32 %v1369_v3, %v1021_v2  ;;  %v1110_v2 = vor.u32 %v1390_v60, %v1109_v59  ;;  %v1106_v3 = vor.u32 %v1387_v61, %v1103_v62  ;;  %v1181_v59 = vld [vmem:[%s2083_s0 + $0x148] sm:$0xf]  ;;  %v1409_v60 = vld [vmem:[%s2083_s0 + $0x158] sm:$0xf0] }
  0x21   :  { %679 = vmatmul.bf16.vlgmr.msra.gmra.mxu0 %v1014_v18  ;;  %694 = vmatmul.bf16.vlgmr.msra.gmra.mxu1 %v1074_v19  ;;  %v1026_v18 = vor.u32 %v1367_v12, %v1023_v13  ;;  %v1399_v12 = vld [vmem:[%s2083_s0 + $0x108] sm:$0xf0] }
  0x22   :  { %734 = vmatpush.bf16.msrb.mxu1 %v1431_v15  ;;  %719 = vmatmul.bf16.vlgmr.msra.gmra.mxu3 %v1174_v20  ;;  %v1374_v15 = vld [vmem:[%s2083_s0 + $0x40] sm:$0xf0]  ;;  %v1371_v20 = vld [vmem:[%s2083_s0 + $0x2c] sm:$0xf] }
  0x23   :  { %860 = vmatpush.bf16.msrb.mxu3 %v1447_v14  ;;  %927 = vmatpush.bf16.msrb.mxu0 %v1451_v21  ;;  %v1041_v14 = vld [vmem:[%s2083_s0 + $0x30] sm:$0xf]  ;;  %v1035_v21 = vld [vmem:[%s2083_s0 + $0x3c] sm:$0xf0] }
  0x24   :  { %709 = vmatmul.bf16.vlgmr.msra.gmra.mxu2 %v1134_v22  ;;  %v1042_v19 = vor.u32 %v1374_v15, %v1041_v14  ;;  %v1049_v22 = vld [vmem:[%s2083_s0 + $0x38] sm:$0xf] }
  0x25   :  { %797 = vmatpush.bf16.msrb.mxu2 %v1439_v24  ;;  %v1372_v24 = vld [vmem:[%s2083_s0 + $0x34] sm:$0xf] }
  0x26   :  { %735 = vmatpush.bf16.msrb.mxu1 %v1430_v25  ;;  %v1043_v25 = vld [vmem:[%s2083_s0 + $0x44] sm:$0xf0] }
  0x27   :  { %861 = vmatpush.bf16.msrb.mxu3 %v1446_v23  ;;  %928 = vmatpush.bf16.msrb.mxu0 %v1450_v26  ;;  %v1375_v23 = vld [vmem:[%s2083_s0 + $0x48] sm:$0xf0]  ;;  %v1061_v26 = vld [vmem:[%s2083_s0 + $0x58] sm:$0xf] }
  0x29   :  { %798 = vmatpush.bf16.msrb.mxu2 %v1438_v28  ;;  %v1038_v28 = vor.u32 %v1371_v20, %v1035_v21 }
  0x2a   :  { %736 = vmatpush.bf16.msrb.mxu1 %v1429_v29  ;;  %v1050_v29 = vor.u32 %v1375_v23, %v1049_v22 }
  0x2b   :  { %862 = vmatpush.bf16.msrb.mxu3 %v1445_v27  ;;  %929 = vmatpush.bf16.msrb.mxu0 %v1449_v30  ;;  %v1379_v27 = vld [vmem:[%s2083_s0 + $0x68] sm:$0xf0]  ;;  %v1046_v30 = vor.u32 %v1372_v24, %v1043_v25 }
  0x2d   :  { %799 = vmatpush.bf16.msrb.mxu2 %v1437_v31  ;;  %v1062_v31 = vor.u32 %v1379_v27, %v1061_v26  ;;  %v1396_v26 = vld [vmem:[%s2083_s0 + $0xf4] sm:$0xf]  ;;  %v1135_v27 = vld [vmem:[%s2083_s0 + $0x104] sm:$0xf0] }
  0x2e   :  { %737 = vmatpush.bf16.msrb.mxu1 %v1428_v35  ;;  %v1380_v35 = vld [vmem:[%s2083_s0 + $0x70] sm:$0xf0] }
  0x2f   :  { %863 = vmatpush.bf16.msrb.mxu3 %v1444_v32  ;;  %930 = vmatpush.bf16.msrb.mxu0 %v1448_v38  ;;  %v1376_v32 = vld [vmem:[%s2083_s0 + $0x54] sm:$0xf]  ;;  %v1081_v38 = vld [vmem:[%s2083_s0 + $0x80] sm:$0xf] }
  0x30   :  { %v1058_v40 = vor.u32 %v1376_v32, %v1055_v33  ;;  %v1082_v43 = vor.u32 %v1384_v39, %v1081_v38  ;;  %v1161_v32 = vld [vmem:[%s2083_s0 + $0x120] sm:$0xf]  ;;  %v1404_v33 = vld [vmem:[%s2083_s0 + $0x130] sm:$0xf0] }
  0x31   :  { %800 = vmatpush.bf16.msrb.mxu2 %v1436_v41  ;;  %684 = vmatmul.bf16.gmra.mxu0 %v1034_v45  ;;  %v1070_v41 = vor.u32 %v1380_v35, %v1069_v34  ;;  %v1075_v45 = vld [vmem:[%s2083_s0 + $0x8c] sm:$0xf0]  ;;  %v1138_v35 = vor.u32 %v1396_v26, %v1135_v27  ;;  %v1183_v26 = vld [vmem:[%s2083_s0 + $0x15c] sm:$0xf0] }
  0x32   :  { %699 = vmatmul.bf16.gmra.mxu1 %v1094_v46  ;;  %724 = vmatmul.bf16.gmra.mxu3 %v1194_v47  ;;  %v1089_v46 = vld [vmem:[%s2083_s0 + $0x88] sm:$0xf]  ;;  %v1385_v47 = vld [vmem:[%s2083_s0 + $0x98] sm:$0xf0]  ;;  %v1201_v27 = vld [vmem:[%s2083_s0 + $0x170] sm:$0xf] }
  0x33   :  { %864 = vmatpush.bf16.msrb.mxu3 %v1443_v44  ;;  %738 = vmatpush.bf16.msrb.mxu1 %v1427_v48  ;;  %v1381_v44 = vld [vmem:[%s2083_s0 + $0x7c] sm:$0xf]  ;;  %v1382_v48 = vld [vmem:[%s2083_s0 + $0x84] sm:$0xf] }
  0x34   :  { %714 = vmatmul.bf16.gmra.mxu2 %v1154_v49  ;;  %v1083_v49 = vld [vmem:[%s2083_s0 + $0x94] sm:$0xf0] }
  0x35   :  { %801 = vmatpush.bf16.msrb.mxu2 %v1435_v50  ;;  %v1101_v50 = vld [vmem:[%s2083_s0 + $0xa8] sm:$0xf] }
  0x37   :  { %865 = vmatpush.bf16.msrb.mxu3 %v1442_v51  ;;  %739 = vmatpush.bf16.msrb.mxu1 %v1426_v52  ;;  %v1389_v51 = vld [vmem:[%s2083_s0 + $0xb8] sm:$0xf0]  ;;  %v1078_v52 = vor.u32 %v1381_v44, %v1075_v45 }
  0x39   :  { %802 = vmatpush.bf16.msrb.mxu2 %v1434_v53  ;;  %v1090_v53 = vor.u32 %v1385_v47, %v1089_v46 }
  0x3b   :  { %866 = vmatpush.bf16.msrb.mxu3 %v1441_v54  ;;  %740 = vmatpush.bf16.msrb.mxu1 %v1425_v55  ;;  %v1086_v54 = vor.u32 %v1382_v48, %v1083_v49  ;;  %v1102_v55 = vor.u32 %v1389_v51, %v1101_v50 }
  0x3d   :  { %803 = vmatpush.bf16.msrb.mxu2 %v1433_v57  ;;  %v1386_v57 = vld [vmem:[%s2083_s0 + $0xa4] sm:$0xf] }
  0x3f   :  { %867 = vmatpush.bf16.msrb.mxu3 %v1440_v58  ;;  %741 = vmatpush.bf16.msrb.mxu1 %v1424_v0  ;;  %v1095_v58 = vld [vmem:[%s2083_s0 + $0xb4] sm:$0xf0]  ;;  %v1394_v0 = vld [vmem:[%s2083_s0 + $0xe0] sm:$0xf0] }
  0x41   :  { %804 = vmatpush.bf16.msrb.mxu2 %v1432_v1  ;;  %689 = vmatmul.bf16.gmra.mxu0 %v1054_v4  ;;  %v1098_v1 = vor.u32 %v1386_v57, %v1095_v58  ;;  %v1122_v4 = vor.u32 %v1394_v0, %v1121_v63  ;;  %v1402_v57 = vld [vmem:[%s2083_s0 + $0x124] sm:$0xf]  ;;  %v1163_v58 = vld [vmem:[%s2083_s0 + $0x134] sm:$0xf0] }
  0x42   :  { %704 = vmatmul.bf16.gmra.mxu1 %v1114_v5  ;;  %729 = vmatmul.bf16.gmra.mxu3 %v372_v6  ;;  %v1391_v5 = vld [vmem:[%s2083_s0 + $0xcc] sm:$0xf]  ;;  %v1115_v6 = vld [vmem:[%s2083_s0 + $0xdc] sm:$0xf0] }
  0x43   :  { %v1118_v13 = vor.u32 %v1391_v5, %v1115_v6  ;;  %v1182_v6 = vor.u32 %v1409_v60, %v1181_v59  ;;  %v1415_v59 = vld [vmem:[%s2083_s0 + $0x188] sm:$0xf0]  ;;  %v1412_v60 = vld [vmem:[%s2083_s0 + $0x174] sm:$0xf] }
  0x44   :  { %805 = vmatmul.bf16.vlgmr.msrb.gmra.mxu2 %v1022_v7  ;;  %v1129_v7 = vld [vmem:[%s2083_s0 + $0xd8] sm:$0xf] }
  0x45   :  { %v1130_v14 = vor.u32 %v1395_v8, %v1129_v7 }
  0x51   :  { %1355 = vmatmul.msk.bf16.vlgmr.msrb.gmra.mxu0 %vm637_vm0, %v1030_v17  ;;  %v1126_v17 = vor.u32 %v1392_v9, %v1123_v10 }
  0x52   :  { %742 = vmatmul.bf16.vlgmr.msrb.gmra.mxu1 %v1018_v16  ;;  %868 = vmatmul.bf16.vlgmr.msrb.gmra.mxu3 %v1026_v18  ;;  %v1142_v18 = vor.u32 %v1399_v12, %v1141_v11 }
  0x54   :  { %810 = vmatmul.bf16.gmra.mxu2 %v1042_v19  ;;  %v1834_v19 = vld [vmem:[%s2082_s2] ss:$0 sm:$0xff] }
  0x61   :  { %1356 = vmatmul.msk.bf16.gmra.mxu0 %vm637_vm0, %v1050_v29  ;;  %v1400_v29 = vld [vmem:[%s2083_s0 + $0x110] sm:$0xf0] }
  0x62   :  { %747 = vmatmul.bf16.gmra.mxu1 %v1038_v28  ;;  %873 = vmatmul.bf16.gmra.mxu3 %v1046_v30  ;;  %v1149_v28 = vld [vmem:[%s2083_s0 + $0x100] sm:$0xf]  ;;  %v1397_v30 = vld [vmem:[%s2083_s0 + $0xfc] sm:$0xf] }
  0x63   :  { %v1150_v36 = vor.u32 %v1400_v29, %v1149_v28  ;;  %v1414_v28 = vld [vmem:[%s2083_s0 + $0x180] sm:$0xf0] }
  0x64   :  { %815 = vmatmul.bf16.gmra.mxu2 %v1062_v31  ;;  %v1143_v31 = vld [vmem:[%s2083_s0 + $0x10c] sm:$0xf0] }
  0x71   :  { %1357 = vmatmul.msk.bf16.gmra.mxu0 %vm637_vm0, %v1070_v41 }
  0x72   :  { %752 = vmatmul.bf16.gmra.mxu1 %v1058_v40  ;;  %878 = vmatmul.bf16.gmra.mxu3 %v1066_v42  ;;  %v1146_v40 = vor.u32 %v1397_v30, %v1143_v31 }
  0x74   :  { %820 = vmatmul.bf16.gmra.mxu2 %v1082_v43  ;;  %v1162_v43 = vor.u32 %v1404_v33, %v1161_v32 }
  0x81   :  { %1358 = vmatmul.msk.bf16.gmra.mxu0 %vm637_vm0, %v1090_v53  ;;  %v1155_v53 = vld [vmem:[%s2083_s0 + $0x12c] sm:$0xf0] }
  0x82   :  { %757 = vmatmul.bf16.gmra.mxu1 %v1078_v52  ;;  %883 = vmatmul.bf16.gmra.mxu3 %v1086_v54  ;;  %v1401_v52 = vld [vmem:[%s2083_s0 + $0x11c] sm:$0xf]  ;;  %v1169_v54 = vld [vmem:[%s2083_s0 + $0x128] sm:$0xf] }
  0x83   :  { %v1158_v62 = vor.u32 %v1401_v52, %v1155_v53 }
  0x84   :  { %825 = vmatmul.bf16.gmra.mxu2 %v1102_v55  ;;  %v1405_v55 = vld [vmem:[%s2083_s0 + $0x138] sm:$0xf0] }
  0x85   :  { %v1170_v63 = vor.u32 %v1405_v55, %v1169_v54  ;;  %v76_v55 = vld [vmem:[%s2083_s0 + $0x198] sm:$0x11] }
  0x91   :  { %1359 = vmatmul.msk.bf16.gmra.mxu0 %vm637_vm0, %v1110_v2 }
  0x92   :  { %762 = vmatmul.bf16.gmra.mxu1 %v1098_v1  ;;  %888 = vmatmul.bf16.gmra.mxu3 %v1106_v3  ;;  %v1166_v3 = vor.u32 %v1402_v57, %v1163_v58  ;;  %v1411_v57 = vld [vmem:[%s2083_s0 + $0x16c] sm:$0xf]  ;;  %v1209_v58 = vld [vmem:[%s2083_s0 + $0x178] sm:$0xf] }
  0x94   :  { %830 = vmatmul.bf16.gmra.mxu2 %v1122_v4 }
  0x9e   :  { %v1826_v15 = vpop.f32.mrf.mxu0  ;;  %v1828_v16 = vpop.f32.mrf.mxu1 }
  0x9f   :  { %v681_v32 = vadd.f32 %v1834_v19, %v1826_v15 }
  0xa1   :  { %1360 = vmatmul.msk.bf16.gmra.mxu0 %vm637_vm0, %v1130_v14  ;;  %v1406_v14 = vld [vmem:[%s2083_s0 + $0x144] sm:$0xf] }
  0xa2   :  { %767 = vmatmul.bf16.gmra.mxu1 %v1118_v13  ;;  %893 = vmatmul.bf16.gmra.mxu3 %v1126_v17  ;;  %v1175_v17 = vld [vmem:[%s2083_s0 + $0x154] sm:$0xf0] }
  0xa3   :  { %v1178_v30 = vor.u32 %v1406_v14, %v1175_v17 }
  0xa4   :  { %835 = vmatmul.bf16.gmra.mxu2 %v1142_v18  ;;  %v1189_v18 = vld [vmem:[%s2083_s0 + $0x150] sm:$0xf] }
  0xa5   :  { %v720_v20 = vpop.f32.mrf.mxu3 }
  0xa6   :  { %v1837_v21 = vadd.f32 %v1834_v19, %v720_v20  ;;  %v1839_v22 = vpop.f32.mrf.mxu0  ;;  %v1841_v23 = vpop.f32.mrf.mxu1  ;;  %v1410_v20 = vld [vmem:[%s2083_s0 + $0x160] sm:$0xf0] }
  0xa7   :  { %v710_v24 = vpop.f32.mrf.mxu2  ;;  %v1190_v31 = vor.u32 %v1410_v20, %v1189_v18 }
  0xa8   :  { %v1844_v25 = vadd.f32 %v1834_v19, %v710_v24  ;;  %v1407_v24 = vld [vmem:[%s2083_s0 + $0x14c] sm:$0xf] }
  0xad   :  { %v722_v34 = vpop.f32.mrf.mxu3 }
  0xae   :  { %v1871_v37 = vadd.f32 %v1834_v19, %v722_v34  ;;  %v1873_v38 = vpop.f32.mrf.mxu0 }
  0xaf   :  { %v700_v39 = vpop.f32.mrf.mxu1  ;;  %v712_v42 = vpop.f32.mrf.mxu2 }
  0xb0   :  { %v1876_v41 = vadd.f32 %v1834_v19, %v700_v39  ;;  %v1879_v44 = vadd.f32 %v1834_v19, %v712_v42  ;;  %v1202_v39 = vor.u32 %v1414_v28, %v1201_v27 }
  0xb1   :  { %1361 = vmatmul.msk.bf16.gmra.mxu0 %vm637_vm0, %v1150_v36 }
  0xb2   :  { %772 = vmatmul.bf16.gmra.mxu1 %v1138_v35  ;;  %898 = vmatmul.bf16.gmra.mxu3 %v1146_v40  ;;  %v1186_v35 = vor.u32 %v1407_v24, %v1183_v26 }
  0xb4   :  { %840 = vmatmul.bf16.gmra.mxu2 %v1162_v43 }
  0xb5   :  { %v725_v45 = vpop.f32.mrf.mxu3 }
  0xb6   :  { %v1883_v46 = vadd.f32 %v1834_v19, %v725_v45  ;;  %v1885_v47 = vpop.f32.mrf.mxu0  ;;  %v683_v45 = vadd.f32 %v1834_v19, %v1839_v22  ;;  %v1195_v22 = vld [vmem:[%s2083_s0 + $0x17c] sm:$0xf0] }
  0xb7   :  { %v702_v48 = vpop.f32.mrf.mxu1  ;;  %v715_v50 = vpop.f32.mrf.mxu2 }
  0xb8   :  { %v1888_v49 = vadd.f32 %v1834_v19, %v702_v48  ;;  %v1891_v51 = vadd.f32 %v1834_v19, %v715_v50 }
  0xbd   :  { %v727_v61 = vpop.f32.mrf.mxu3 }
  0xbe   :  { %v1918_v0 = vadd.f32 %v1834_v19, %v727_v61  ;;  %v1920_v1 = vpop.f32.mrf.mxu0  ;;  %v1203_v61 = vld [vmem:[%s2083_s0 + $0x184] sm:$0xf0] }
  0xbf   :  { %v705_v2 = vpop.f32.mrf.mxu1  ;;  %v717_v5 = vpop.f32.mrf.mxu2  ;;  %v1206_v14 = vor.u32 %v1412_v60, %v1203_v61 }
  0xc0   :  { %v1923_v4 = vadd.f32 %v1834_v19, %v705_v2  ;;  %v1926_v7 = vadd.f32 %v1834_v19, %v717_v5  ;;  %v1210_v5 = vor.u32 %v1415_v59, %v1209_v58 }
  0xc1   :  { %1362 = vmatmul.msk.bf16.gmra.mxu0 %vm637_vm0, %v1170_v63 }
  0xc2   :  { %777 = vmatmul.bf16.gmra.mxu1 %v1158_v62  ;;  %903 = vmatmul.bf16.gmra.mxu3 %v1166_v3  ;;  %v319_v62 = vunpack.c.l.b16 %v76_v55  ;;  %v1198_v3 = vor.u32 %v1411_v57, %v1195_v22 }
  0xc4   :  { %845 = vmatmul.bf16.gmra.mxu2 %v1182_v6  ;;  %v686_v6 = vadd.f32 %v1834_v19, %v1873_v38  ;;  %v374_v18 = vpack.c.b16 %v319_v62, %v319_v62  ;;  %v688_v38 = vadd.f32 %v1834_v19, %v1885_v47 }
  0xc5   :  { %v730_v8 = vpop.f32.mrf.mxu3 }
  0xc6   :  { %v1930_v9 = vadd.f32 %v1834_v19, %v730_v8  ;;  %v1932_v10 = vpop.f32.mrf.mxu0 }
  0xc7   :  { %v707_v11 = vpop.f32.mrf.mxu1  ;;  %v806_v13 = vpop.f32.mrf.mxu2 }
  0xc8   :  { %v1935_v12 = vadd.f32 %v1834_v19, %v707_v11 }
  0xcd   :  { %v732_v29 = vpop.f32.mrf.mxu3 }
  0xce   :  { %v932_v34 = vpop.f32.mrf.mxu0 }
  0xcf   :  { %v743_v33 = vpop.f32.mrf.mxu1  ;;  %v808_v36 = vpop.f32.mrf.mxu2 }
  0xd0   :  { %v744_v40 = vadd.f32 %v743_v33, %v681_v32 }
  0xd1   :  { %1363 = vmatmul.msk.bf16.gmra.mxu0 %vm637_vm0, %v1190_v31  ;;  %v77_v31 = vld [vmem:[%s2083_s0 + $0x1a0] sm:$0x1] }
  0xd2   :  { %782 = vmatmul.bf16.gmra.mxu1 %v1178_v30  ;;  %908 = vmatmul.bf16.gmra.mxu3 %v1186_v35  ;;  %v807_v42 = vadd.f32 %v806_v13, %v744_v40  ;;  %v318_v35 = vunpack.c.h.b16 %v1644_v56 }
  0xd4   :  { %850 = vmatmul.bf16.gmra.mxu2 %v1202_v39  ;;  %v320_v39 = vunpack.c.h.b16 %v76_v55 }
  0xd5   :  { %v869_v43 = vpop.f32.mrf.mxu3 }
  0xd6   :  { %v870_v48 = vadd.f32 %v869_v43, %v807_v42  ;;  %v934_v52 = vpop.f32.mrf.mxu0  ;;  %v373_v42 = vpack.c.b16 %v318_v35, %v318_v35 }
  0xd7   :  { %v745_v50 = vpop.f32.mrf.mxu1  ;;  %v811_v15 = vpop.f32.mrf.mxu2 }
  0xd8   :  { %v933_v53 = vadd.f32 %v932_v34, %v870_v48  ;;  %v746_v54 = vadd.f32 %v745_v50, %v683_v45  ;;  %v691_v45 = vadd.f32 %v1834_v19, %v1920_v1  ;;  %v693_v1 = vadd.f32 %v1834_v19, %v1932_v10 }
  0xda   :  { %986 = vst [vmem:[%s2084_s3] sm:$0xff] %v933_v53  ;;  %v809_v63 = vadd.f32 %v808_v36, %v746_v54  ;;  %v321_v36 = vunpack.c.l.b16 %v77_v31 }
  0xdc   :  { %v376_v43 = vpack.c.b16 %v321_v36, %v321_v36 }
  0xdd   :  { %v871_v2 = vpop.f32.mrf.mxu3 }
  0xde   :  { %v872_v8 = vadd.f32 %v871_v2, %v809_v63  ;;  %v937_v13 = vpop.f32.mrf.mxu0 }
  0xdf   :  { %v748_v11 = vpop.f32.mrf.mxu1  ;;  %v813_v17 = vpop.f32.mrf.mxu2 }
  0xe0   :  { %v935_v20 = vadd.f32 %v934_v52, %v872_v8  ;;  %v749_v24 = vadd.f32 %v748_v11, %v686_v6 }
  0xe1   :  { %1364 = vmatmul.msk.bf16.gmra.mxu0 %vm637_vm0, %v1210_v5 }
  0xe2   :  { %787 = vmatmul.bf16.gmra.mxu1 %v1198_v3  ;;  %987 = vst [vmem:[%s2084_s3 + $0x8] sm:$0xff] %v935_v20  ;;  %913 = vmatmul.bf16.gmra.mxu3 %v1206_v14  ;;  %v812_v26 = vadd.f32 %v811_v15, %v749_v24  ;;  %v375_v15 = vpack.c.b16 %v320_v39, %v320_v39 }
  0xe3   :  { %v696_v3 = vadd.f32 %v1834_v19, %v1828_v16 }
  0xe4   :  { %855 = vmatmul.bf16.gmra.mxu2 %v374_v18  ;;  %v698_v18 = vadd.f32 %v1834_v19, %v1841_v23 }
  0xe5   :  { %v874_v27 = vpop.f32.mrf.mxu3 }
  0xe6   :  { %v875_v28 = vadd.f32 %v874_v27, %v812_v26  ;;  %v939_v30 = vpop.f32.mrf.mxu0 }
  0xe7   :  { %v750_v29 = vpop.f32.mrf.mxu1  ;;  %v816_v32 = vpop.f32.mrf.mxu2 }
  0xe8   :  { %v938_v33 = vadd.f32 %v937_v13, %v875_v28  ;;  %v751_v34 = vadd.f32 %v750_v29, %v688_v38 }
  0xea   :  { %988 = vst [vmem:[%s2084_s3 + $0x10] sm:$0xff] %v938_v33  ;;  %v814_v40 = vadd.f32 %v813_v17, %v751_v34 }
  0xed   :  { %v876_v47 = vpop.f32.mrf.mxu3 }
  0xee   :  { %v877_v48 = vadd.f32 %v876_v47, %v814_v40  ;;  %v942_v52 = vpop.f32.mrf.mxu0 }
  0xef   :  { %v753_v50 = vpop.f32.mrf.mxu1  ;;  %v818_v53 = vpop.f32.mrf.mxu2 }
  0xf0   :  { %v940_v54 = vadd.f32 %v939_v30, %v877_v48  ;;  %v754_v56 = vadd.f32 %v753_v50, %v691_v45 }
  0xf1   :  { %1365 = vmatmul.msk.bf16.gmra.mxu0 %vm637_vm0, %v376_v43 }
  0xf2   :  { %792 = vmatmul.bf16.gmra.mxu1 %v373_v42  ;;  %989 = vst [vmem:[%s2084_s3 + $0x18] sm:$0xff] %v940_v54  ;;  %918 = vmatmul.bf16.gmra.mxu3 %v375_v15  ;;  %v817_v55 = vadd.f32 %v816_v32, %v754_v56 }
  0xf5   :  { %v879_v57 = vpop.f32.mrf.mxu3 }
  0xf6   :  { %v880_v22 = vadd.f32 %v879_v57, %v817_v55  ;;  %v944_v59 = vpop.f32.mrf.mxu0 }
  0xf7   :  { %v755_v58 = vpop.f32.mrf.mxu1  ;;  %v821_v60 = vpop.f32.mrf.mxu2 }
  0xf8   :  { %v943_v61 = vadd.f32 %v942_v52, %v880_v22  ;;  %v756_v62 = vadd.f32 %v755_v58, %v693_v1 }
  0xfa   :  { %990 = vst [vmem:[%s2084_s3 + $0x20] sm:$0xff] %v943_v61  ;;  %v819_v63 = vadd.f32 %v818_v53, %v756_v62 }
  0xfd   :  { %v881_v2 = vpop.f32.mrf.mxu3 }
  0xfe   :  { %v882_v5 = vadd.f32 %v881_v2, %v819_v63  ;;  %v947_v8 = vpop.f32.mrf.mxu0 }
  0xff   :  { %v758_v6 = vpop.f32.mrf.mxu1  ;;  %v823_v11 = vpop.f32.mrf.mxu2 }
 0x100   :  { %v945_v10 = vadd.f32 %v944_v59, %v882_v5  ;;  %v759_v13 = vadd.f32 %v758_v6, %v696_v3 }
 0x102   :  { %991 = vst [vmem:[%s2084_s3 + $0x28] sm:$0xff] %v945_v10  ;;  %v822_v14 = vadd.f32 %v821_v60, %v759_v13 }
 0x105   :  { %v884_v17 = vpop.f32.mrf.mxu3 }
 0x106   :  { %v885_v20 = vadd.f32 %v884_v17, %v822_v14  ;;  %v949_v26 = vpop.f32.mrf.mxu0 }
 0x107   :  { %v760_v24 = vpop.f32.mrf.mxu1  ;;  %v826_v27 = vpop.f32.mrf.mxu2 }
 0x108   :  { %v948_v16 = vadd.f32 %v947_v8, %v885_v20  ;;  %v761_v38 = vadd.f32 %v760_v24, %v698_v18 }
 0x10a   :  { %992 = vst [vmem:[%s2084_s3 + $0x30] sm:$0xff] %v948_v16  ;;  %v824_v28 = vadd.f32 %v823_v11, %v761_v38 }
 0x10d   :  { %v886_v29 = vpop.f32.mrf.mxu3 }
 0x10e   :  { %v887_v30 = vadd.f32 %v886_v29, %v824_v28  ;;  %v952_v32 = vpop.f32.mrf.mxu0 }
 0x10f   :  { %v763_v31 = vpop.f32.mrf.mxu1  ;;  %v828_v33 = vpop.f32.mrf.mxu2 }
 0x110   :  { %v950_v34 = vadd.f32 %v949_v26, %v887_v30  ;;  %v764_v35 = vadd.f32 %v763_v31, %v1876_v41 }
 0x112   :  { %993 = vst [vmem:[%s2084_s3 + $0x38] sm:$0xff] %v950_v34  ;;  %v827_v19 = vadd.f32 %v826_v27, %v764_v35 }
 0x115   :  { %v889_v23 = vpop.f32.mrf.mxu3 }
 0x116   :  { %v890_v36 = vadd.f32 %v889_v23, %v827_v19  ;;  %v954_v40 = vpop.f32.mrf.mxu0 }
 0x117   :  { %v765_v39 = vpop.f32.mrf.mxu1  ;;  %v831_v47 = vpop.f32.mrf.mxu2 }
 0x118   :  { %v953_v42 = vadd.f32 %v952_v32, %v890_v36  ;;  %v766_v43 = vadd.f32 %v765_v39, %v1888_v49 }
 0x11a   :  { %994 = vst [vmem:[%s2084_s3 + $0x40] sm:$0xff] %v953_v42  ;;  %v829_v45 = vadd.f32 %v828_v33, %v766_v43 }
 0x11d   :  { %v891_v48 = vpop.f32.mrf.mxu3 }
 0x11e   :  { %v892_v41 = vadd.f32 %v891_v48, %v829_v45  ;;  %v957_v52 = vpop.f32.mrf.mxu0 }
 0x11f   :  { %v768_v50 = vpop.f32.mrf.mxu1  ;;  %v833_v15 = vpop.f32.mrf.mxu2 }
 0x120   :  { %v955_v53 = vadd.f32 %v954_v40, %v892_v41  ;;  %v769_v54 = vadd.f32 %v768_v50, %v1923_v4 }
 0x122   :  { %995 = vst [vmem:[%s2084_s3 + $0x48] sm:$0xff] %v955_v53  ;;  %v832_v56 = vadd.f32 %v831_v47, %v769_v54 }
 0x125   :  { %v894_v55 = vpop.f32.mrf.mxu3 }
 0x126   :  { %v895_v49 = vadd.f32 %v894_v55, %v832_v56  ;;  %v959_v1 = vpop.f32.mrf.mxu0 }
 0x127   :  { %v770_v57 = vpop.f32.mrf.mxu1  ;;  %v836_v22 = vpop.f32.mrf.mxu2 }
 0x128   :  { %v958_v58 = vadd.f32 %v957_v52, %v895_v49  ;;  %v771_v59 = vadd.f32 %v770_v57, %v1935_v12 }
 0x12a   :  { %996 = vst [vmem:[%s2084_s3 + $0x50] sm:$0xff] %v958_v58  ;;  %v834_v60 = vadd.f32 %v833_v15, %v771_v59 }
 0x12d   :  { %v896_v61 = vpop.f32.mrf.mxu3 }
 0x12e   :  { %v897_v4 = vadd.f32 %v896_v61, %v834_v60  ;;  %v962_v63 = vpop.f32.mrf.mxu0 }
 0x12f   :  { %v773_v62 = vpop.f32.mrf.mxu1  ;;  %v838_v2 = vpop.f32.mrf.mxu2 }
 0x130   :  { %v960_v3 = vadd.f32 %v959_v1, %v897_v4  ;;  %v774_v5 = vadd.f32 %v773_v62, %v1844_v25 }
 0x132   :  { %997 = vst [vmem:[%s2084_s3 + $0x58] sm:$0xff] %v960_v3  ;;  %v837_v6 = vadd.f32 %v836_v22, %v774_v5 }
 0x135   :  { %v899_v8 = vpop.f32.mrf.mxu3 }
 0x136   :  { %v900_v12 = vadd.f32 %v899_v8, %v837_v6  ;;  %v964_v10 = vpop.f32.mrf.mxu0 }
 0x137   :  { %v775_v11 = vpop.f32.mrf.mxu1  ;;  %v841_v13 = vpop.f32.mrf.mxu2 }
 0x138   :  { %v963_v14 = vadd.f32 %v962_v63, %v900_v12  ;;  %v776_v17 = vadd.f32 %v775_v11, %v1879_v44 }
 0x13a   :  { %998 = vst [vmem:[%s2084_s3 + $0x60] sm:$0xff] %v963_v14  ;;  %v839_v18 = vadd.f32 %v838_v2, %v776_v17 }
 0x13d   :  { %v901_v20 = vpop.f32.mrf.mxu3 }
 0x13e   :  { %v902_v25 = vadd.f32 %v901_v20, %v839_v18  ;;  %v967_v26 = vpop.f32.mrf.mxu0 }
 0x13f   :  { %v778_v24 = vpop.f32.mrf.mxu1  ;;  %v843_v27 = vpop.f32.mrf.mxu2 }
 0x140   :  { %v965_v16 = vadd.f32 %v964_v10, %v902_v25  ;;  %v779_v38 = vadd.f32 %v778_v24, %v1891_v51 }
 0x142   :  { %999 = vst [vmem:[%s2084_s3 + $0x68] sm:$0xff] %v965_v16  ;;  %v842_v28 = vadd.f32 %v841_v13, %v779_v38 }
 0x145   :  { %v904_v29 = vpop.f32.mrf.mxu3 }
 0x146   :  { %v905_v44 = vadd.f32 %v904_v29, %v842_v28  ;;  %v969_v31 = vpop.f32.mrf.mxu0 }
 0x147   :  { %v780_v30 = vpop.f32.mrf.mxu1  ;;  %v846_v32 = vpop.f32.mrf.mxu2 }
 0x148   :  { %v968_v33 = vadd.f32 %v967_v26, %v905_v44  ;;  %v781_v34 = vadd.f32 %v780_v30, %v1926_v7 }
 0x14a   :  { %1000 = vst [vmem:[%s2084_s3 + $0x70] sm:$0xff] %v968_v33  ;;  %v844_v35 = vadd.f32 %v843_v27, %v781_v34 }
 0x14d   :  { %v906_v19 = vpop.f32.mrf.mxu3 }
 0x14e   :  { %v907_v51 = vadd.f32 %v906_v19, %v844_v35  ;;  %v972_v36 = vpop.f32.mrf.mxu0 }
 0x14f   :  { %v783_v23 = vpop.f32.mrf.mxu1  ;;  %v848_v39 = vpop.f32.mrf.mxu2 }
 0x150   :  { %v970_v40 = vadd.f32 %v969_v31, %v907_v51  ;;  %v784_v47 = vadd.f32 %v783_v23, %v1837_v21 }
 0x152   :  { %1001 = vst [vmem:[%s2084_s3 + $0x78] sm:$0xff] %v970_v40  ;;  %v847_v42 = vadd.f32 %v846_v32, %v784_v47 }
 0x155   :  { %v909_v43 = vpop.f32.mrf.mxu3 }
 0x156   :  { %v910_v7 = vadd.f32 %v909_v43, %v847_v42  ;;  %v974_v48 = vpop.f32.mrf.mxu0 }
 0x157   :  { %v785_v45 = vpop.f32.mrf.mxu1  ;;  %v851_v41 = vpop.f32.mrf.mxu2 }
 0x158   :  { %v973_v50 = vadd.f32 %v972_v36, %v910_v7  ;;  %v786_v52 = vadd.f32 %v785_v45, %v1871_v37 }
 0x15a   :  { %1002 = vst [vmem:[%s2084_s3 + $0x80] sm:$0xff] %v973_v50  ;;  %v849_v15 = vadd.f32 %v848_v39, %v786_v52 }
 0x15d   :  { %v911_v53 = vpop.f32.mrf.mxu3 }
 0x15e   :  { %v912_v21 = vadd.f32 %v911_v53, %v849_v15  ;;  %v977_v56 = vpop.f32.mrf.mxu0 }
 0x15f   :  { %v788_v54 = vpop.f32.mrf.mxu1  ;;  %v853_v55 = vpop.f32.mrf.mxu2 }
 0x160   :  { %v975_v49 = vadd.f32 %v974_v48, %v912_v21  ;;  %v789_v57 = vadd.f32 %v788_v54, %v1883_v46 }
 0x162   :  { %1003 = vst [vmem:[%s2084_s3 + $0x88] sm:$0xff] %v975_v49  ;;  %v852_v1 = vadd.f32 %v851_v41, %v789_v57 }
 0x165   :  { %v914_v22 = vpop.f32.mrf.mxu3 }
 0x166   :  { %v915_v37 = vadd.f32 %v914_v22, %v852_v1  ;;  %v979_v59 = vpop.f32.mrf.mxu0 }
 0x167   :  { %v790_v58 = vpop.f32.mrf.mxu1  ;;  %v856_v60 = vpop.f32.mrf.mxu2 }
 0x168   :  { %v978_v61 = vadd.f32 %v977_v56, %v915_v37  ;;  %v791_v4 = vadd.f32 %v790_v58, %v1918_v0 }
 0x16a   :  { %1004 = vst [vmem:[%s2084_s3 + $0x90] sm:$0xff] %v978_v61  ;;  %v854_v62 = vadd.f32 %v853_v55, %v791_v4 }
 0x16d   :  { %v916_v63 = vpop.f32.mrf.mxu3 }
 0x16e   :  { %v917_v46 = vadd.f32 %v916_v63, %v854_v62  ;;  %v982_v3 = vpop.f32.mrf.mxu0 }
 0x16f   :  { %v793_v2 = vpop.f32.mrf.mxu1  ;;  %v858_v5 = vpop.f32.mrf.mxu2 }
 0x170   :  { %v980_v6 = vadd.f32 %v979_v59, %v917_v46  ;;  %v794_v8 = vadd.f32 %v793_v2, %v1930_v9 }
 0x172   :  { %1005 = vst [vmem:[%s2084_s3 + $0x98] sm:$0xff] %v980_v6  ;;  %v857_v12 = vadd.f32 %v856_v60, %v794_v8 }
 0x175   :  { %v919_v11 = vpop.f32.mrf.mxu3 }
 0x176   :  { %v920_v0 = vadd.f32 %v919_v11, %v857_v12  ;;  %v984_v13 = vpop.f32.mrf.mxu0 }
 0x177   :  { %v795_v10 = vpop.f32.mrf.mxu1 }
 0x178   :  { %v983_v14 = vadd.f32 %v982_v3, %v920_v0 }
 0x17a   :  { %1006 = vst [vmem:[%s2084_s3 + $0xa0] sm:$0x3] %v983_v14 }
 0x17d   :  { %v921_v17 = vpop.f32.mrf.mxu3 }

// kernel: deformed_conv_model_forward.12
= control target key start
LH: loop header
LB: loop body
LE: loop exit
PB: predicated region body
PF: predicated region fallthrough
CT: control target
= control target key end

     0   :  { %vm637_vm0 = vcmask 523264   ;;  %s2102_s1 = inlined_call_operand.vmem [shape: bf16[576,128], index: 1, kind: input, shape index: {}]   ;;  %s2103_s2 = inlined_call_operand.vmem [shape: f32[1,128], index: 2, kind: input, shape index: {}]   ;;  %s2104_s0 = inlined_call_operand.vmem [shape: bf16[162,576], index: 0, kind: input, shape index: {}]   ;;  %s2105_s3 = inlined_call_operand.vmem [shape: f32[162,128], index: 3, kind: output, shape index: {}]  }
   0x1   :  { %v1444_v0 = vld [vmem:[%s2102_s1 + $0x38] sm:$0xff]  ;;  %v1443_v1 = vld [vmem:[%s2102_s1 + $0x30] sm:$0xff]  ;;  %v1442_v2 = vld [vmem:[%s2102_s1 + $0x28] sm:$0xff] }
   0x2   :  { %671 = vmatpush.bf16.msra.mxu0 %v1444_v0  ;;  %1473 = vmatpush.bf16.msra.mxu1 %v1444_v0  ;;  %v1441_v3 = vld [vmem:[%s2102_s1 + $0x20] sm:$0xff]  ;;  %v1440_v4 = vld [vmem:[%s2102_s1 + $0x18] sm:$0xff]  ;;  %v1439_v5 = vld [vmem:[%s2102_s1 + $0x10] sm:$0xff] }
   0x3   :  { %1475 = vmatpush.bf16.msra.mxu3 %v1444_v0  ;;  %1474 = vmatpush.bf16.msra.mxu2 %v1444_v0  ;;  %v1438_v6 = vld [vmem:[%s2102_s1 + $0x8] sm:$0xff]  ;;  %v1437_v7 = vld [vmem:[%s2102_s1] sm:$0xff]  ;;  %v1389_v9 = vld [vmem:[%s2104_s0 + $0x10] sm:$0xf0] }
   0x4   :  { %v1034_v8 = vld [vmem:[%s2104_s0] sm:$0xf]  ;;  %v1094_v10 = vld [vmem:[%s2104_s0 + $0x78] sm:$0xf]  ;;  %v1404_v11 = vld [vmem:[%s2104_s0 + $0x88] sm:$0xf0] }
   0x5   :  { %v1194_v12 = vld [vmem:[%s2104_s0 + $0x140] sm:$0xf]  ;;  %v1429_v13 = vld [vmem:[%s2104_s0 + $0x150] sm:$0xf0]  ;;  %v1452_v14 = vld [vmem:[%s2102_s1 + $0x78] sm:$0xff]  ;;  %v1035_v18 = vor.u32 %v1389_v9, %v1034_v8  ;;  %v1095_v19 = vor.u32 %v1404_v11, %v1094_v10 }
   0x6   :  { %672 = vmatpush.bf16.msra.mxu0 %v1443_v1  ;;  %1476 = vmatpush.bf16.msra.mxu1 %v1443_v1  ;;  %v1468_v15 = vld [vmem:[%s2102_s1 + $0xf8] sm:$0xff]  ;;  %v1154_v16 = vld [vmem:[%s2104_s0 + $0xf0] sm:$0xf]  ;;  %v1419_v17 = vld [vmem:[%s2104_s0 + $0x100] sm:$0xf0]  ;;  %v1195_v20 = vor.u32 %v1429_v13, %v1194_v12 }
   0x7   :  { %1478 = vmatpush.bf16.msra.mxu3 %v1443_v1  ;;  %1477 = vmatpush.bf16.msra.mxu2 %v1443_v1  ;;  %v1472_v21 = vld [vmem:[%s2102_s1 + $0x118] sm:$0xff]  ;;  %v1155_v22 = vor.u32 %v1419_v17, %v1154_v16  ;;  %v1451_v23 = vld [vmem:[%s2102_s1 + $0x70] sm:$0xff]  ;;  %v1450_v27 = vld [vmem:[%s2102_s1 + $0x68] sm:$0xff] }
   0x8   :  { %v1467_v24 = vld [vmem:[%s2102_s1 + $0xf0] sm:$0xff]  ;;  %v1460_v25 = vld [vmem:[%s2102_s1 + $0xb8] sm:$0xff]  ;;  %v1466_v29 = vld [vmem:[%s2102_s1 + $0xe8] sm:$0xff] }
   0x9   :  { %v1471_v26 = vld [vmem:[%s2102_s1 + $0x110] sm:$0xff]  ;;  %v1470_v30 = vld [vmem:[%s2102_s1 + $0x108] sm:$0xff]  ;;  %v1449_v31 = vld [vmem:[%s2102_s1 + $0x60] sm:$0xff] }
   0xa   :  { %673 = vmatpush.bf16.msra.mxu0 %v1442_v2  ;;  %1479 = vmatpush.bf16.msra.mxu1 %v1442_v2  ;;  %v1459_v28 = vld [vmem:[%s2102_s1 + $0xb0] sm:$0xff]  ;;  %v1458_v32 = vld [vmem:[%s2102_s1 + $0xa8] sm:$0xff]  ;;  %v1465_v33 = vld [vmem:[%s2102_s1 + $0xe0] sm:$0xff] }
   0xb   :  { %1481 = vmatpush.bf16.msra.mxu3 %v1442_v2  ;;  %1480 = vmatpush.bf16.msra.mxu2 %v1442_v2  ;;  %v1054_v34 = vld [vmem:[%s2104_s0 + $0x28] sm:$0xf]  ;;  %v1394_v35 = vld [vmem:[%s2104_s0 + $0x38] sm:$0xf0]  ;;  %v1114_v36 = vld [vmem:[%s2104_s0 + $0xa0] sm:$0xf] }
   0xc   :  { %v1409_v37 = vld [vmem:[%s2104_s0 + $0xb0] sm:$0xf0]  ;;  %v1214_v38 = vld [vmem:[%s2104_s0 + $0x168] sm:$0xf]  ;;  %v1469_v39 = vld [vmem:[%s2102_s1 + $0x100] sm:$0xff]  ;;  %v1055_v46 = vor.u32 %v1394_v35, %v1054_v34 }
   0xd   :  { %v1434_v40 = vld [vmem:[%s2104_s0 + $0x178] sm:$0xf0]  ;;  %v1457_v41 = vld [vmem:[%s2102_s1 + $0xa0] sm:$0xff]  ;;  %v1174_v43 = vld [vmem:[%s2104_s0 + $0x118] sm:$0xf]  ;;  %v1115_v47 = vor.u32 %v1409_v37, %v1114_v36 }
   0xe   :  { %674 = vmatpush.bf16.msra.mxu0 %v1441_v3  ;;  %1482 = vmatpush.bf16.msra.mxu1 %v1441_v3  ;;  %v1448_v42 = vld [vmem:[%s2102_s1 + $0x58] sm:$0xff]  ;;  %v1424_v44 = vld [vmem:[%s2104_s0 + $0x128] sm:$0xf0]  ;;  %v1215_v48 = vor.u32 %v1434_v40, %v1214_v38  ;;  %v1447_v50 = vld [vmem:[%s2102_s1 + $0x50] sm:$0xff] }
   0xf   :  { %1484 = vmatpush.bf16.msra.mxu3 %v1441_v3  ;;  %1483 = vmatpush.bf16.msra.mxu2 %v1441_v3  ;;  %v1464_v45 = vld [vmem:[%s2102_s1 + $0xd8] sm:$0xff]  ;;  %v1175_v49 = vor.u32 %v1424_v44, %v1174_v43  ;;  %v1463_v52 = vld [vmem:[%s2102_s1 + $0xd0] sm:$0xff]  ;;  %v1446_v53 = vld [vmem:[%s2102_s1 + $0x48] sm:$0xff] }
  0x10   :  { %v1456_v51 = vld [vmem:[%s2102_s1 + $0x98] sm:$0xff]  ;;  %v1455_v54 = vld [vmem:[%s2102_s1 + $0x90] sm:$0xff]  ;;  %v1462_v55 = vld [vmem:[%s2102_s1 + $0xc8] sm:$0xff] }
  0x11   :  { %v1665_v56 = vld [vmem:[%s2104_s0 + $0x190] sm:$0x11]  ;;  %v1445_v57 = vld [vmem:[%s2102_s1 + $0x40] sm:$0xff]  ;;  %v1454_v58 = vld [vmem:[%s2102_s1 + $0x88] sm:$0xff] }
  0x12   :  { %675 = vmatpush.bf16.msra.mxu0 %v1440_v4  ;;  %1485 = vmatpush.bf16.msra.mxu1 %v1440_v4  ;;  %v1461_v59 = vld [vmem:[%s2102_s1 + $0xc0] sm:$0xff]  ;;  %v1074_v60 = vld [vmem:[%s2104_s0 + $0x50] sm:$0xf]  ;;  %v1134_v62 = vld [vmem:[%s2104_s0 + $0xc8] sm:$0xf]  ;;  %v317_v0 = vunpack.c.l.b16 %v1665_v56 }
  0x13   :  { %1487 = vmatpush.bf16.msra.mxu3 %v1440_v4  ;;  %1486 = vmatpush.bf16.msra.mxu2 %v1440_v4  ;;  %v1399_v61 = vld [vmem:[%s2104_s0 + $0x60] sm:$0xf0]  ;;  %v1414_v63 = vld [vmem:[%s2104_s0 + $0xd8] sm:$0xf0]  ;;  %v1042_v2 = vld [vmem:[%s2104_s0 + $0x8] sm:$0xf] }
  0x14   :  { %v1453_v1 = vld [vmem:[%s2102_s1 + $0x80] sm:$0xff]  ;;  %v1390_v3 = vld [vmem:[%s2104_s0 + $0x18] sm:$0xf0]  ;;  %v1075_v4 = vor.u32 %v1399_v61, %v1074_v60  ;;  %v1036_v9 = vld [vmem:[%s2104_s0 + $0x14] sm:$0xf0] }
  0x15   :  { %v1387_v8 = vld [vmem:[%s2104_s0 + $0x4] sm:$0xf]  ;;  %v1050_v10 = vld [vmem:[%s2104_s0 + $0x10] sm:$0xf]  ;;  %v1388_v12 = vld [vmem:[%s2104_s0 + $0xc] sm:$0xf] }
  0x16   :  { %676 = vmatpush.bf16.msra.mxu0 %v1439_v5  ;;  %1488 = vmatpush.bf16.msra.mxu1 %v1439_v5  ;;  %v1391_v11 = vld [vmem:[%s2104_s0 + $0x20] sm:$0xf0]  ;;  %v1044_v13 = vld [vmem:[%s2104_s0 + $0x1c] sm:$0xf0]  ;;  %v1039_v16 = vor.u32 %v1387_v8, %v1036_v9  ;;  %v1401_v35 = vld [vmem:[%s2104_s0 + $0x70] sm:$0xf0] }
  0x17   :  { %1490 = vmatpush.bf16.msra.mxu3 %v1439_v5  ;;  %1489 = vmatpush.bf16.msra.mxu2 %v1439_v5  ;;  %v1135_v5 = vor.u32 %v1414_v63, %v1134_v62  ;;  %v1051_v17 = vor.u32 %v1391_v11, %v1050_v10  ;;  %v1090_v34 = vld [vmem:[%s2104_s0 + $0x60] sm:$0xf]  ;;  %v1398_v36 = vld [vmem:[%s2104_s0 + $0x5c] sm:$0xf]  ;;  %v1084_v37 = vld [vmem:[%s2104_s0 + $0x6c] sm:$0xf0] }
  0x18   :  { %v1102_v38 = vld [vmem:[%s2104_s0 + $0x80] sm:$0xf]  ;;  %v1402_v44 = vld [vmem:[%s2104_s0 + $0x7c] sm:$0xf]  ;;  %v1411_v60 = vld [vmem:[%s2104_s0 + $0xc0] sm:$0xf0] }
  0x19   :  { %v1408_v61 = vld [vmem:[%s2104_s0 + $0xac] sm:$0xf]  ;;  %v1124_v62 = vld [vmem:[%s2104_s0 + $0xbc] sm:$0xf0]  ;;  %v1142_v63 = vld [vmem:[%s2104_s0 + $0xd0] sm:$0xf] }
  0x1a   :  { %677 = vmatpush.bf16.msra.mxu0 %v1438_v6  ;;  %1491 = vmatpush.bf16.msra.mxu1 %v1438_v6  ;;  %v1416_v8 = vld [vmem:[%s2104_s0 + $0xe8] sm:$0xf0]  ;;  %v1413_v9 = vld [vmem:[%s2104_s0 + $0xd4] sm:$0xf]  ;;  %v1144_v10 = vld [vmem:[%s2104_s0 + $0xe4] sm:$0xf0] }
  0x1b   :  { %1493 = vmatpush.bf16.msra.mxu3 %v1438_v6  ;;  %1492 = vmatpush.bf16.msra.mxu2 %v1438_v6  ;;  %v372_v6 = vpack.c.b16 %v317_v0, %v317_v0  ;;  %v1415_v0 = vld [vmem:[%s2104_s0 + $0xe0] sm:$0xf0]  ;;  %v1162_v11 = vld [vmem:[%s2104_s0 + $0xf8] sm:$0xf] }
  0x1e   :  { %678 = vmatpush.bf16.msra.mxu0 %v1437_v7  ;;  %1494 = vmatpush.bf16.msra.mxu1 %v1437_v7 }
  0x1f   :  { %1496 = vmatpush.bf16.msra.mxu3 %v1437_v7  ;;  %1495 = vmatpush.bf16.msra.mxu2 %v1437_v7  ;;  %v1043_v7 = vor.u32 %v1390_v3, %v1042_v2  ;;  %v1127_v3 = vor.u32 %v1408_v61, %v1124_v62 }
  0x21   :  { %679 = vmatmul.bf16.vlgmr.msra.gmra.mxu0 %v1035_v18  ;;  %694 = vmatmul.bf16.vlgmr.msra.gmra.mxu1 %v1095_v19  ;;  %v1047_v18 = vor.u32 %v1388_v12, %v1044_v13  ;;  %v1420_v12 = vld [vmem:[%s2104_s0 + $0x108] sm:$0xf0] }
  0x22   :  { %734 = vmatpush.bf16.msrb.mxu1 %v1452_v14  ;;  %719 = vmatmul.bf16.vlgmr.msra.gmra.mxu3 %v1195_v20  ;;  %v1062_v14 = vld [vmem:[%s2104_s0 + $0x30] sm:$0xf]  ;;  %v1392_v20 = vld [vmem:[%s2104_s0 + $0x2c] sm:$0xf] }
  0x23   :  { %860 = vmatpush.bf16.msrb.mxu3 %v1468_v15  ;;  %927 = vmatpush.bf16.msrb.mxu0 %v1472_v21  ;;  %v1395_v15 = vld [vmem:[%s2104_s0 + $0x40] sm:$0xf0]  ;;  %v1056_v21 = vld [vmem:[%s2104_s0 + $0x3c] sm:$0xf0] }
  0x24   :  { %709 = vmatmul.bf16.vlgmr.msra.gmra.mxu2 %v1155_v22  ;;  %v1063_v19 = vor.u32 %v1395_v15, %v1062_v14  ;;  %v1070_v22 = vld [vmem:[%s2104_s0 + $0x38] sm:$0xf] }
  0x25   :  { %797 = vmatpush.bf16.msrb.mxu2 %v1460_v25  ;;  %v1064_v25 = vld [vmem:[%s2104_s0 + $0x44] sm:$0xf0] }
  0x26   :  { %735 = vmatpush.bf16.msrb.mxu1 %v1451_v23  ;;  %v1396_v23 = vld [vmem:[%s2104_s0 + $0x48] sm:$0xf0] }
  0x27   :  { %861 = vmatpush.bf16.msrb.mxu3 %v1467_v24  ;;  %928 = vmatpush.bf16.msrb.mxu0 %v1471_v26  ;;  %v1393_v24 = vld [vmem:[%s2104_s0 + $0x34] sm:$0xf]  ;;  %v1082_v26 = vld [vmem:[%s2104_s0 + $0x58] sm:$0xf] }
  0x29   :  { %798 = vmatpush.bf16.msrb.mxu2 %v1459_v28  ;;  %v1059_v28 = vor.u32 %v1392_v20, %v1056_v21 }
  0x2a   :  { %736 = vmatpush.bf16.msrb.mxu1 %v1450_v27  ;;  %v1400_v27 = vld [vmem:[%s2104_s0 + $0x68] sm:$0xf0] }
  0x2b   :  { %862 = vmatpush.bf16.msrb.mxu3 %v1466_v29  ;;  %929 = vmatpush.bf16.msrb.mxu0 %v1470_v30  ;;  %v1071_v29 = vor.u32 %v1396_v23, %v1070_v22  ;;  %v1067_v30 = vor.u32 %v1393_v24, %v1064_v25 }
  0x2d   :  { %799 = vmatpush.bf16.msrb.mxu2 %v1458_v32  ;;  %v1397_v32 = vld [vmem:[%s2104_s0 + $0x54] sm:$0xf] }
  0x2e   :  { %737 = vmatpush.bf16.msrb.mxu1 %v1449_v31  ;;  %v1083_v31 = vor.u32 %v1400_v27, %v1082_v26  ;;  %v1417_v26 = vld [vmem:[%s2104_s0 + $0xf4] sm:$0xf]  ;;  %v1156_v27 = vld [vmem:[%s2104_s0 + $0x104] sm:$0xf0] }
  0x2f   :  { %863 = vmatpush.bf16.msrb.mxu3 %v1465_v33  ;;  %930 = vmatpush.bf16.msrb.mxu0 %v1469_v39  ;;  %v1076_v33 = vld [vmem:[%s2104_s0 + $0x64] sm:$0xf0]  ;;  %v1405_v39 = vld [vmem:[%s2104_s0 + $0x90] sm:$0xf0] }
  0x30   :  { %v1079_v40 = vor.u32 %v1397_v32, %v1076_v33  ;;  %v1103_v43 = vor.u32 %v1405_v39, %v1102_v38  ;;  %v1182_v32 = vld [vmem:[%s2104_s0 + $0x120] sm:$0xf]  ;;  %v1425_v33 = vld [vmem:[%s2104_s0 + $0x130] sm:$0xf0] }
  0x31   :  { %800 = vmatpush.bf16.msrb.mxu2 %v1457_v41  ;;  %684 = vmatmul.bf16.gmra.mxu0 %v1055_v46  ;;  %v1091_v41 = vor.u32 %v1401_v35, %v1090_v34  ;;  %v1110_v46 = vld [vmem:[%s2104_s0 + $0x88] sm:$0xf]  ;;  %v1159_v35 = vor.u32 %v1417_v26, %v1156_v27  ;;  %v1204_v26 = vld [vmem:[%s2104_s0 + $0x15c] sm:$0xf0]  ;;  %v1222_v27 = vld [vmem:[%s2104_s0 + $0x170] sm:$0xf] }
  0x32   :  { %738 = vmatpush.bf16.msrb.mxu1 %v1448_v42  ;;  %724 = vmatmul.bf16.gmra.mxu3 %v1215_v48  ;;  %v1087_v42 = vor.u32 %v1398_v36, %v1084_v37  ;;  %v1403_v48 = vld [vmem:[%s2104_s0 + $0x84] sm:$0xf] }
  0x33   :  { %864 = vmatpush.bf16.msrb.mxu3 %v1464_v45  ;;  %699 = vmatmul.bf16.gmra.mxu1 %v1115_v47  ;;  %v1096_v45 = vld [vmem:[%s2104_s0 + $0x8c] sm:$0xf0]  ;;  %v1406_v47 = vld [vmem:[%s2104_s0 + $0x98] sm:$0xf0] }
  0x34   :  { %714 = vmatmul.bf16.gmra.mxu2 %v1175_v49  ;;  %v1104_v49 = vld [vmem:[%s2104_s0 + $0x94] sm:$0xf0] }
  0x35   :  { %801 = vmatpush.bf16.msrb.mxu2 %v1456_v51  ;;  %v1410_v51 = vld [vmem:[%s2104_s0 + $0xb8] sm:$0xf0] }
  0x36   :  { %739 = vmatpush.bf16.msrb.mxu1 %v1447_v50  ;;  %v1122_v50 = vld [vmem:[%s2104_s0 + $0xa8] sm:$0xf] }
  0x37   :  { %865 = vmatpush.bf16.msrb.mxu3 %v1463_v52  ;;  %v1099_v52 = vor.u32 %v1402_v44, %v1096_v45 }
  0x39   :  { %802 = vmatpush.bf16.msrb.mxu2 %v1455_v54  ;;  %v1107_v54 = vor.u32 %v1403_v48, %v1104_v49 }
  0x3a   :  { %740 = vmatpush.bf16.msrb.mxu1 %v1446_v53  ;;  %v1111_v53 = vor.u32 %v1406_v47, %v1110_v46 }
  0x3b   :  { %866 = vmatpush.bf16.msrb.mxu3 %v1462_v55  ;;  %v1123_v55 = vor.u32 %v1410_v51, %v1122_v50 }
  0x3d   :  { %803 = vmatpush.bf16.msrb.mxu2 %v1454_v58  ;;  %v1116_v58 = vld [vmem:[%s2104_s0 + $0xb4] sm:$0xf0] }
  0x3e   :  { %741 = vmatpush.bf16.msrb.mxu1 %v1445_v57  ;;  %v1407_v57 = vld [vmem:[%s2104_s0 + $0xa4] sm:$0xf] }
  0x3f   :  { %867 = vmatpush.bf16.msrb.mxu3 %v1461_v59  ;;  %v1130_v59 = vld [vmem:[%s2104_s0 + $0xb0] sm:$0xf] }
  0x40   :  { %v1131_v2 = vor.u32 %v1411_v60, %v1130_v59  ;;  %v1202_v59 = vld [vmem:[%s2104_s0 + $0x148] sm:$0xf]  ;;  %v1430_v60 = vld [vmem:[%s2104_s0 + $0x158] sm:$0xf0] }
  0x41   :  { %804 = vmatpush.bf16.msrb.mxu2 %v1453_v1  ;;  %689 = vmatmul.bf16.gmra.mxu0 %v1075_v4  ;;  %v1119_v1 = vor.u32 %v1407_v57, %v1116_v58  ;;  %v1143_v4 = vor.u32 %v1415_v0, %v1142_v63  ;;  %v1423_v57 = vld [vmem:[%s2104_s0 + $0x124] sm:$0xf]  ;;  %v1184_v58 = vld [vmem:[%s2104_s0 + $0x134] sm:$0xf0] }
  0x42   :  { %729 = vmatmul.bf16.gmra.mxu3 %v372_v6  ;;  %v1136_v6 = vld [vmem:[%s2104_s0 + $0xdc] sm:$0xf0] }
  0x43   :  { %704 = vmatmul.bf16.gmra.mxu1 %v1135_v5  ;;  %v1412_v5 = vld [vmem:[%s2104_s0 + $0xcc] sm:$0xf] }
  0x44   :  { %805 = vmatmul.bf16.vlgmr.msrb.gmra.mxu2 %v1043_v7  ;;  %v1150_v7 = vld [vmem:[%s2104_s0 + $0xd8] sm:$0xf]  ;;  %v1139_v13 = vor.u32 %v1412_v5, %v1136_v6  ;;  %v1203_v6 = vor.u32 %v1430_v60, %v1202_v59  ;;  %v1436_v60 = vld [vmem:[%s2104_s0 + $0x188] sm:$0xf0] }
  0x45   :  { %v1151_v14 = vor.u32 %v1416_v8, %v1150_v7 }
  0x51   :  { %1376 = vmatmul.msk.bf16.vlgmr.msrb.gmra.mxu0 %vm637_vm0, %v1051_v17  ;;  %v1147_v17 = vor.u32 %v1413_v9, %v1144_v10 }
  0x52   :  { %868 = vmatmul.bf16.vlgmr.msrb.gmra.mxu3 %v1047_v18  ;;  %v1163_v18 = vor.u32 %v1420_v12, %v1162_v11 }
  0x53   :  { %742 = vmatmul.bf16.vlgmr.msrb.gmra.mxu1 %v1039_v16 }
  0x54   :  { %810 = vmatmul.bf16.gmra.mxu2 %v1063_v19  ;;  %v1855_v19 = vld [vmem:[%s2103_s2] ss:$0 sm:$0xff] }
  0x61   :  { %1377 = vmatmul.msk.bf16.gmra.mxu0 %vm637_vm0, %v1071_v29  ;;  %v1421_v29 = vld [vmem:[%s2104_s0 + $0x110] sm:$0xf0] }
  0x62   :  { %873 = vmatmul.bf16.gmra.mxu3 %v1067_v30  ;;  %v1418_v30 = vld [vmem:[%s2104_s0 + $0xfc] sm:$0xf] }
  0x63   :  { %747 = vmatmul.bf16.gmra.mxu1 %v1059_v28  ;;  %v1170_v28 = vld [vmem:[%s2104_s0 + $0x100] sm:$0xf] }
  0x64   :  { %815 = vmatmul.bf16.gmra.mxu2 %v1083_v31  ;;  %v1164_v31 = vld [vmem:[%s2104_s0 + $0x10c] sm:$0xf0]  ;;  %v1171_v36 = vor.u32 %v1421_v29, %v1170_v28  ;;  %v1435_v28 = vld [vmem:[%s2104_s0 + $0x180] sm:$0xf0] }
  0x71   :  { %1378 = vmatmul.msk.bf16.gmra.mxu0 %vm637_vm0, %v1091_v41 }
  0x72   :  { %878 = vmatmul.bf16.gmra.mxu3 %v1087_v42 }
  0x73   :  { %752 = vmatmul.bf16.gmra.mxu1 %v1079_v40  ;;  %v1167_v40 = vor.u32 %v1418_v30, %v1164_v31 }
  0x74   :  { %820 = vmatmul.bf16.gmra.mxu2 %v1103_v43  ;;  %v1183_v43 = vor.u32 %v1425_v33, %v1182_v32 }
  0x81   :  { %1379 = vmatmul.msk.bf16.gmra.mxu0 %vm637_vm0, %v1111_v53  ;;  %v1176_v53 = vld [vmem:[%s2104_s0 + $0x12c] sm:$0xf0] }
  0x82   :  { %883 = vmatmul.bf16.gmra.mxu3 %v1107_v54  ;;  %v1190_v54 = vld [vmem:[%s2104_s0 + $0x128] sm:$0xf] }
  0x83   :  { %757 = vmatmul.bf16.gmra.mxu1 %v1099_v52  ;;  %v1422_v52 = vld [vmem:[%s2104_s0 + $0x11c] sm:$0xf] }
  0x84   :  { %825 = vmatmul.bf16.gmra.mxu2 %v1123_v55  ;;  %v1426_v55 = vld [vmem:[%s2104_s0 + $0x138] sm:$0xf0]  ;;  %v1179_v62 = vor.u32 %v1422_v52, %v1176_v53 }
  0x85   :  { %v1191_v63 = vor.u32 %v1426_v55, %v1190_v54  ;;  %v76_v55 = vld [vmem:[%s2104_s0 + $0x198] sm:$0x11] }
  0x91   :  { %1380 = vmatmul.msk.bf16.gmra.mxu0 %vm637_vm0, %v1131_v2 }
  0x92   :  { %888 = vmatmul.bf16.gmra.mxu3 %v1127_v3  ;;  %v1187_v3 = vor.u32 %v1423_v57, %v1184_v58  ;;  %v1432_v57 = vld [vmem:[%s2104_s0 + $0x16c] sm:$0xf]  ;;  %v1216_v58 = vld [vmem:[%s2104_s0 + $0x17c] sm:$0xf0] }
  0x93   :  { %762 = vmatmul.bf16.gmra.mxu1 %v1119_v1 }
  0x94   :  { %830 = vmatmul.bf16.gmra.mxu2 %v1143_v4 }
  0x9e   :  { %v1847_v15 = vpop.f32.mrf.mxu0  ;;  %v1849_v16 = vpop.f32.mrf.mxu1 }
  0x9f   :  { %v681_v32 = vadd.f32 %v1855_v19, %v1847_v15 }
  0xa1   :  { %1381 = vmatmul.msk.bf16.gmra.mxu0 %vm637_vm0, %v1151_v14  ;;  %v1427_v14 = vld [vmem:[%s2104_s0 + $0x144] sm:$0xf] }
  0xa2   :  { %893 = vmatmul.bf16.gmra.mxu3 %v1147_v17  ;;  %v1196_v17 = vld [vmem:[%s2104_s0 + $0x154] sm:$0xf0] }
  0xa3   :  { %767 = vmatmul.bf16.gmra.mxu1 %v1139_v13  ;;  %v1199_v30 = vor.u32 %v1427_v14, %v1196_v17 }
  0xa4   :  { %835 = vmatmul.bf16.gmra.mxu2 %v1163_v18  ;;  %v1210_v18 = vld [vmem:[%s2104_s0 + $0x150] sm:$0xf] }
  0xa5   :  { %v720_v20 = vpop.f32.mrf.mxu3 }
  0xa6   :  { %v1858_v21 = vadd.f32 %v1855_v19, %v720_v20  ;;  %v1860_v22 = vpop.f32.mrf.mxu0  ;;  %v1862_v23 = vpop.f32.mrf.mxu1  ;;  %v1431_v20 = vld [vmem:[%s2104_s0 + $0x160] sm:$0xf0] }
  0xa7   :  { %v710_v24 = vpop.f32.mrf.mxu2  ;;  %v1211_v31 = vor.u32 %v1431_v20, %v1210_v18 }
  0xa8   :  { %v1865_v25 = vadd.f32 %v1855_v19, %v710_v24  ;;  %v1428_v24 = vld [vmem:[%s2104_s0 + $0x14c] sm:$0xf] }
  0xad   :  { %v722_v34 = vpop.f32.mrf.mxu3 }
  0xae   :  { %v1892_v37 = vadd.f32 %v1855_v19, %v722_v34  ;;  %v1894_v38 = vpop.f32.mrf.mxu0 }
  0xaf   :  { %v712_v42 = vpop.f32.mrf.mxu2 }
  0xb0   :  { %v700_v39 = vpop.f32.mrf.mxu1  ;;  %v1900_v44 = vadd.f32 %v1855_v19, %v712_v42 }
  0xb1   :  { %v1897_v41 = vadd.f32 %v1855_v19, %v700_v39  ;;  %1382 = vmatmul.msk.bf16.gmra.mxu0 %vm637_vm0, %v1171_v36  ;;  %v1223_v39 = vor.u32 %v1435_v28, %v1222_v27 }
  0xb2   :  { %898 = vmatmul.bf16.gmra.mxu3 %v1167_v40 }
  0xb3   :  { %772 = vmatmul.bf16.gmra.mxu1 %v1159_v35  ;;  %v1207_v35 = vor.u32 %v1428_v24, %v1204_v26 }
  0xb4   :  { %840 = vmatmul.bf16.gmra.mxu2 %v1183_v43 }
  0xb5   :  { %v725_v45 = vpop.f32.mrf.mxu3 }
  0xb6   :  { %v1904_v46 = vadd.f32 %v1855_v19, %v725_v45  ;;  %v1906_v47 = vpop.f32.mrf.mxu0  ;;  %v683_v45 = vadd.f32 %v1855_v19, %v1860_v22  ;;  %v1230_v22 = vld [vmem:[%s2104_s0 + $0x178] sm:$0xf] }
  0xb7   :  { %v715_v50 = vpop.f32.mrf.mxu2 }
  0xb8   :  { %v702_v48 = vpop.f32.mrf.mxu1  ;;  %v1912_v51 = vadd.f32 %v1855_v19, %v715_v50 }
  0xb9   :  { %v1909_v49 = vadd.f32 %v1855_v19, %v702_v48 }
  0xbd   :  { %v727_v61 = vpop.f32.mrf.mxu3 }
  0xbe   :  { %v1939_v0 = vadd.f32 %v1855_v19, %v727_v61  ;;  %v1941_v1 = vpop.f32.mrf.mxu0  ;;  %v1433_v61 = vld [vmem:[%s2104_s0 + $0x174] sm:$0xf] }
  0xbf   :  { %v717_v5 = vpop.f32.mrf.mxu2 }
  0xc0   :  { %v705_v2 = vpop.f32.mrf.mxu1  ;;  %v1947_v7 = vadd.f32 %v1855_v19, %v717_v5  ;;  %v1219_v5 = vor.u32 %v1432_v57, %v1216_v58 }
  0xc1   :  { %v1944_v4 = vadd.f32 %v1855_v19, %v705_v2  ;;  %1383 = vmatmul.msk.bf16.gmra.mxu0 %vm637_vm0, %v1191_v63  ;;  %v319_v63 = vunpack.c.l.b16 %v76_v55 }
  0xc2   :  { %903 = vmatmul.bf16.gmra.mxu3 %v1187_v3 }
  0xc3   :  { %777 = vmatmul.bf16.gmra.mxu1 %v1179_v62  ;;  %v1224_v62 = vld [vmem:[%s2104_s0 + $0x184] sm:$0xf0]  ;;  %v374_v20 = vpack.c.b16 %v319_v63, %v319_v63 }
  0xc4   :  { %845 = vmatmul.bf16.gmra.mxu2 %v1203_v6  ;;  %v1231_v6 = vor.u32 %v1436_v60, %v1230_v22  ;;  %v1227_v17 = vor.u32 %v1433_v61, %v1224_v62 }
  0xc5   :  { %v730_v8 = vpop.f32.mrf.mxu3 }
  0xc6   :  { %v1951_v9 = vadd.f32 %v1855_v19, %v730_v8  ;;  %v1953_v10 = vpop.f32.mrf.mxu0  ;;  %v686_v8 = vadd.f32 %v1855_v19, %v1894_v38 }
  0xc7   :  { %v806_v13 = vpop.f32.mrf.mxu2 }
  0xc8   :  { %v707_v11 = vpop.f32.mrf.mxu1 }
  0xc9   :  { %v1956_v12 = vadd.f32 %v1855_v19, %v707_v11 }
  0xcd   :  { %v732_v29 = vpop.f32.mrf.mxu3 }
  0xce   :  { %v932_v34 = vpop.f32.mrf.mxu0  ;;  %v688_v29 = vadd.f32 %v1855_v19, %v1906_v47 }
  0xcf   :  { %v808_v36 = vpop.f32.mrf.mxu2 }
  0xd0   :  { %v743_v33 = vpop.f32.mrf.mxu1 }
  0xd1   :  { %v744_v40 = vadd.f32 %v743_v33, %v681_v32  ;;  %1384 = vmatmul.msk.bf16.gmra.mxu0 %vm637_vm0, %v1211_v31  ;;  %v77_v33 = vld [vmem:[%s2104_s0 + $0x1a0] sm:$0x1] }
  0xd2   :  { %908 = vmatmul.bf16.gmra.mxu3 %v1207_v35 }
  0xd3   :  { %782 = vmatmul.bf16.gmra.mxu1 %v1199_v30  ;;  %v807_v42 = vadd.f32 %v806_v13, %v744_v40  ;;  %v321_v40 = vunpack.c.l.b16 %v77_v33 }
  0xd4   :  { %850 = vmatmul.bf16.gmra.mxu2 %v1223_v39  ;;  %v318_v39 = vunpack.c.h.b16 %v1665_v56 }
  0xd5   :  { %v869_v43 = vpop.f32.mrf.mxu3 }
  0xd6   :  { %v870_v48 = vadd.f32 %v869_v43, %v807_v42  ;;  %v934_v52 = vpop.f32.mrf.mxu0  ;;  %v320_v43 = vunpack.c.h.b16 %v76_v55 }
  0xd7   :  { %v811_v15 = vpop.f32.mrf.mxu2 }
  0xd8   :  { %v745_v50 = vpop.f32.mrf.mxu1  ;;  %v933_v53 = vadd.f32 %v932_v34, %v870_v48  ;;  %v373_v48 = vpack.c.b16 %v318_v39, %v318_v39  ;;  %v375_v57 = vpack.c.b16 %v320_v43, %v320_v43 }
  0xd9   :  { %v746_v54 = vadd.f32 %v745_v50, %v683_v45  ;;  %v376_v50 = vpack.c.b16 %v321_v40, %v321_v40 }
  0xda   :  { %v986_v59 = vmax.f32 %v933_v53, 0.0 }
  0xdb   :  { %v809_v2 = vadd.f32 %v808_v36, %v746_v54 }
  0xdc   :  { %1007 = vst [vmem:[%s2105_s3] sm:$0xff] %v986_v59 }
  0xdd   :  { %v871_v3 = vpop.f32.mrf.mxu3 }
  0xde   :  { %v872_v11 = vadd.f32 %v871_v3, %v809_v2  ;;  %v937_v14 = vpop.f32.mrf.mxu0 }
  0xdf   :  { %v813_v18 = vpop.f32.mrf.mxu2 }
  0xe0   :  { %v748_v13 = vpop.f32.mrf.mxu1  ;;  %v935_v24 = vadd.f32 %v934_v52, %v872_v11  ;;  %v691_v52 = vadd.f32 %v1855_v19, %v1941_v1  ;;  %v693_v1 = vadd.f32 %v1855_v19, %v1953_v10 }
  0xe1   :  { %v749_v26 = vadd.f32 %v748_v13, %v686_v8  ;;  %1385 = vmatmul.msk.bf16.gmra.mxu0 %vm637_vm0, %v1231_v6  ;;  %v696_v13 = vadd.f32 %v1855_v19, %v1849_v16 }
  0xe2   :  { %v987_v27 = vmax.f32 %v935_v24, 0.0  ;;  %913 = vmatmul.bf16.gmra.mxu3 %v1227_v17 }
  0xe3   :  { %787 = vmatmul.bf16.gmra.mxu1 %v1219_v5  ;;  %v812_v28 = vadd.f32 %v811_v15, %v749_v26 }
  0xe4   :  { %855 = vmatmul.bf16.gmra.mxu2 %v374_v20  ;;  %1008 = vst [vmem:[%s2105_s3 + $0x8] sm:$0xff] %v987_v27 }
  0xe5   :  { %v874_v38 = vpop.f32.mrf.mxu3 }
  0xe6   :  { %v875_v30 = vadd.f32 %v874_v38, %v812_v28  ;;  %v939_v32 = vpop.f32.mrf.mxu0  ;;  %v698_v38 = vadd.f32 %v1855_v19, %v1862_v23 }
  0xe7   :  { %v816_v34 = vpop.f32.mrf.mxu2 }
  0xe8   :  { %v750_v31 = vpop.f32.mrf.mxu1  ;;  %v938_v35 = vadd.f32 %v937_v14, %v875_v30 }
  0xe9   :  { %v751_v36 = vadd.f32 %v750_v31, %v688_v29 }
  0xea   :  { %v988_v42 = vmax.f32 %v938_v35, 0.0 }
  0xeb   :  { %v814_v47 = vadd.f32 %v813_v18, %v751_v36 }
  0xec   :  { %1009 = vst [vmem:[%s2105_s3 + $0x10] sm:$0xff] %v988_v42 }
  0xed   :  { %v876_v45 = vpop.f32.mrf.mxu3 }
  0xee   :  { %v877_v15 = vadd.f32 %v876_v45, %v814_v47  ;;  %v942_v54 = vpop.f32.mrf.mxu0 }
  0xef   :  { %v818_v58 = vpop.f32.mrf.mxu2 }
  0xf0   :  { %v753_v53 = vpop.f32.mrf.mxu1  ;;  %v940_v56 = vadd.f32 %v939_v32, %v877_v15 }
  0xf1   :  { %v754_v59 = vadd.f32 %v753_v53, %v691_v52  ;;  %1386 = vmatmul.msk.bf16.gmra.mxu0 %vm637_vm0, %v376_v50 }
  0xf2   :  { %v989_v55 = vmax.f32 %v940_v56, 0.0  ;;  %918 = vmatmul.bf16.gmra.mxu3 %v375_v57 }
  0xf3   :  { %792 = vmatmul.bf16.gmra.mxu1 %v373_v48  ;;  %v817_v22 = vadd.f32 %v816_v34, %v754_v59 }
  0xf4   :  { %1010 = vst [vmem:[%s2105_s3 + $0x18] sm:$0xff] %v989_v55 }
  0xf5   :  { %v879_v60 = vpop.f32.mrf.mxu3 }
  0xf6   :  { %v880_v61 = vadd.f32 %v879_v60, %v817_v22  ;;  %v944_v63 = vpop.f32.mrf.mxu0 }
  0xf7   :  { %v821_v2 = vpop.f32.mrf.mxu2 }
  0xf8   :  { %v755_v62 = vpop.f32.mrf.mxu1  ;;  %v943_v3 = vadd.f32 %v942_v54, %v880_v61 }
  0xf9   :  { %v756_v5 = vadd.f32 %v755_v62, %v693_v1 }
  0xfa   :  { %v990_v6 = vmax.f32 %v943_v3, 0.0 }
  0xfb   :  { %v819_v8 = vadd.f32 %v818_v58, %v756_v5 }
  0xfc   :  { %1011 = vst [vmem:[%s2105_s3 + $0x20] sm:$0xff] %v990_v6 }
  0xfd   :  { %v881_v11 = vpop.f32.mrf.mxu3 }
  0xfe   :  { %v882_v14 = vadd.f32 %v881_v11, %v819_v8  ;;  %v947_v18 = vpop.f32.mrf.mxu0 }
  0xff   :  { %v823_v10 = vpop.f32.mrf.mxu2 }
 0x100   :  { %v758_v17 = vpop.f32.mrf.mxu1  ;;  %v945_v20 = vadd.f32 %v944_v63, %v882_v14 }
 0x101   :  { %v759_v24 = vadd.f32 %v758_v17, %v696_v13 }
 0x102   :  { %v991_v26 = vmax.f32 %v945_v20, 0.0 }
 0x103   :  { %v822_v27 = vadd.f32 %v821_v2, %v759_v24 }
 0x104   :  { %1012 = vst [vmem:[%s2105_s3 + $0x28] sm:$0xff] %v991_v26 }
 0x105   :  { %v884_v28 = vpop.f32.mrf.mxu3 }
 0x106   :  { %v885_v29 = vadd.f32 %v884_v28, %v822_v27  ;;  %v949_v31 = vpop.f32.mrf.mxu0 }
 0x107   :  { %v826_v16 = vpop.f32.mrf.mxu2 }
 0x108   :  { %v760_v30 = vpop.f32.mrf.mxu1  ;;  %v948_v32 = vadd.f32 %v947_v18, %v885_v29 }
 0x109   :  { %v761_v33 = vadd.f32 %v760_v30, %v698_v38 }
 0x10a   :  { %v992_v34 = vmax.f32 %v948_v32, 0.0 }
 0x10b   :  { %v824_v35 = vadd.f32 %v823_v10, %v761_v33 }
 0x10c   :  { %1013 = vst [vmem:[%s2105_s3 + $0x30] sm:$0xff] %v992_v34 }
 0x10d   :  { %v886_v36 = vpop.f32.mrf.mxu3 }
 0x10e   :  { %v887_v39 = vadd.f32 %v886_v36, %v824_v35  ;;  %v952_v42 = vpop.f32.mrf.mxu0 }
 0x10f   :  { %v828_v43 = vpop.f32.mrf.mxu2 }
 0x110   :  { %v763_v40 = vpop.f32.mrf.mxu1  ;;  %v950_v47 = vadd.f32 %v949_v31, %v887_v39 }
 0x111   :  { %v764_v19 = vadd.f32 %v763_v40, %v1897_v41 }
 0x112   :  { %v993_v23 = vmax.f32 %v950_v47, 0.0 }
 0x113   :  { %v827_v45 = vadd.f32 %v826_v16, %v764_v19 }
 0x114   :  { %1014 = vst [vmem:[%s2105_s3 + $0x38] sm:$0xff] %v993_v23 }
 0x115   :  { %v889_v48 = vpop.f32.mrf.mxu3 }
 0x116   :  { %v890_v50 = vadd.f32 %v889_v48, %v827_v45  ;;  %v954_v15 = vpop.f32.mrf.mxu0 }
 0x117   :  { %v831_v53 = vpop.f32.mrf.mxu2 }
 0x118   :  { %v765_v52 = vpop.f32.mrf.mxu1  ;;  %v953_v54 = vadd.f32 %v952_v42, %v890_v50 }
 0x119   :  { %v766_v57 = vadd.f32 %v765_v52, %v1909_v49 }
 0x11a   :  { %v994_v58 = vmax.f32 %v953_v54, 0.0 }
 0x11b   :  { %v829_v41 = vadd.f32 %v828_v43, %v766_v57 }
 0x11c   :  { %1015 = vst [vmem:[%s2105_s3 + $0x40] sm:$0xff] %v994_v58 }
 0x11d   :  { %v891_v56 = vpop.f32.mrf.mxu3 }
 0x11e   :  { %v892_v59 = vadd.f32 %v891_v56, %v829_v41  ;;  %v957_v22 = vpop.f32.mrf.mxu0 }
 0x11f   :  { %v833_v60 = vpop.f32.mrf.mxu2 }
 0x120   :  { %v768_v55 = vpop.f32.mrf.mxu1  ;;  %v955_v1 = vadd.f32 %v954_v15, %v892_v59 }
 0x121   :  { %v769_v61 = vadd.f32 %v768_v55, %v1944_v4 }
 0x122   :  { %v995_v62 = vmax.f32 %v955_v1, 0.0 }
 0x123   :  { %v832_v49 = vadd.f32 %v831_v53, %v769_v61 }
 0x124   :  { %1016 = vst [vmem:[%s2105_s3 + $0x48] sm:$0xff] %v995_v62 }
 0x125   :  { %v894_v63 = vpop.f32.mrf.mxu3 }
 0x126   :  { %v895_v2 = vadd.f32 %v894_v63, %v832_v49  ;;  %v959_v5 = vpop.f32.mrf.mxu0 }
 0x127   :  { %v836_v6 = vpop.f32.mrf.mxu2 }
 0x128   :  { %v770_v3 = vpop.f32.mrf.mxu1  ;;  %v958_v8 = vadd.f32 %v957_v22, %v895_v2 }
 0x129   :  { %v771_v11 = vadd.f32 %v770_v3, %v1956_v12 }
 0x12a   :  { %v996_v13 = vmax.f32 %v958_v8, 0.0 }
 0x12b   :  { %v834_v4 = vadd.f32 %v833_v60, %v771_v11 }
 0x12c   :  { %1017 = vst [vmem:[%s2105_s3 + $0x50] sm:$0xff] %v996_v13 }
 0x12d   :  { %v896_v14 = vpop.f32.mrf.mxu3 }
 0x12e   :  { %v897_v17 = vadd.f32 %v896_v14, %v834_v4  ;;  %v962_v10 = vpop.f32.mrf.mxu0 }
 0x12f   :  { %v838_v20 = vpop.f32.mrf.mxu2 }
 0x130   :  { %v773_v18 = vpop.f32.mrf.mxu1  ;;  %v960_v24 = vadd.f32 %v959_v5, %v897_v17 }
 0x131   :  { %v774_v26 = vadd.f32 %v773_v18, %v1865_v25 }
 0x132   :  { %v997_v27 = vmax.f32 %v960_v24, 0.0 }
 0x133   :  { %v837_v12 = vadd.f32 %v836_v6, %v774_v26 }
 0x134   :  { %1018 = vst [vmem:[%s2105_s3 + $0x58] sm:$0xff] %v997_v27 }
 0x135   :  { %v899_v28 = vpop.f32.mrf.mxu3 }
 0x136   :  { %v900_v38 = vadd.f32 %v899_v28, %v837_v12  ;;  %v964_v30 = vpop.f32.mrf.mxu0 }
 0x137   :  { %v841_v31 = vpop.f32.mrf.mxu2 }
 0x138   :  { %v775_v29 = vpop.f32.mrf.mxu1  ;;  %v963_v16 = vadd.f32 %v962_v10, %v900_v38 }
 0x139   :  { %v776_v32 = vadd.f32 %v775_v29, %v1900_v44 }
 0x13a   :  { %v998_v33 = vmax.f32 %v963_v16, 0.0 }
 0x13b   :  { %v839_v25 = vadd.f32 %v838_v20, %v776_v32 }
 0x13c   :  { %1019 = vst [vmem:[%s2105_s3 + $0x60] sm:$0xff] %v998_v33 }
 0x13d   :  { %v901_v34 = vpop.f32.mrf.mxu3 }
 0x13e   :  { %v902_v35 = vadd.f32 %v901_v34, %v839_v25  ;;  %v967_v39 = vpop.f32.mrf.mxu0 }
 0x13f   :  { %v843_v40 = vpop.f32.mrf.mxu2 }
 0x140   :  { %v778_v36 = vpop.f32.mrf.mxu1  ;;  %v965_v42 = vadd.f32 %v964_v30, %v902_v35 }
 0x141   :  { %v779_v43 = vadd.f32 %v778_v36, %v1912_v51 }
 0x142   :  { %v999_v47 = vmax.f32 %v965_v42, 0.0 }
 0x143   :  { %v842_v44 = vadd.f32 %v841_v31, %v779_v43 }
 0x144   :  { %1020 = vst [vmem:[%s2105_s3 + $0x68] sm:$0xff] %v999_v47 }
 0x145   :  { %v904_v19 = vpop.f32.mrf.mxu3 }
 0x146   :  { %v905_v23 = vadd.f32 %v904_v19, %v842_v44  ;;  %v969_v48 = vpop.f32.mrf.mxu0 }
 0x147   :  { %v846_v50 = vpop.f32.mrf.mxu2 }
 0x148   :  { %v780_v45 = vpop.f32.mrf.mxu1  ;;  %v968_v52 = vadd.f32 %v967_v39, %v905_v23 }
 0x149   :  { %v781_v15 = vadd.f32 %v780_v45, %v1947_v7 }
 0x14a   :  { %v1000_v53 = vmax.f32 %v968_v52, 0.0 }
 0x14b   :  { %v844_v51 = vadd.f32 %v843_v40, %v781_v15 }
 0x14c   :  { %1021 = vst [vmem:[%s2105_s3 + $0x70] sm:$0xff] %v1000_v53 }
 0x14d   :  { %v906_v54 = vpop.f32.mrf.mxu3 }
 0x14e   :  { %v907_v57 = vadd.f32 %v906_v54, %v844_v51  ;;  %v972_v41 = vpop.f32.mrf.mxu0 }
 0x14f   :  { %v848_v56 = vpop.f32.mrf.mxu2 }
 0x150   :  { %v783_v58 = vpop.f32.mrf.mxu1  ;;  %v970_v59 = vadd.f32 %v969_v48, %v907_v57 }
 0x151   :  { %v784_v55 = vadd.f32 %v783_v58, %v1858_v21 }
 0x152   :  { %v1001_v22 = vmax.f32 %v970_v59, 0.0 }
 0x153   :  { %v847_v7 = vadd.f32 %v846_v50, %v784_v55 }
 0x154   :  { %1022 = vst [vmem:[%s2105_s3 + $0x78] sm:$0xff] %v1001_v22 }
 0x155   :  { %v909_v60 = vpop.f32.mrf.mxu3 }
 0x156   :  { %v910_v1 = vadd.f32 %v909_v60, %v847_v7  ;;  %v974_v62 = vpop.f32.mrf.mxu0 }
 0x157   :  { %v851_v49 = vpop.f32.mrf.mxu2 }
 0x158   :  { %v785_v61 = vpop.f32.mrf.mxu1  ;;  %v973_v63 = vadd.f32 %v972_v41, %v910_v1 }
 0x159   :  { %v786_v2 = vadd.f32 %v785_v61, %v1892_v37 }
 0x15a   :  { %v1002_v3 = vmax.f32 %v973_v63, 0.0 }
 0x15b   :  { %v849_v21 = vadd.f32 %v848_v56, %v786_v2 }
 0x15c   :  { %1023 = vst [vmem:[%s2105_s3 + $0x80] sm:$0xff] %v1002_v3 }
 0x15d   :  { %v911_v5 = vpop.f32.mrf.mxu3 }
 0x15e   :  { %v912_v6 = vadd.f32 %v911_v5, %v849_v21  ;;  %v977_v11 = vpop.f32.mrf.mxu0 }
 0x15f   :  { %v853_v13 = vpop.f32.mrf.mxu2 }
 0x160   :  { %v788_v8 = vpop.f32.mrf.mxu1  ;;  %v975_v4 = vadd.f32 %v974_v62, %v912_v6 }
 0x161   :  { %v789_v14 = vadd.f32 %v788_v8, %v1904_v46 }
 0x162   :  { %v1003_v17 = vmax.f32 %v975_v4, 0.0 }
 0x163   :  { %v852_v37 = vadd.f32 %v851_v49, %v789_v14 }
 0x164   :  { %1024 = vst [vmem:[%s2105_s3 + $0x88] sm:$0xff] %v1003_v17 }
 0x165   :  { %v914_v18 = vpop.f32.mrf.mxu3 }
 0x166   :  { %v915_v10 = vadd.f32 %v914_v18, %v852_v37  ;;  %v979_v24 = vpop.f32.mrf.mxu0 }
 0x167   :  { %v856_v26 = vpop.f32.mrf.mxu2 }
 0x168   :  { %v790_v20 = vpop.f32.mrf.mxu1  ;;  %v978_v27 = vadd.f32 %v977_v11, %v915_v10 }
 0x169   :  { %v791_v12 = vadd.f32 %v790_v20, %v1939_v0 }
 0x16a   :  { %v1004_v28 = vmax.f32 %v978_v27, 0.0 }
 0x16b   :  { %v854_v46 = vadd.f32 %v853_v13, %v791_v12 }
 0x16c   :  { %1025 = vst [vmem:[%s2105_s3 + $0x90] sm:$0xff] %v1004_v28 }
 0x16d   :  { %v916_v38 = vpop.f32.mrf.mxu3 }
 0x16e   :  { %v917_v29 = vadd.f32 %v916_v38, %v854_v46  ;;  %v982_v31 = vpop.f32.mrf.mxu0 }
 0x16f   :  { %v858_v16 = vpop.f32.mrf.mxu2 }
 0x170   :  { %v793_v30 = vpop.f32.mrf.mxu1  ;;  %v980_v32 = vadd.f32 %v979_v24, %v917_v29 }
 0x171   :  { %v794_v33 = vadd.f32 %v793_v30, %v1951_v9 }
 0x172   :  { %v1005_v25 = vmax.f32 %v980_v32, 0.0 }
 0x173   :  { %v857_v0 = vadd.f32 %v856_v26, %v794_v33 }
 0x174   :  { %1026 = vst [vmem:[%s2105_s3 + $0x98] sm:$0xff] %v1005_v25 }
 0x175   :  { %v919_v34 = vpop.f32.mrf.mxu3 }
 0x176   :  { %v920_v35 = vadd.f32 %v919_v34, %v857_v0  ;;  %v984_v39 = vpop.f32.mrf.mxu0 }
 0x178   :  { %v795_v36 = vpop.f32.mrf.mxu1  ;;  %v983_v40 = vadd.f32 %v982_v31, %v920_v35 }
 0x17a   :  { %v1006_v42 = vmax.f32 %v983_v40, 0.0 }
 0x17c   :  { %1027 = vst [vmem:[%s2105_s3 + $0xa0] sm:$0x3] %v1006_v42 }
 0x17d   :  { %v921_v43 = vpop.f32.mrf.mxu3 }

// kernel: deformed_conv_model_forward.13
= control target key start
LH: loop header
LB: loop body
LE: loop exit
PB: predicated region body
PF: predicated region fallthrough
CT: control target
= control target key end

     0   :  { %s2034_s1 = inlined_call_operand.vmem [shape: bf16[1152,128], index: 1, kind: input, shape index: {}]   ;;  %s2035_s2 = inlined_call_operand.vmem [shape: f32[1,128], index: 2, kind: input, shape index: {}]   ;;  %s2036_s0 = inlined_call_operand.vmem [shape: bf16[50,1152], index: 0, kind: input, shape index: {}]   ;;  %s2037_s3 = inlined_call_operand.vmem [shape: f32[50,128], index: 3, kind: output, shape index: {}]  }
   0x1   :  { %v1492_v0 = vld [vmem:[%s2034_s1 + $0x38] sm:$0xff]  ;;  %v1491_v2 = vld [vmem:[%s2034_s1 + $0x30] sm:$0xff]  ;;  %v1490_v6 = vld [vmem:[%s2034_s1 + $0x28] sm:$0xff] }
   0x2   :  { %v1508_v1 = vld [vmem:[%s2034_s1 + $0xb8] sm:$0xff]  ;;  %1557 = vmatpush.bf16.msra.mxu1 %v1492_v0  ;;  %v1507_v3 = vld [vmem:[%s2034_s1 + $0xb0] sm:$0xff]  ;;  %799 = vmatpush.bf16.msra.mxu0 %v1492_v0  ;;  %v1506_v7 = vld [vmem:[%s2034_s1 + $0xa8] sm:$0xff] }
   0x3   :  { %855 = vmatpush.bf16.msra.mxu2 %v1508_v1  ;;  %v1516_v4 = vld [vmem:[%s2034_s1 + $0xf8] sm:$0xff]  ;;  %v1515_v5 = vld [vmem:[%s2034_s1 + $0xf0] sm:$0xff]  ;;  %v1514_v8 = vld [vmem:[%s2034_s1 + $0xe8] sm:$0xff] }
   0x4   :  { %883 = vmatpush.bf16.msra.mxu3 %v1516_v4  ;;  %v1489_v9 = vld [vmem:[%s2034_s1 + $0x20] sm:$0xff]  ;;  %v1488_v12 = vld [vmem:[%s2034_s1 + $0x18] sm:$0xff]  ;;  %v1487_v15 = vld [vmem:[%s2034_s1 + $0x10] sm:$0xff] }
   0x5   :  { %v1505_v10 = vld [vmem:[%s2034_s1 + $0xa0] sm:$0xff]  ;;  %v1504_v13 = vld [vmem:[%s2034_s1 + $0x98] sm:$0xff]  ;;  %v1503_v16 = vld [vmem:[%s2034_s1 + $0x90] sm:$0xff] }
   0x6   :  { %1558 = vmatpush.bf16.msra.mxu1 %v1491_v2  ;;  %800 = vmatpush.bf16.msra.mxu0 %v1491_v2  ;;  %v1513_v11 = vld [vmem:[%s2034_s1 + $0xe0] sm:$0xff]  ;;  %v1512_v14 = vld [vmem:[%s2034_s1 + $0xd8] sm:$0xff]  ;;  %v1511_v17 = vld [vmem:[%s2034_s1 + $0xd0] sm:$0xff] }
   0x7   :  { %856 = vmatpush.bf16.msra.mxu2 %v1507_v3  ;;  %v1486_v18 = vld [vmem:[%s2034_s1 + $0x8] sm:$0xff]  ;;  %v1485_v20 = vld [vmem:[%s2034_s1] sm:$0xff]  ;;  %v1136_v21 = vld [vmem:[%s2036_s0 + $0x90] sm:$0xf] }
   0x8   :  { %884 = vmatpush.bf16.msra.mxu3 %v1515_v5  ;;  %v1502_v19 = vld [vmem:[%s2034_s1 + $0x88] sm:$0xff]  ;;  %v1480_v22 = vld [vmem:[%s2036_s0 + $0xb0] sm:$0xf0]  ;;  %v1501_v24 = vld [vmem:[%s2034_s1 + $0x80] sm:$0xff] }
   0x9   :  { %v1510_v23 = vld [vmem:[%s2034_s1 + $0xc8] sm:$0xff]  ;;  %v1500_v27 = vld [vmem:[%s2034_s1 + $0x78] sm:$0xff]  ;;  %v1064_v28 = vld [vmem:[%s2036_s0] sm:$0xf]  ;;  %v1137_v32 = vor.u32 %v1480_v22, %v1136_v21 }
   0xa   :  { %1559 = vmatpush.bf16.msra.mxu1 %v1490_v6  ;;  %801 = vmatpush.bf16.msra.mxu0 %v1490_v6  ;;  %v1072_v25 = vld [vmem:[%s2036_s0 + $0x8] sm:$0xf]  ;;  %v1463_v26 = vld [vmem:[%s2036_s0 + $0x28] sm:$0xf0]  ;;  %v1462_v29 = vld [vmem:[%s2036_s0 + $0x20] sm:$0xf0] }
   0xb   :  { %857 = vmatpush.bf16.msra.mxu2 %v1506_v7  ;;  %v1524_v30 = vld [vmem:[%s2034_s1 + $0x138] sm:$0xff]  ;;  %v1073_v33 = vor.u32 %v1463_v26, %v1072_v25  ;;  %v1065_v34 = vor.u32 %v1462_v29, %v1064_v28  ;;  %v1509_v35 = vld [vmem:[%s2034_s1 + $0xc0] sm:$0xff]  ;;  %v1459_v36 = vld [vmem:[%s2036_s0 + $0xc] sm:$0xf] }
   0xc   :  { %885 = vmatpush.bf16.msra.mxu3 %v1514_v8  ;;  %v1540_v31 = vld [vmem:[%s2034_s1 + $0x1b8] sm:$0xff]  ;;  %v1074_v37 = vld [vmem:[%s2036_s0 + $0x2c] sm:$0xf0]  ;;  %v1498_v43 = vld [vmem:[%s2034_s1 + $0x68] sm:$0xff] }
   0xd   :  { %v1499_v38 = vld [vmem:[%s2034_s1 + $0x70] sm:$0xff]  ;;  %v1548_v39 = vld [vmem:[%s2034_s1 + $0x1f8] sm:$0xff]  ;;  %v1077_v42 = vor.u32 %v1459_v36, %v1074_v37  ;;  %v1522_v45 = vld [vmem:[%s2034_s1 + $0x128] sm:$0xff] }
   0xe   :  { %1560 = vmatpush.bf16.msra.mxu1 %v1489_v9  ;;  %802 = vmatpush.bf16.msra.mxu0 %v1489_v9  ;;  %v1523_v40 = vld [vmem:[%s2034_s1 + $0x130] sm:$0xff]  ;;  %v1538_v46 = vld [vmem:[%s2034_s1 + $0x1a8] sm:$0xff]  ;;  %v1726_v47 = vld [vmem:[%s2036_s0 + $0xd8] sm:$0x11] }
   0xf   :  { %858 = vmatpush.bf16.msra.mxu2 %v1505_v10  ;;  %v1539_v41 = vld [vmem:[%s2034_s1 + $0x1b0] sm:$0xff]  ;;  %v1497_v48 = vld [vmem:[%s2034_s1 + $0x60] sm:$0xff]  ;;  %v1546_v49 = vld [vmem:[%s2034_s1 + $0x1e8] sm:$0xff]  ;;  %v286_v52 = vunpack.c.l.b16 %v1726_v47 }
  0x10   :  { %886 = vmatpush.bf16.msra.mxu3 %v1513_v11  ;;  %v1547_v44 = vld [vmem:[%s2034_s1 + $0x1f0] sm:$0xff]  ;;  %v1521_v50 = vld [vmem:[%s2034_s1 + $0x120] sm:$0xff]  ;;  %v1496_v55 = vld [vmem:[%s2034_s1 + $0x58] sm:$0xff] }
  0x11   :  { %v1537_v51 = vld [vmem:[%s2034_s1 + $0x1a0] sm:$0xff]  ;;  %v1108_v53 = vld [vmem:[%s2036_s0 + $0x50] sm:$0xf]  ;;  %v1472_v54 = vld [vmem:[%s2036_s0 + $0x70] sm:$0xf0]  ;;  %v322_v60 = vpack.c.b16 %v286_v52, %v286_v52 }
  0x12   :  { %1561 = vmatpush.bf16.msra.mxu1 %v1488_v12  ;;  %803 = vmatpush.bf16.msra.mxu0 %v1488_v12  ;;  %v1100_v56 = vld [vmem:[%s2036_s0 + $0x48] sm:$0xf]  ;;  %v1471_v57 = vld [vmem:[%s2036_s0 + $0x68] sm:$0xf0]  ;;  %v1520_v58 = vld [vmem:[%s2034_s1 + $0x118] sm:$0xff]  ;;  %v1109_v61 = vor.u32 %v1472_v54, %v1108_v53 }
  0x13   :  { %859 = vmatpush.bf16.msra.mxu2 %v1504_v13  ;;  %v1536_v59 = vld [vmem:[%s2034_s1 + $0x198] sm:$0xff]  ;;  %v1101_v62 = vor.u32 %v1471_v57, %v1100_v56  ;;  %v1468_v63 = vld [vmem:[%s2036_s0 + $0x54] sm:$0xf]  ;;  %v1545_v5 = vld [vmem:[%s2034_s1 + $0x1e0] sm:$0xff] }
  0x14   :  { %887 = vmatpush.bf16.msra.mxu3 %v1512_v14  ;;  %v1110_v0 = vld [vmem:[%s2036_s0 + $0x74] sm:$0xf0]  ;;  %v1495_v1 = vld [vmem:[%s2034_s1 + $0x50] sm:$0xff]  ;;  %v1494_v6 = vld [vmem:[%s2034_s1 + $0x48] sm:$0xff] }
  0x15   :  { %v1519_v2 = vld [vmem:[%s2034_s1 + $0x110] sm:$0xff]  ;;  %v1113_v3 = vor.u32 %v1468_v63, %v1110_v0  ;;  %v1518_v7 = vld [vmem:[%s2034_s1 + $0x108] sm:$0xff]  ;;  %v1544_v9 = vld [vmem:[%s2034_s1 + $0x1d8] sm:$0xff] }
  0x16   :  { %1562 = vmatpush.bf16.msra.mxu1 %v1487_v15  ;;  %804 = vmatpush.bf16.msra.mxu0 %v1487_v15  ;;  %v1535_v4 = vld [vmem:[%s2034_s1 + $0x190] sm:$0xff]  ;;  %v1534_v8 = vld [vmem:[%s2034_s1 + $0x188] sm:$0xff]  ;;  %v1493_v10 = vld [vmem:[%s2034_s1 + $0x40] sm:$0xff] }
  0x17   :  { %860 = vmatpush.bf16.msra.mxu2 %v1503_v16  ;;  %v1532_v11 = vld [vmem:[%s2034_s1 + $0x178] sm:$0xff]  ;;  %v1517_v12 = vld [vmem:[%s2034_s1 + $0x100] sm:$0xff]  ;;  %v1066_v15 = vld [vmem:[%s2036_s0 + $0x24] sm:$0xf0] }
  0x18   :  { %888 = vmatpush.bf16.msra.mxu3 %v1511_v17  ;;  %v1458_v13 = vld [vmem:[%s2036_s0 + $0x4] sm:$0xf]  ;;  %v1556_v14 = vld [vmem:[%s2034_s1 + $0x238] sm:$0xff]  ;;  %v1146_v25 = vld [vmem:[%s2036_s0 + $0xbc] sm:$0xf0] }
  0x19   :  { %v1144_v16 = vld [vmem:[%s2036_s0 + $0x98] sm:$0xf]  ;;  %v1481_v17 = vld [vmem:[%s2036_s0 + $0xb8] sm:$0xf0]  ;;  %v1069_v21 = vor.u32 %v1458_v13, %v1066_v15  ;;  %v1555_v26 = vld [vmem:[%s2034_s1 + $0x230] sm:$0xff] }
  0x1a   :  { %1563 = vmatpush.bf16.msra.mxu1 %v1486_v18  ;;  %805 = vmatpush.bf16.msra.mxu0 %v1486_v18  ;;  %v1080_v18 = vld [vmem:[%s2036_s0 + $0x10] sm:$0xf]  ;;  %v1145_v22 = vor.u32 %v1481_v17, %v1144_v16  ;;  %v1530_v28 = vld [vmem:[%s2034_s1 + $0x168] sm:$0xff]  ;;  %v1528_v36 = vld [vmem:[%s2034_s1 + $0x158] sm:$0xff] }
  0x1b   :  { %861 = vmatpush.bf16.msra.mxu2 %v1502_v19  ;;  %v1464_v19 = vld [vmem:[%s2036_s0 + $0x30] sm:$0xf0]  ;;  %v1525_v53 = vld [vmem:[%s2034_s1 + $0x140] sm:$0xff]  ;;  %v1550_v54 = vld [vmem:[%s2034_s1 + $0x208] sm:$0xff] }
  0x1c   :  { %889 = vmatpush.bf16.msra.mxu3 %v1510_v23  ;;  %v1081_v23 = vor.u32 %v1464_v19, %v1080_v18  ;;  %v1551_v52 = vld [vmem:[%s2034_s1 + $0x210] sm:$0xff]  ;;  %v1138_v56 = vld [vmem:[%s2036_s0 + $0xb4] sm:$0xf0]  ;;  %v1461_v0 = vld [vmem:[%s2036_s0 + $0x1c] sm:$0xf] }
  0x1d   :  { %v1088_v57 = vld [vmem:[%s2036_s0 + $0x18] sm:$0xf]  ;;  %v1160_v16 = vld [vmem:[%s2036_s0 + $0xa8] sm:$0xf]  ;;  %v1483_v17 = vld [vmem:[%s2036_s0 + $0xc8] sm:$0xf0] }
  0x1e   :  { %1564 = vmatpush.bf16.msra.mxu1 %v1485_v20  ;;  %806 = vmatpush.bf16.msra.mxu0 %v1485_v20  ;;  %v1531_v20 = vld [vmem:[%s2034_s1 + $0x170] sm:$0xff]  ;;  %v1082_v15 = vld [vmem:[%s2036_s0 + $0x34] sm:$0xf0]  ;;  %v1096_v18 = vld [vmem:[%s2036_s0 + $0x20] sm:$0xf] }
  0x1f   :  { %862 = vmatpush.bf16.msra.mxu2 %v1501_v24  ;;  %v1477_v24 = vld [vmem:[%s2036_s0 + $0x9c] sm:$0xf]  ;;  %v1466_v19 = vld [vmem:[%s2036_s0 + $0x40] sm:$0xf0] }
  0x20   :  { %890 = vmatpush.bf16.msra.mxu3 %v1509_v35  ;;  %v1149_v29 = vor.u32 %v1477_v24, %v1146_v25  ;;  %v1553_v35 = vld [vmem:[%s2034_s1 + $0x220] sm:$0xff]  ;;  %v1162_v24 = vld [vmem:[%s2036_s0 + $0xcc] sm:$0xf0] }
  0x21   :  { %817 = vmatmul.bf16.vlgmr.msra.gmra.mxu1 %v1137_v32  ;;  %807 = vmatmul.bf16.vlgmr.msra.gmra.mxu0 %v1065_v34  ;;  %v1529_v32 = vld [vmem:[%s2034_s1 + $0x160] sm:$0xff] }
  0x22   :  { %827 = vmatpush.bf16.msrb.mxu1 %v1500_v27  ;;  %911 = vmatpush.bf16.msrb.mxu0 %v1524_v30  ;;  %v1533_v27 = vld [vmem:[%s2034_s1 + $0x180] sm:$0xff]  ;;  %v1543_v30 = vld [vmem:[%s2034_s1 + $0x1d0] sm:$0xff] }
  0x23   :  { %967 = vmatpush.bf16.msrb.mxu2 %v1540_v31  ;;  %891 = vmatmul.bf16.vlgmr.msra.gmra.mxu3 %v1077_v42  ;;  %v1554_v31 = vld [vmem:[%s2034_s1 + $0x228] sm:$0xff]  ;;  %v45_v34 = vld [vmem:[%s2036_s0 + $0xe0] sm:$0x11]  ;;  %v1552_v42 = vld [vmem:[%s2034_s1 + $0x218] sm:$0xff] }
  0x24   :  { %863 = vmatmul.bf16.vlgmr.msra.gmra.mxu2 %v1073_v33  ;;  %995 = vmatpush.bf16.msrb.mxu3 %v1548_v39  ;;  %v1542_v33 = vld [vmem:[%s2034_s1 + $0x1c8] sm:$0xff]  ;;  %v288_v37 = vunpack.c.l.b16 %v45_v34  ;;  %v1102_v39 = vld [vmem:[%s2036_s0 + $0x6c] sm:$0xf0] }
  0x26   :  { %828 = vmatpush.bf16.msrb.mxu1 %v1499_v38  ;;  %912 = vmatpush.bf16.msrb.mxu0 %v1523_v40  ;;  %v1467_v38 = vld [vmem:[%s2036_s0 + $0x4c] sm:$0xf]  ;;  %v1116_v40 = vld [vmem:[%s2036_s0 + $0x58] sm:$0xf] }
  0x27   :  { %968 = vmatpush.bf16.msrb.mxu2 %v1539_v41  ;;  %v1473_v41 = vld [vmem:[%s2036_s0 + $0x78] sm:$0xf0] }
  0x28   :  { %996 = vmatpush.bf16.msrb.mxu3 %v1547_v44  ;;  %v1105_v44 = vor.u32 %v1467_v38, %v1102_v39  ;;  %v1478_v39 = vld [vmem:[%s2036_s0 + $0xa4] sm:$0xf] }
  0x2a   :  { %829 = vmatpush.bf16.msrb.mxu1 %v1498_v43  ;;  %913 = vmatpush.bf16.msrb.mxu0 %v1522_v45  ;;  %v1527_v43 = vld [vmem:[%s2034_s1 + $0x150] sm:$0xff]  ;;  %v324_v45 = vpack.c.b16 %v288_v37, %v288_v37  ;;  %v48_v37 = vld [vmem:[%s2036_s0 + $0xf8] sm:$0x1] }
  0x2b   :  { %969 = vmatpush.bf16.msrb.mxu2 %v1538_v46  ;;  %v289_v46 = vunpack.c.h.b16 %v45_v34  ;;  %v294_v38 = vunpack.c.l.b16 %v48_v37 }
  0x2c   :  { %997 = vmatpush.bf16.msrb.mxu3 %v1546_v49  ;;  %v1541_v49 = vld [vmem:[%s2034_s1 + $0x1c0] sm:$0xff] }
  0x2e   :  { %830 = vmatpush.bf16.msrb.mxu1 %v1497_v48  ;;  %914 = vmatpush.bf16.msrb.mxu0 %v1521_v50  ;;  %v1117_v48 = vor.u32 %v1473_v41, %v1116_v40  ;;  %v325_v50 = vpack.c.b16 %v289_v46, %v289_v46  ;;  %v1154_v40 = vld [vmem:[%s2036_s0 + $0xc4] sm:$0xf0]  ;;  %v1168_v41 = vld [vmem:[%s2036_s0 + $0xb0] sm:$0xf] }
  0x2f   :  { %970 = vmatpush.bf16.msrb.mxu2 %v1537_v51  ;;  %v1526_v51 = vld [vmem:[%s2034_s1 + $0x148] sm:$0xff] }
  0x30   :  { %998 = vmatpush.bf16.msrb.mxu3 %v1545_v5  ;;  %v287_v5 = vunpack.c.h.b16 %v1726_v47  ;;  %v1126_v47 = vld [vmem:[%s2036_s0 + $0x84] sm:$0xf0] }
  0x31   :  { %822 = vmatmul.bf16.gmra.mxu1 %v322_v60  ;;  %812 = vmatmul.bf16.gmra.mxu0 %v1101_v62  ;;  %v1482_v60 = vld [vmem:[%s2036_s0 + $0xc0] sm:$0xf0] }
  0x32   :  { %831 = vmatpush.bf16.msrb.mxu1 %v1496_v55  ;;  %915 = vmatpush.bf16.msrb.mxu0 %v1520_v58  ;;  %v1476_v55 = vld [vmem:[%s2036_s0 + $0x94] sm:$0xf]  ;;  %v1465_v58 = vld [vmem:[%s2036_s0 + $0x38] sm:$0xf0] }
  0x33   :  { %971 = vmatpush.bf16.msrb.mxu2 %v1536_v59  ;;  %896 = vmatmul.bf16.gmra.mxu3 %v1113_v3  ;;  %v1152_v59 = vld [vmem:[%s2036_s0 + $0xa0] sm:$0xf]  ;;  %v1089_v62 = vor.u32 %v1465_v58, %v1088_v57 }
  0x34   :  { %868 = vmatmul.bf16.gmra.mxu2 %v1109_v61  ;;  %999 = vmatpush.bf16.msrb.mxu3 %v1544_v9  ;;  %v1141_v61 = vor.u32 %v1476_v55, %v1138_v56  ;;  %v1153_v63 = vor.u32 %v1482_v60, %v1152_v59  ;;  %v1549_v3 = vld [vmem:[%s2034_s1 + $0x200] sm:$0xff]  ;;  %v323_v9 = vpack.c.b16 %v287_v5, %v287_v5 }
  0x36   :  { %832 = vmatpush.bf16.msrb.mxu1 %v1495_v1  ;;  %916 = vmatpush.bf16.msrb.mxu0 %v1519_v2  ;;  %v1090_v1 = vld [vmem:[%s2036_s0 + $0x3c] sm:$0xf0] }
  0x37   :  { %972 = vmatpush.bf16.msrb.mxu2 %v1535_v4  ;;  %v1093_v2 = vor.u32 %v1461_v0, %v1090_v1  ;;  %v1924_v4 = vld [vmem:[%s2036_s0 + $0xe8] sm:$0x11] }
  0x38   :  { %1000 = vmatpush.bf16.msrb.mxu3 %v1543_v30  ;;  %v1132_v30 = vld [vmem:[%s2036_s0 + $0x68] sm:$0xf] }
  0x3a   :  { %833 = vmatpush.bf16.msrb.mxu1 %v1494_v6  ;;  %917 = vmatpush.bf16.msrb.mxu0 %v1518_v7  ;;  %v1124_v6 = vld [vmem:[%s2036_s0 + $0x60] sm:$0xf]  ;;  %v1474_v7 = vld [vmem:[%s2036_s0 + $0x80] sm:$0xf0] }
  0x3b   :  { %973 = vmatpush.bf16.msrb.mxu2 %v1534_v8  ;;  %v290_v8 = vunpack.c.l.b16 %v1924_v4 }
  0x3c   :  { %1001 = vmatpush.bf16.msrb.mxu3 %v1542_v33 }
  0x3e   :  { %834 = vmatpush.bf16.msrb.mxu1 %v1493_v10  ;;  %918 = vmatpush.bf16.msrb.mxu0 %v1517_v12  ;;  %v1125_v10 = vor.u32 %v1474_v7, %v1124_v6  ;;  %v1470_v12 = vld [vmem:[%s2036_s0 + $0x64] sm:$0xf] }
  0x3f   :  { %974 = vmatpush.bf16.msrb.mxu2 %v1533_v27  ;;  %v1129_v13 = vor.u32 %v1470_v12, %v1126_v47 }
  0x40   :  { %1002 = vmatpush.bf16.msrb.mxu3 %v1541_v49 }
  0x41   :  { %835 = vmatmul.bf16.vlgmr.msrb.gmra.mxu1 %v1069_v21  ;;  %919 = vmatmul.bf16.vlgmr.msrb.gmra.mxu0 %v1081_v23  ;;  %v1161_v21 = vor.u32 %v1483_v17, %v1160_v16  ;;  %v1479_v23 = vld [vmem:[%s2036_s0 + $0xac] sm:$0xf] }
  0x42   :  { %939 = vmatpush.bf16.msra.mxu1 %v1532_v11  ;;  %1023 = vmatpush.bf16.msra.mxu0 %v1556_v14  ;;  %v326_v11 = vpack.c.b16 %v290_v8, %v290_v8  ;;  %v1165_v25 = vor.u32 %v1479_v23, %v1162_v24 }
  0x43   :  { %1565 = vmatpush.bf16.msra.mxu2 %v1556_v14  ;;  %901 = vmatmul.bf16.gmra.mxu3 %v1149_v29  ;;  %v1460_v14 = vld [vmem:[%s2036_s0 + $0x14] sm:$0xf]  ;;  %v1118_v29 = vld [vmem:[%s2036_s0 + $0x7c] sm:$0xf0] }
  0x44   :  { %873 = vmatmul.bf16.gmra.mxu2 %v1145_v22  ;;  %v1097_v22 = vor.u32 %v1466_v19, %v1096_v18 }
  0x46   :  { %940 = vmatpush.bf16.msra.mxu1 %v1531_v20  ;;  %1024 = vmatpush.bf16.msra.mxu0 %v1555_v26  ;;  %v1085_v20 = vor.u32 %v1460_v14, %v1082_v15 }
  0x47   :  { %1566 = vmatpush.bf16.msra.mxu2 %v1555_v26  ;;  %v47_v26 = vld [vmem:[%s2036_s0 + $0xf0] sm:$0x11] }
  0x48   :  { %v292_v27 = vunpack.c.l.b16 %v47_v26  ;;  %v293_v34 = vunpack.c.h.b16 %v47_v26 }
  0x4a   :  { %941 = vmatpush.bf16.msra.mxu1 %v1530_v28  ;;  %1025 = vmatpush.bf16.msra.mxu0 %v1554_v31  ;;  %v1469_v28 = vld [vmem:[%s2036_s0 + $0x5c] sm:$0xf]  ;;  %v328_v33 = vpack.c.b16 %v292_v27, %v292_v27 }
  0x4b   :  { %1567 = vmatpush.bf16.msra.mxu2 %v1554_v31  ;;  %v1475_v31 = vld [vmem:[%s2036_s0 + $0x88] sm:$0xf0] }
  0x4e   :  { %942 = vmatpush.bf16.msra.mxu1 %v1529_v32  ;;  %1026 = vmatpush.bf16.msra.mxu0 %v1553_v35  ;;  %v1121_v32 = vor.u32 %v1469_v28, %v1118_v29 }
  0x4f   :  { %1568 = vmatpush.bf16.msra.mxu2 %v1553_v35  ;;  %v1133_v35 = vor.u32 %v1475_v31, %v1132_v30 }
  0x51   :  { %840 = vmatmul.bf16.gmra.mxu1 %v1105_v44  ;;  %924 = vmatmul.bf16.gmra.mxu0 %v1117_v48  ;;  %v330_v44 = vpack.c.b16 %v294_v38, %v294_v38 }
  0x52   :  { %943 = vmatpush.bf16.msra.mxu1 %v1528_v36  ;;  %1027 = vmatpush.bf16.msra.mxu0 %v1552_v42  ;;  %v329_v36 = vpack.c.b16 %v293_v34, %v293_v34 }
  0x53   :  { %1569 = vmatpush.bf16.msra.mxu2 %v1552_v42  ;;  %906 = vmatmul.bf16.gmra.mxu3 %v325_v50  ;;  %v1484_v42 = vld [vmem:[%s2036_s0 + $0xd0] sm:$0xf0] }
  0x54   :  { %878 = vmatmul.bf16.gmra.mxu2 %v324_v45  ;;  %v1169_v46 = vor.u32 %v1484_v42, %v1168_v41 }
  0x56   :  { %944 = vmatpush.bf16.msra.mxu1 %v1527_v43  ;;  %1028 = vmatpush.bf16.msra.mxu0 %v1551_v52  ;;  %v1157_v43 = vor.u32 %v1478_v39, %v1154_v40 }
  0x57   :  { %1570 = vmatpush.bf16.msra.mxu2 %v1551_v52 }
  0x5a   :  { %945 = vmatpush.bf16.msra.mxu1 %v1526_v51  ;;  %1029 = vmatpush.bf16.msra.mxu0 %v1550_v54 }
  0x5b   :  { %1571 = vmatpush.bf16.msra.mxu2 %v1550_v54 }
  0x5e   :  { %946 = vmatpush.bf16.msra.mxu1 %v1525_v53  ;;  %1030 = vmatpush.bf16.msra.mxu0 %v1549_v3  ;;  %v291_v53 = vunpack.c.h.b16 %v1924_v4 }
  0x5f   :  { %1572 = vmatpush.bf16.msra.mxu2 %v1549_v3 }
  0x60   :  { %v327_v55 = vpack.c.b16 %v291_v53, %v291_v53 }
  0x61   :  { %845 = vmatmul.bf16.gmra.mxu1 %v1141_v61  ;;  %929 = vmatmul.bf16.gmra.mxu0 %v1153_v63  ;;  %v1573_v63 = vld [vmem:[%s2035_s2] ss:$0 sm:$0xff] }
  0x63   :  { %1003 = vmatmul.bf16.vlgmr.msrb.gmra.mxu3 %v1093_v2 }
  0x64   :  { %975 = vmatmul.bf16.vlgmr.msrb.gmra.mxu2 %v1089_v62 }
  0x71   :  { %850 = vmatmul.bf16.gmra.mxu1 %v323_v9  ;;  %934 = vmatmul.bf16.gmra.mxu0 %v326_v11 }
  0x73   :  { %1008 = vmatmul.bf16.gmra.mxu3 %v1129_v13 }
  0x74   :  { %980 = vmatmul.bf16.gmra.mxu2 %v1125_v10 }
  0x81   :  { %947 = vmatmul.bf16.vlgmr.msra.gmra.mxu1 %v1085_v20  ;;  %1031 = vmatmul.bf16.vlgmr.msra.gmra.mxu0 %v1097_v22 }
  0x83   :  { %1013 = vmatmul.bf16.gmra.mxu3 %v1165_v25 }
  0x84   :  { %985 = vmatmul.bf16.gmra.mxu2 %v1161_v21 }
  0x91   :  { %952 = vmatmul.bf16.gmra.mxu1 %v1121_v32  ;;  %1036 = vmatmul.bf16.gmra.mxu0 %v1133_v35 }
  0x93   :  { %1018 = vmatmul.bf16.gmra.mxu3 %v329_v36 }
  0x94   :  { %990 = vmatmul.bf16.gmra.mxu2 %v328_v33 }
  0x9e   :  { %v818_v45 = vpop.f32.mrf.mxu1  ;;  %v808_v48 = vpop.f32.mrf.mxu0 }
  0x9f   :  { %v809_v1 = vadd.f32 %v1573_v63, %v808_v48  ;;  %v819_v32 = vadd.f32 %v1573_v63, %v818_v45 }
  0xa1   :  { %957 = vmatmul.bf16.gmra.mxu1 %v1157_v43  ;;  %1041 = vmatmul.bf16.gmra.mxu0 %v1169_v46 }
  0xa4   :  { %1046 = vmatmul.bf16.vlgmr.msra.gmra.mxu2 %v330_v44 }
  0xa6   :  { %v820_v50 = vpop.f32.mrf.mxu1  ;;  %v810_v51 = vpop.f32.mrf.mxu0 }
  0xa7   :  { %v864_v49 = vpop.f32.mrf.mxu2  ;;  %v892_v52 = vpop.f32.mrf.mxu3  ;;  %v811_v9 = vadd.f32 %v1573_v63, %v810_v51  ;;  %v821_v40 = vadd.f32 %v1573_v63, %v820_v50 }
  0xae   :  { %v823_v56 = vpop.f32.mrf.mxu1  ;;  %v813_v57 = vpop.f32.mrf.mxu0 }
  0xaf   :  { %v866_v54 = vpop.f32.mrf.mxu2  ;;  %v894_v58 = vpop.f32.mrf.mxu3  ;;  %v814_v16 = vadd.f32 %v1573_v63, %v813_v57  ;;  %v824_v51 = vadd.f32 %v1573_v63, %v823_v56 }
  0xb1   :  { %962 = vmatmul.bf16.gmra.mxu1 %v327_v55 }
  0xb6   :  { %v825_v60 = vpop.f32.mrf.mxu1  ;;  %v815_v61 = vpop.f32.mrf.mxu0 }
  0xb7   :  { %v869_v59 = vpop.f32.mrf.mxu2  ;;  %v897_v62 = vpop.f32.mrf.mxu3  ;;  %v816_v24 = vadd.f32 %v1573_v63, %v815_v61 }
  0xbe   :  { %v836_v2 = vpop.f32.mrf.mxu1  ;;  %v920_v5 = vpop.f32.mrf.mxu0 }
  0xbf   :  { %v871_v0 = vpop.f32.mrf.mxu2  ;;  %v837_v3 = vadd.f32 %v836_v2, %v809_v1  ;;  %v899_v4 = vpop.f32.mrf.mxu3 }
  0xc1   :  { %v865_v6 = vadd.f32 %v864_v49, %v837_v3 }
  0xc3   :  { %v893_v7 = vadd.f32 %v892_v52, %v865_v6 }
  0xc6   :  { %v838_v10 = vpop.f32.mrf.mxu1  ;;  %v922_v12 = vpop.f32.mrf.mxu0 }
  0xc7   :  { %v874_v8 = vpop.f32.mrf.mxu2  ;;  %v839_v11 = vadd.f32 %v838_v10, %v811_v9  ;;  %v902_v47 = vpop.f32.mrf.mxu3 }
  0xc9   :  { %v867_v13 = vadd.f32 %v866_v54, %v839_v11 }
  0xcb   :  { %v895_v14 = vadd.f32 %v894_v58, %v867_v13 }
  0xcd   :  { %v923_v6 = vadd.f32 %v922_v12, %v895_v14 }
  0xce   :  { %v841_v17 = vpop.f32.mrf.mxu1  ;;  %v925_v19 = vpop.f32.mrf.mxu0 }
  0xcf   :  { %v876_v15 = vpop.f32.mrf.mxu2  ;;  %v842_v18 = vadd.f32 %v841_v17, %v814_v16  ;;  %v904_v20 = vpop.f32.mrf.mxu3 }
  0xd1   :  { %v870_v21 = vadd.f32 %v869_v59, %v842_v18 }
  0xd3   :  { %v898_v22 = vadd.f32 %v897_v62, %v870_v21  ;;  %v921_v62 = vadd.f32 %v920_v5, %v893_v7 }
  0xd5   :  { %v926_v7 = vadd.f32 %v925_v19, %v898_v22 }
  0xd6   :  { %v843_v25 = vpop.f32.mrf.mxu1  ;;  %v927_v27 = vpop.f32.mrf.mxu0 }
  0xd7   :  { %v879_v23 = vpop.f32.mrf.mxu2  ;;  %v844_v26 = vadd.f32 %v843_v25, %v816_v24  ;;  %v907_v28 = vpop.f32.mrf.mxu3 }
  0xd9   :  { %v872_v29 = vadd.f32 %v871_v0, %v844_v26 }
  0xdb   :  { %v900_v30 = vadd.f32 %v899_v4, %v872_v29 }
  0xdd   :  { %v928_v24 = vadd.f32 %v927_v27, %v900_v30 }
  0xde   :  { %v846_v33 = vpop.f32.mrf.mxu1  ;;  %v1998_v35 = vpop.f32.mrf.mxu0 }
  0xdf   :  { %v881_v31 = vpop.f32.mrf.mxu2  ;;  %v847_v34 = vadd.f32 %v846_v33, %v819_v32  ;;  %v909_v36 = vpop.f32.mrf.mxu3 }
  0xe1   :  { %v875_v37 = vadd.f32 %v874_v8, %v847_v34 }
  0xe3   :  { %v903_v38 = vadd.f32 %v902_v47, %v875_v37 }
  0xe5   :  { %v931_v33 = vadd.f32 %v1998_v35, %v903_v38 }
  0xe6   :  { %v848_v41 = vpop.f32.mrf.mxu1  ;;  %v2000_v43 = vpop.f32.mrf.mxu0 }
  0xe7   :  { %v976_v39 = vpop.f32.mrf.mxu2  ;;  %v849_v42 = vadd.f32 %v848_v41, %v821_v40  ;;  %v1004_v44 = vpop.f32.mrf.mxu3 }
  0xe9   :  { %v877_v46 = vadd.f32 %v876_v15, %v849_v42 }
  0xeb   :  { %v2002_v48 = vadd.f32 %v904_v20, %v877_v46 }
  0xed   :  { %v933_v42 = vadd.f32 %v2000_v43, %v2002_v48 }
  0xee   :  { %v851_v45 = vpop.f32.mrf.mxu1  ;;  %v2004_v53 = vpop.f32.mrf.mxu0 }
  0xef   :  { %v978_v49 = vpop.f32.mrf.mxu2  ;;  %v852_v52 = vadd.f32 %v851_v45, %v824_v51  ;;  %v1006_v54 = vpop.f32.mrf.mxu3 }
  0xf1   :  { %v880_v55 = vadd.f32 %v879_v23, %v852_v52 }
  0xf3   :  { %v2006_v57 = vadd.f32 %v907_v28, %v880_v55 }
  0xf5   :  { %v936_v52 = vadd.f32 %v2004_v53, %v2006_v57 }
  0xf6   :  { %v853_v50 = vpop.f32.mrf.mxu1  ;;  %v937_v59 = vpop.f32.mrf.mxu0 }
  0xf7   :  { %v981_v58 = vpop.f32.mrf.mxu2  ;;  %v1009_v60 = vpop.f32.mrf.mxu3 }
  0xfe   :  { %v948_v0 = vpop.f32.mrf.mxu1  ;;  %v1032_v2 = vpop.f32.mrf.mxu0 }
  0xff   :  { %v983_v61 = vpop.f32.mrf.mxu2  ;;  %v949_v1 = vadd.f32 %v948_v0, %v921_v62  ;;  %v1011_v3 = vpop.f32.mrf.mxu3 }
 0x101   :  { %v977_v4 = vadd.f32 %v976_v39, %v949_v1 }
 0x103   :  { %v1005_v56 = vadd.f32 %v1004_v44, %v977_v4 }
 0x105   :  { %v1033_v8 = vadd.f32 %v1032_v2, %v1005_v56 }
 0x106   :  { %v950_v9 = vpop.f32.mrf.mxu1  ;;  %v1034_v11 = vpop.f32.mrf.mxu0 }
 0x107   :  { %v986_v63 = vpop.f32.mrf.mxu2  ;;  %1051 = vst [vmem:[%s2037_s3] sm:$0xff] %v1033_v8  ;;  %v951_v10 = vadd.f32 %v950_v9, %v923_v6  ;;  %v1014_v47 = vpop.f32.mrf.mxu3 }
 0x109   :  { %v979_v13 = vadd.f32 %v978_v49, %v951_v10 }
 0x10b   :  { %v1007_v15 = vadd.f32 %v1006_v54, %v979_v13 }
 0x10d   :  { %v1035_v16 = vadd.f32 %v1034_v11, %v1007_v15 }
 0x10e   :  { %v953_v17 = vpop.f32.mrf.mxu1  ;;  %v1037_v14 = vpop.f32.mrf.mxu0 }
 0x10f   :  { %v988_v5 = vpop.f32.mrf.mxu2  ;;  %1052 = vst [vmem:[%s2037_s3 + $0x8] sm:$0xff] %v1035_v16  ;;  %v954_v12 = vadd.f32 %v953_v17, %v926_v7  ;;  %v1016_v18 = vpop.f32.mrf.mxu3 }
 0x111   :  { %v982_v20 = vadd.f32 %v981_v58, %v954_v12 }
 0x113   :  { %v1010_v21 = vadd.f32 %v1009_v60, %v982_v20 }
 0x115   :  { %v1038_v25 = vadd.f32 %v1037_v14, %v1010_v21 }
 0x116   :  { %v955_v26 = vpop.f32.mrf.mxu1  ;;  %v1039_v22 = vpop.f32.mrf.mxu0 }
 0x117   :  { %v991_v23 = vpop.f32.mrf.mxu2  ;;  %1053 = vst [vmem:[%s2037_s3 + $0x10] sm:$0xff] %v1038_v25  ;;  %v956_v19 = vadd.f32 %v955_v26, %v928_v24  ;;  %v1019_v28 = vpop.f32.mrf.mxu3 }
 0x119   :  { %v984_v29 = vadd.f32 %v983_v61, %v956_v19 }
 0x11b   :  { %v1012_v31 = vadd.f32 %v1011_v3, %v984_v29 }
 0x11d   :  { %v1040_v34 = vadd.f32 %v1039_v22, %v1012_v31 }
 0x11e   :  { %v958_v36 = vpop.f32.mrf.mxu1  ;;  %v1042_v30 = vpop.f32.mrf.mxu0 }
 0x11f   :  { %v993_v32 = vpop.f32.mrf.mxu2  ;;  %1054 = vst [vmem:[%s2037_s3 + $0x18] sm:$0xff] %v1040_v34  ;;  %v959_v27 = vadd.f32 %v958_v36, %v931_v33  ;;  %v1021_v37 = vpop.f32.mrf.mxu3 }
 0x121   :  { %v987_v39 = vadd.f32 %v986_v63, %v959_v27 }
 0x123   :  { %v1015_v40 = vadd.f32 %v1014_v47, %v987_v39 }
 0x125   :  { %v1043_v44 = vadd.f32 %v1042_v30, %v1015_v40 }
 0x126   :  { %v960_v46 = vpop.f32.mrf.mxu1  ;;  %v1044_v49 = vpop.f32.mrf.mxu0 }
 0x127   :  { %v1047_v41 = vpop.f32.mrf.mxu2  ;;  %1055 = vst [vmem:[%s2037_s3 + $0x20] sm:$0xff] %v1043_v44  ;;  %v961_v35 = vadd.f32 %v960_v46, %v933_v42 }
 0x129   :  { %v989_v38 = vadd.f32 %v988_v5, %v961_v35 }
 0x12b   :  { %v1017_v51 = vadd.f32 %v1016_v18, %v989_v38 }
 0x12d   :  { %v1045_v54 = vadd.f32 %v1044_v49, %v1017_v51 }
 0x12e   :  { %v963_v55 = vpop.f32.mrf.mxu1 }
 0x12f   :  { %v1049_v45 = vpop.f32.mrf.mxu2  ;;  %1056 = vst [vmem:[%s2037_s3 + $0x28] sm:$0xff] %v1045_v54  ;;  %v964_v43 = vadd.f32 %v963_v55, %v936_v52 }
 0x131   :  { %v992_v48 = vadd.f32 %v991_v23, %v964_v43 }
 0x133   :  { %v1020_v58 = vadd.f32 %v1019_v28, %v992_v48 }
 0x135   :  { %v1048_v50 = vadd.f32 %v1047_v41, %v1020_v58 }
 0x136   :  { %v965_v59 = vpop.f32.mrf.mxu1 }
 0x137   :  { %1057 = vst [vmem:[%s2037_s3 + $0x30] sm:$0x3] %v1048_v50 }

// kernel: deformed_conv_model_forward.14
= control target key start
LH: loop header
LB: loop body
LE: loop exit
PB: predicated region body
PF: predicated region fallthrough
CT: control target
= control target key end

     0   :  { %s2047_s1 = inlined_call_operand.vmem [shape: bf16[1152,128], index: 1, kind: input, shape index: {}]   ;;  %s2048_s2 = inlined_call_operand.vmem [shape: f32[1,128], index: 2, kind: input, shape index: {}]   ;;  %s2049_s0 = inlined_call_operand.vmem [shape: bf16[50,1152], index: 0, kind: input, shape index: {}]   ;;  %s2050_s3 = inlined_call_operand.vmem [shape: f32[50,128], index: 3, kind: output, shape index: {}]  }
   0x1   :  { %v1499_v0 = vld [vmem:[%s2047_s1 + $0x38] sm:$0xff]  ;;  %v1498_v2 = vld [vmem:[%s2047_s1 + $0x30] sm:$0xff]  ;;  %v1497_v6 = vld [vmem:[%s2047_s1 + $0x28] sm:$0xff] }
   0x2   :  { %v1515_v1 = vld [vmem:[%s2047_s1 + $0xb8] sm:$0xff]  ;;  %1564 = vmatpush.bf16.msra.mxu1 %v1499_v0  ;;  %v1514_v3 = vld [vmem:[%s2047_s1 + $0xb0] sm:$0xff]  ;;  %799 = vmatpush.bf16.msra.mxu0 %v1499_v0  ;;  %v1513_v7 = vld [vmem:[%s2047_s1 + $0xa8] sm:$0xff] }
   0x3   :  { %855 = vmatpush.bf16.msra.mxu2 %v1515_v1  ;;  %v1523_v4 = vld [vmem:[%s2047_s1 + $0xf8] sm:$0xff]  ;;  %v1522_v5 = vld [vmem:[%s2047_s1 + $0xf0] sm:$0xff]  ;;  %v1521_v8 = vld [vmem:[%s2047_s1 + $0xe8] sm:$0xff] }
   0x4   :  { %883 = vmatpush.bf16.msra.mxu3 %v1523_v4  ;;  %v1496_v9 = vld [vmem:[%s2047_s1 + $0x20] sm:$0xff]  ;;  %v1495_v12 = vld [vmem:[%s2047_s1 + $0x18] sm:$0xff]  ;;  %v1494_v15 = vld [vmem:[%s2047_s1 + $0x10] sm:$0xff] }
   0x5   :  { %v1512_v10 = vld [vmem:[%s2047_s1 + $0xa0] sm:$0xff]  ;;  %v1511_v13 = vld [vmem:[%s2047_s1 + $0x98] sm:$0xff]  ;;  %v1510_v16 = vld [vmem:[%s2047_s1 + $0x90] sm:$0xff] }
   0x6   :  { %1565 = vmatpush.bf16.msra.mxu1 %v1498_v2  ;;  %800 = vmatpush.bf16.msra.mxu0 %v1498_v2  ;;  %v1520_v11 = vld [vmem:[%s2047_s1 + $0xe0] sm:$0xff]  ;;  %v1519_v14 = vld [vmem:[%s2047_s1 + $0xd8] sm:$0xff]  ;;  %v1518_v17 = vld [vmem:[%s2047_s1 + $0xd0] sm:$0xff] }
   0x7   :  { %856 = vmatpush.bf16.msra.mxu2 %v1514_v3  ;;  %v1493_v18 = vld [vmem:[%s2047_s1 + $0x8] sm:$0xff]  ;;  %v1492_v20 = vld [vmem:[%s2047_s1] sm:$0xff]  ;;  %v1143_v21 = vld [vmem:[%s2049_s0 + $0x90] sm:$0xf] }
   0x8   :  { %884 = vmatpush.bf16.msra.mxu3 %v1522_v5  ;;  %v1509_v19 = vld [vmem:[%s2047_s1 + $0x88] sm:$0xff]  ;;  %v1487_v22 = vld [vmem:[%s2049_s0 + $0xb0] sm:$0xf0]  ;;  %v1508_v24 = vld [vmem:[%s2047_s1 + $0x80] sm:$0xff] }
   0x9   :  { %v1517_v23 = vld [vmem:[%s2047_s1 + $0xc8] sm:$0xff]  ;;  %v1507_v27 = vld [vmem:[%s2047_s1 + $0x78] sm:$0xff]  ;;  %v1071_v28 = vld [vmem:[%s2049_s0] sm:$0xf]  ;;  %v1144_v32 = vor.u32 %v1487_v22, %v1143_v21 }
   0xa   :  { %1566 = vmatpush.bf16.msra.mxu1 %v1497_v6  ;;  %801 = vmatpush.bf16.msra.mxu0 %v1497_v6  ;;  %v1079_v25 = vld [vmem:[%s2049_s0 + $0x8] sm:$0xf]  ;;  %v1470_v26 = vld [vmem:[%s2049_s0 + $0x28] sm:$0xf0]  ;;  %v1469_v29 = vld [vmem:[%s2049_s0 + $0x20] sm:$0xf0] }
   0xb   :  { %857 = vmatpush.bf16.msra.mxu2 %v1513_v7  ;;  %v1531_v30 = vld [vmem:[%s2047_s1 + $0x138] sm:$0xff]  ;;  %v1080_v33 = vor.u32 %v1470_v26, %v1079_v25  ;;  %v1072_v34 = vor.u32 %v1469_v29, %v1071_v28  ;;  %v1516_v35 = vld [vmem:[%s2047_s1 + $0xc0] sm:$0xff]  ;;  %v1466_v36 = vld [vmem:[%s2049_s0 + $0xc] sm:$0xf] }
   0xc   :  { %885 = vmatpush.bf16.msra.mxu3 %v1521_v8  ;;  %v1547_v31 = vld [vmem:[%s2047_s1 + $0x1b8] sm:$0xff]  ;;  %v1081_v37 = vld [vmem:[%s2049_s0 + $0x2c] sm:$0xf0]  ;;  %v1505_v43 = vld [vmem:[%s2047_s1 + $0x68] sm:$0xff] }
   0xd   :  { %v1506_v38 = vld [vmem:[%s2047_s1 + $0x70] sm:$0xff]  ;;  %v1555_v39 = vld [vmem:[%s2047_s1 + $0x1f8] sm:$0xff]  ;;  %v1084_v42 = vor.u32 %v1466_v36, %v1081_v37  ;;  %v1529_v45 = vld [vmem:[%s2047_s1 + $0x128] sm:$0xff] }
   0xe   :  { %1567 = vmatpush.bf16.msra.mxu1 %v1496_v9  ;;  %802 = vmatpush.bf16.msra.mxu0 %v1496_v9  ;;  %v1530_v40 = vld [vmem:[%s2047_s1 + $0x130] sm:$0xff]  ;;  %v1545_v46 = vld [vmem:[%s2047_s1 + $0x1a8] sm:$0xff]  ;;  %v1733_v47 = vld [vmem:[%s2049_s0 + $0xd8] sm:$0x11] }
   0xf   :  { %858 = vmatpush.bf16.msra.mxu2 %v1512_v10  ;;  %v1546_v41 = vld [vmem:[%s2047_s1 + $0x1b0] sm:$0xff]  ;;  %v1504_v48 = vld [vmem:[%s2047_s1 + $0x60] sm:$0xff]  ;;  %v1553_v49 = vld [vmem:[%s2047_s1 + $0x1e8] sm:$0xff]  ;;  %v286_v52 = vunpack.c.l.b16 %v1733_v47 }
  0x10   :  { %886 = vmatpush.bf16.msra.mxu3 %v1520_v11  ;;  %v1554_v44 = vld [vmem:[%s2047_s1 + $0x1f0] sm:$0xff]  ;;  %v1528_v50 = vld [vmem:[%s2047_s1 + $0x120] sm:$0xff]  ;;  %v1503_v55 = vld [vmem:[%s2047_s1 + $0x58] sm:$0xff] }
  0x11   :  { %v1544_v51 = vld [vmem:[%s2047_s1 + $0x1a0] sm:$0xff]  ;;  %v1115_v53 = vld [vmem:[%s2049_s0 + $0x50] sm:$0xf]  ;;  %v1479_v54 = vld [vmem:[%s2049_s0 + $0x70] sm:$0xf0]  ;;  %v322_v60 = vpack.c.b16 %v286_v52, %v286_v52 }
  0x12   :  { %1568 = vmatpush.bf16.msra.mxu1 %v1495_v12  ;;  %803 = vmatpush.bf16.msra.mxu0 %v1495_v12  ;;  %v1107_v56 = vld [vmem:[%s2049_s0 + $0x48] sm:$0xf]  ;;  %v1478_v57 = vld [vmem:[%s2049_s0 + $0x68] sm:$0xf0]  ;;  %v1527_v58 = vld [vmem:[%s2047_s1 + $0x118] sm:$0xff]  ;;  %v1116_v61 = vor.u32 %v1479_v54, %v1115_v53 }
  0x13   :  { %859 = vmatpush.bf16.msra.mxu2 %v1511_v13  ;;  %v1543_v59 = vld [vmem:[%s2047_s1 + $0x198] sm:$0xff]  ;;  %v1108_v62 = vor.u32 %v1478_v57, %v1107_v56  ;;  %v1475_v63 = vld [vmem:[%s2049_s0 + $0x54] sm:$0xf]  ;;  %v1552_v5 = vld [vmem:[%s2047_s1 + $0x1e0] sm:$0xff] }
  0x14   :  { %887 = vmatpush.bf16.msra.mxu3 %v1519_v14  ;;  %v1117_v0 = vld [vmem:[%s2049_s0 + $0x74] sm:$0xf0]  ;;  %v1502_v1 = vld [vmem:[%s2047_s1 + $0x50] sm:$0xff]  ;;  %v1501_v6 = vld [vmem:[%s2047_s1 + $0x48] sm:$0xff] }
  0x15   :  { %v1526_v2 = vld [vmem:[%s2047_s1 + $0x110] sm:$0xff]  ;;  %v1120_v3 = vor.u32 %v1475_v63, %v1117_v0  ;;  %v1525_v7 = vld [vmem:[%s2047_s1 + $0x108] sm:$0xff]  ;;  %v1551_v9 = vld [vmem:[%s2047_s1 + $0x1d8] sm:$0xff] }
  0x16   :  { %1569 = vmatpush.bf16.msra.mxu1 %v1494_v15  ;;  %804 = vmatpush.bf16.msra.mxu0 %v1494_v15  ;;  %v1542_v4 = vld [vmem:[%s2047_s1 + $0x190] sm:$0xff]  ;;  %v1541_v8 = vld [vmem:[%s2047_s1 + $0x188] sm:$0xff]  ;;  %v1500_v10 = vld [vmem:[%s2047_s1 + $0x40] sm:$0xff] }
  0x17   :  { %860 = vmatpush.bf16.msra.mxu2 %v1510_v16  ;;  %v1539_v11 = vld [vmem:[%s2047_s1 + $0x178] sm:$0xff]  ;;  %v1524_v12 = vld [vmem:[%s2047_s1 + $0x100] sm:$0xff]  ;;  %v1073_v15 = vld [vmem:[%s2049_s0 + $0x24] sm:$0xf0] }
  0x18   :  { %888 = vmatpush.bf16.msra.mxu3 %v1518_v17  ;;  %v1465_v13 = vld [vmem:[%s2049_s0 + $0x4] sm:$0xf]  ;;  %v1563_v14 = vld [vmem:[%s2047_s1 + $0x238] sm:$0xff]  ;;  %v1153_v25 = vld [vmem:[%s2049_s0 + $0xbc] sm:$0xf0] }
  0x19   :  { %v1151_v16 = vld [vmem:[%s2049_s0 + $0x98] sm:$0xf]  ;;  %v1488_v17 = vld [vmem:[%s2049_s0 + $0xb8] sm:$0xf0]  ;;  %v1076_v21 = vor.u32 %v1465_v13, %v1073_v15  ;;  %v1562_v26 = vld [vmem:[%s2047_s1 + $0x230] sm:$0xff] }
  0x1a   :  { %1570 = vmatpush.bf16.msra.mxu1 %v1493_v18  ;;  %805 = vmatpush.bf16.msra.mxu0 %v1493_v18  ;;  %v1087_v18 = vld [vmem:[%s2049_s0 + $0x10] sm:$0xf]  ;;  %v1152_v22 = vor.u32 %v1488_v17, %v1151_v16  ;;  %v1540_v29 = vld [vmem:[%s2047_s1 + $0x180] sm:$0xff]  ;;  %v1535_v36 = vld [vmem:[%s2047_s1 + $0x158] sm:$0xff] }
  0x1b   :  { %861 = vmatpush.bf16.msra.mxu2 %v1509_v19  ;;  %v1471_v19 = vld [vmem:[%s2049_s0 + $0x30] sm:$0xf0]  ;;  %v1532_v53 = vld [vmem:[%s2047_s1 + $0x140] sm:$0xff]  ;;  %v1557_v54 = vld [vmem:[%s2047_s1 + $0x208] sm:$0xff] }
  0x1c   :  { %889 = vmatpush.bf16.msra.mxu3 %v1517_v23  ;;  %v1088_v23 = vor.u32 %v1471_v19, %v1087_v18  ;;  %v1558_v52 = vld [vmem:[%s2047_s1 + $0x210] sm:$0xff]  ;;  %v1145_v56 = vld [vmem:[%s2049_s0 + $0xb4] sm:$0xf0]  ;;  %v1468_v0 = vld [vmem:[%s2049_s0 + $0x1c] sm:$0xf] }
  0x1d   :  { %v1095_v57 = vld [vmem:[%s2049_s0 + $0x18] sm:$0xf]  ;;  %v1167_v16 = vld [vmem:[%s2049_s0 + $0xa8] sm:$0xf]  ;;  %v1490_v17 = vld [vmem:[%s2049_s0 + $0xc8] sm:$0xf0] }
  0x1e   :  { %1571 = vmatpush.bf16.msra.mxu1 %v1492_v20  ;;  %806 = vmatpush.bf16.msra.mxu0 %v1492_v20  ;;  %v1538_v20 = vld [vmem:[%s2047_s1 + $0x170] sm:$0xff]  ;;  %v1089_v15 = vld [vmem:[%s2049_s0 + $0x34] sm:$0xf0]  ;;  %v1103_v18 = vld [vmem:[%s2049_s0 + $0x20] sm:$0xf] }
  0x1f   :  { %862 = vmatpush.bf16.msra.mxu2 %v1508_v24  ;;  %v1484_v24 = vld [vmem:[%s2049_s0 + $0x9c] sm:$0xf]  ;;  %v1473_v19 = vld [vmem:[%s2049_s0 + $0x40] sm:$0xf0] }
  0x20   :  { %890 = vmatpush.bf16.msra.mxu3 %v1516_v35  ;;  %v1156_v28 = vor.u32 %v1484_v24, %v1153_v25  ;;  %v1560_v35 = vld [vmem:[%s2047_s1 + $0x220] sm:$0xff]  ;;  %v1169_v24 = vld [vmem:[%s2049_s0 + $0xcc] sm:$0xf0] }
  0x21   :  { %817 = vmatmul.bf16.vlgmr.msra.gmra.mxu1 %v1144_v32  ;;  %807 = vmatmul.bf16.vlgmr.msra.gmra.mxu0 %v1072_v34  ;;  %v1536_v32 = vld [vmem:[%s2047_s1 + $0x160] sm:$0xff] }
  0x22   :  { %827 = vmatpush.bf16.msrb.mxu1 %v1507_v27  ;;  %911 = vmatpush.bf16.msrb.mxu0 %v1531_v30  ;;  %v1537_v27 = vld [vmem:[%s2047_s1 + $0x168] sm:$0xff]  ;;  %v1550_v30 = vld [vmem:[%s2047_s1 + $0x1d0] sm:$0xff]  ;;  %v45_v34 = vld [vmem:[%s2049_s0 + $0xe0] sm:$0x11] }
  0x23   :  { %967 = vmatpush.bf16.msrb.mxu2 %v1547_v31  ;;  %891 = vmatmul.bf16.vlgmr.msra.gmra.mxu3 %v1084_v42  ;;  %v1561_v31 = vld [vmem:[%s2047_s1 + $0x228] sm:$0xff]  ;;  %v288_v37 = vunpack.c.l.b16 %v45_v34  ;;  %v1559_v42 = vld [vmem:[%s2047_s1 + $0x218] sm:$0xff] }
  0x24   :  { %863 = vmatmul.bf16.vlgmr.msra.gmra.mxu2 %v1080_v33  ;;  %995 = vmatpush.bf16.msrb.mxu3 %v1555_v39  ;;  %v1549_v33 = vld [vmem:[%s2047_s1 + $0x1c8] sm:$0xff]  ;;  %v1109_v39 = vld [vmem:[%s2049_s0 + $0x6c] sm:$0xf0] }
  0x26   :  { %828 = vmatpush.bf16.msrb.mxu1 %v1506_v38  ;;  %912 = vmatpush.bf16.msrb.mxu0 %v1530_v40  ;;  %v1474_v38 = vld [vmem:[%s2049_s0 + $0x4c] sm:$0xf]  ;;  %v1123_v40 = vld [vmem:[%s2049_s0 + $0x58] sm:$0xf] }
  0x27   :  { %968 = vmatpush.bf16.msrb.mxu2 %v1546_v41  ;;  %v1480_v41 = vld [vmem:[%s2049_s0 + $0x78] sm:$0xf0] }
  0x28   :  { %996 = vmatpush.bf16.msrb.mxu3 %v1554_v44  ;;  %v1112_v44 = vor.u32 %v1474_v38, %v1109_v39  ;;  %v1485_v39 = vld [vmem:[%s2049_s0 + $0xa4] sm:$0xf] }
  0x2a   :  { %829 = vmatpush.bf16.msrb.mxu1 %v1505_v43  ;;  %913 = vmatpush.bf16.msrb.mxu0 %v1529_v45  ;;  %v1534_v43 = vld [vmem:[%s2047_s1 + $0x150] sm:$0xff]  ;;  %v324_v45 = vpack.c.b16 %v288_v37, %v288_v37  ;;  %v48_v37 = vld [vmem:[%s2049_s0 + $0xf8] sm:$0x1] }
  0x2b   :  { %969 = vmatpush.bf16.msrb.mxu2 %v1545_v46  ;;  %v289_v46 = vunpack.c.h.b16 %v45_v34  ;;  %v294_v38 = vunpack.c.l.b16 %v48_v37 }
  0x2c   :  { %997 = vmatpush.bf16.msrb.mxu3 %v1553_v49 }
  0x2d   :  { %v325_v49 = vpack.c.b16 %v289_v46, %v289_v46 }
  0x2e   :  { %830 = vmatpush.bf16.msrb.mxu1 %v1504_v48  ;;  %914 = vmatpush.bf16.msrb.mxu0 %v1528_v50  ;;  %v1124_v48 = vor.u32 %v1480_v41, %v1123_v40  ;;  %v1533_v50 = vld [vmem:[%s2047_s1 + $0x148] sm:$0xff]  ;;  %v1175_v41 = vld [vmem:[%s2049_s0 + $0xb0] sm:$0xf] }
  0x2f   :  { %970 = vmatpush.bf16.msrb.mxu2 %v1544_v51  ;;  %v1548_v51 = vld [vmem:[%s2047_s1 + $0x1c0] sm:$0xff]  ;;  %v1161_v40 = vld [vmem:[%s2049_s0 + $0xc4] sm:$0xf0] }
  0x30   :  { %998 = vmatpush.bf16.msrb.mxu3 %v1552_v5  ;;  %v287_v5 = vunpack.c.h.b16 %v1733_v47  ;;  %v1133_v47 = vld [vmem:[%s2049_s0 + $0x84] sm:$0xf0] }
  0x31   :  { %822 = vmatmul.bf16.gmra.mxu1 %v322_v60  ;;  %812 = vmatmul.bf16.gmra.mxu0 %v1108_v62  ;;  %v1489_v60 = vld [vmem:[%s2049_s0 + $0xc0] sm:$0xf0] }
  0x32   :  { %831 = vmatpush.bf16.msrb.mxu1 %v1503_v55  ;;  %915 = vmatpush.bf16.msrb.mxu0 %v1527_v58  ;;  %v1483_v55 = vld [vmem:[%s2049_s0 + $0x94] sm:$0xf]  ;;  %v1472_v58 = vld [vmem:[%s2049_s0 + $0x38] sm:$0xf0] }
  0x33   :  { %971 = vmatpush.bf16.msrb.mxu2 %v1543_v59  ;;  %896 = vmatmul.bf16.gmra.mxu3 %v1120_v3  ;;  %v1159_v59 = vld [vmem:[%s2049_s0 + $0xa0] sm:$0xf]  ;;  %v1096_v62 = vor.u32 %v1472_v58, %v1095_v57 }
  0x34   :  { %868 = vmatmul.bf16.gmra.mxu2 %v1116_v61  ;;  %999 = vmatpush.bf16.msrb.mxu3 %v1551_v9  ;;  %v1148_v61 = vor.u32 %v1483_v55, %v1145_v56  ;;  %v1160_v63 = vor.u32 %v1489_v60, %v1159_v59  ;;  %v1556_v3 = vld [vmem:[%s2047_s1 + $0x200] sm:$0xff]  ;;  %v323_v9 = vpack.c.b16 %v287_v5, %v287_v5 }
  0x36   :  { %832 = vmatpush.bf16.msrb.mxu1 %v1502_v1  ;;  %916 = vmatpush.bf16.msrb.mxu0 %v1526_v2  ;;  %v1097_v1 = vld [vmem:[%s2049_s0 + $0x3c] sm:$0xf0] }
  0x37   :  { %972 = vmatpush.bf16.msrb.mxu2 %v1542_v4  ;;  %v1100_v2 = vor.u32 %v1468_v0, %v1097_v1  ;;  %v1931_v4 = vld [vmem:[%s2049_s0 + $0xe8] sm:$0x11] }
  0x38   :  { %1000 = vmatpush.bf16.msrb.mxu3 %v1550_v30  ;;  %v1139_v30 = vld [vmem:[%s2049_s0 + $0x68] sm:$0xf] }
  0x3a   :  { %833 = vmatpush.bf16.msrb.mxu1 %v1501_v6  ;;  %917 = vmatpush.bf16.msrb.mxu0 %v1525_v7  ;;  %v1131_v6 = vld [vmem:[%s2049_s0 + $0x60] sm:$0xf]  ;;  %v1481_v7 = vld [vmem:[%s2049_s0 + $0x80] sm:$0xf0] }
  0x3b   :  { %973 = vmatpush.bf16.msrb.mxu2 %v1541_v8  ;;  %v290_v8 = vunpack.c.l.b16 %v1931_v4 }
  0x3c   :  { %1001 = vmatpush.bf16.msrb.mxu3 %v1549_v33 }
  0x3e   :  { %834 = vmatpush.bf16.msrb.mxu1 %v1500_v10  ;;  %918 = vmatpush.bf16.msrb.mxu0 %v1524_v12  ;;  %v1132_v10 = vor.u32 %v1481_v7, %v1131_v6  ;;  %v1477_v12 = vld [vmem:[%s2049_s0 + $0x64] sm:$0xf] }
  0x3f   :  { %974 = vmatpush.bf16.msrb.mxu2 %v1540_v29  ;;  %v1136_v13 = vor.u32 %v1477_v12, %v1133_v47  ;;  %v1125_v29 = vld [vmem:[%s2049_s0 + $0x7c] sm:$0xf0] }
  0x40   :  { %1002 = vmatpush.bf16.msrb.mxu3 %v1548_v51 }
  0x41   :  { %835 = vmatmul.bf16.vlgmr.msrb.gmra.mxu1 %v1076_v21  ;;  %919 = vmatmul.bf16.vlgmr.msrb.gmra.mxu0 %v1088_v23  ;;  %v1168_v21 = vor.u32 %v1490_v17, %v1167_v16  ;;  %v1486_v23 = vld [vmem:[%s2049_s0 + $0xac] sm:$0xf] }
  0x42   :  { %939 = vmatpush.bf16.msra.mxu1 %v1539_v11  ;;  %1023 = vmatpush.bf16.msra.mxu0 %v1563_v14  ;;  %v326_v11 = vpack.c.b16 %v290_v8, %v290_v8  ;;  %v1172_v25 = vor.u32 %v1486_v23, %v1169_v24 }
  0x43   :  { %901 = vmatmul.bf16.gmra.mxu3 %v1156_v28  ;;  %1572 = vmatpush.bf16.msra.mxu2 %v1563_v14  ;;  %v1467_v14 = vld [vmem:[%s2049_s0 + $0x14] sm:$0xf]  ;;  %v1476_v28 = vld [vmem:[%s2049_s0 + $0x5c] sm:$0xf] }
  0x44   :  { %873 = vmatmul.bf16.gmra.mxu2 %v1152_v22  ;;  %v1104_v22 = vor.u32 %v1473_v19, %v1103_v18 }
  0x46   :  { %940 = vmatpush.bf16.msra.mxu1 %v1538_v20  ;;  %1024 = vmatpush.bf16.msra.mxu0 %v1562_v26  ;;  %v1092_v20 = vor.u32 %v1467_v14, %v1089_v15 }
  0x47   :  { %1573 = vmatpush.bf16.msra.mxu2 %v1562_v26  ;;  %v47_v26 = vld [vmem:[%s2049_s0 + $0xf0] sm:$0x11] }
  0x48   :  { %v293_v34 = vunpack.c.h.b16 %v47_v26 }
  0x4a   :  { %941 = vmatpush.bf16.msra.mxu1 %v1537_v27  ;;  %1025 = vmatpush.bf16.msra.mxu0 %v1561_v31  ;;  %v292_v27 = vunpack.c.l.b16 %v47_v26 }
  0x4b   :  { %1574 = vmatpush.bf16.msra.mxu2 %v1561_v31  ;;  %v1482_v31 = vld [vmem:[%s2049_s0 + $0x88] sm:$0xf0] }
  0x4c   :  { %v328_v33 = vpack.c.b16 %v292_v27, %v292_v27 }
  0x4e   :  { %942 = vmatpush.bf16.msra.mxu1 %v1536_v32  ;;  %1026 = vmatpush.bf16.msra.mxu0 %v1560_v35  ;;  %v1128_v32 = vor.u32 %v1476_v28, %v1125_v29 }
  0x4f   :  { %1575 = vmatpush.bf16.msra.mxu2 %v1560_v35  ;;  %v1140_v35 = vor.u32 %v1482_v31, %v1139_v30 }
  0x51   :  { %840 = vmatmul.bf16.gmra.mxu1 %v1112_v44  ;;  %924 = vmatmul.bf16.gmra.mxu0 %v1124_v48  ;;  %v330_v44 = vpack.c.b16 %v294_v38, %v294_v38 }
  0x52   :  { %943 = vmatpush.bf16.msra.mxu1 %v1535_v36  ;;  %1027 = vmatpush.bf16.msra.mxu0 %v1559_v42  ;;  %v329_v36 = vpack.c.b16 %v293_v34, %v293_v34 }
  0x53   :  { %906 = vmatmul.bf16.gmra.mxu3 %v325_v49  ;;  %1576 = vmatpush.bf16.msra.mxu2 %v1559_v42  ;;  %v1491_v42 = vld [vmem:[%s2049_s0 + $0xd0] sm:$0xf0] }
  0x54   :  { %878 = vmatmul.bf16.gmra.mxu2 %v324_v45  ;;  %v1176_v46 = vor.u32 %v1491_v42, %v1175_v41 }
  0x56   :  { %944 = vmatpush.bf16.msra.mxu1 %v1534_v43  ;;  %1028 = vmatpush.bf16.msra.mxu0 %v1558_v52  ;;  %v1164_v43 = vor.u32 %v1485_v39, %v1161_v40 }
  0x57   :  { %1577 = vmatpush.bf16.msra.mxu2 %v1558_v52 }
  0x5a   :  { %945 = vmatpush.bf16.msra.mxu1 %v1533_v50  ;;  %1029 = vmatpush.bf16.msra.mxu0 %v1557_v54 }
  0x5b   :  { %1578 = vmatpush.bf16.msra.mxu2 %v1557_v54 }
  0x5e   :  { %946 = vmatpush.bf16.msra.mxu1 %v1532_v53  ;;  %1030 = vmatpush.bf16.msra.mxu0 %v1556_v3  ;;  %v291_v53 = vunpack.c.h.b16 %v1931_v4 }
  0x5f   :  { %1579 = vmatpush.bf16.msra.mxu2 %v1556_v3 }
  0x60   :  { %v327_v55 = vpack.c.b16 %v291_v53, %v291_v53 }
  0x61   :  { %845 = vmatmul.bf16.gmra.mxu1 %v1148_v61  ;;  %929 = vmatmul.bf16.gmra.mxu0 %v1160_v63  ;;  %v1580_v63 = vld [vmem:[%s2048_s2] ss:$0 sm:$0xff] }
  0x63   :  { %1003 = vmatmul.bf16.vlgmr.msrb.gmra.mxu3 %v1100_v2 }
  0x64   :  { %975 = vmatmul.bf16.vlgmr.msrb.gmra.mxu2 %v1096_v62 }
  0x71   :  { %850 = vmatmul.bf16.gmra.mxu1 %v323_v9  ;;  %934 = vmatmul.bf16.gmra.mxu0 %v326_v11 }
  0x73   :  { %1008 = vmatmul.bf16.gmra.mxu3 %v1136_v13 }
  0x74   :  { %980 = vmatmul.bf16.gmra.mxu2 %v1132_v10 }
  0x81   :  { %947 = vmatmul.bf16.vlgmr.msra.gmra.mxu1 %v1092_v20  ;;  %1031 = vmatmul.bf16.vlgmr.msra.gmra.mxu0 %v1104_v22 }
  0x83   :  { %1013 = vmatmul.bf16.gmra.mxu3 %v1172_v25 }
  0x84   :  { %985 = vmatmul.bf16.gmra.mxu2 %v1168_v21 }
  0x91   :  { %952 = vmatmul.bf16.gmra.mxu1 %v1128_v32  ;;  %1036 = vmatmul.bf16.gmra.mxu0 %v1140_v35 }
  0x93   :  { %1018 = vmatmul.bf16.gmra.mxu3 %v329_v36 }
  0x94   :  { %990 = vmatmul.bf16.gmra.mxu2 %v328_v33 }
  0x9e   :  { %v818_v45 = vpop.f32.mrf.mxu1  ;;  %v808_v48 = vpop.f32.mrf.mxu0 }
  0x9f   :  { %v809_v1 = vadd.f32 %v1580_v63, %v808_v48  ;;  %v819_v32 = vadd.f32 %v1580_v63, %v818_v45 }
  0xa1   :  { %957 = vmatmul.bf16.gmra.mxu1 %v1164_v43  ;;  %1041 = vmatmul.bf16.gmra.mxu0 %v1176_v46 }
  0xa4   :  { %1046 = vmatmul.bf16.vlgmr.msra.gmra.mxu2 %v330_v44 }
  0xa6   :  { %v820_v50 = vpop.f32.mrf.mxu1  ;;  %v810_v51 = vpop.f32.mrf.mxu0 }
  0xa7   :  { %v864_v49 = vpop.f32.mrf.mxu2  ;;  %v892_v52 = vpop.f32.mrf.mxu3  ;;  %v811_v9 = vadd.f32 %v1580_v63, %v810_v51  ;;  %v821_v40 = vadd.f32 %v1580_v63, %v820_v50 }
  0xae   :  { %v823_v56 = vpop.f32.mrf.mxu1  ;;  %v813_v57 = vpop.f32.mrf.mxu0 }
  0xaf   :  { %v866_v54 = vpop.f32.mrf.mxu2  ;;  %v894_v58 = vpop.f32.mrf.mxu3  ;;  %v814_v16 = vadd.f32 %v1580_v63, %v813_v57  ;;  %v824_v45 = vadd.f32 %v1580_v63, %v823_v56 }
  0xb1   :  { %962 = vmatmul.bf16.gmra.mxu1 %v327_v55 }
  0xb6   :  { %v825_v60 = vpop.f32.mrf.mxu1  ;;  %v815_v61 = vpop.f32.mrf.mxu0 }
  0xb7   :  { %v869_v59 = vpop.f32.mrf.mxu2  ;;  %v897_v62 = vpop.f32.mrf.mxu3  ;;  %v816_v24 = vadd.f32 %v1580_v63, %v815_v61 }
  0xbe   :  { %v836_v2 = vpop.f32.mrf.mxu1  ;;  %v920_v5 = vpop.f32.mrf.mxu0 }
  0xbf   :  { %v871_v0 = vpop.f32.mrf.mxu2  ;;  %v837_v3 = vadd.f32 %v836_v2, %v809_v1  ;;  %v899_v4 = vpop.f32.mrf.mxu3 }
  0xc1   :  { %v865_v6 = vadd.f32 %v864_v49, %v837_v3 }
  0xc3   :  { %v893_v7 = vadd.f32 %v892_v52, %v865_v6 }
  0xc6   :  { %v838_v10 = vpop.f32.mrf.mxu1  ;;  %v922_v12 = vpop.f32.mrf.mxu0 }
  0xc7   :  { %v874_v8 = vpop.f32.mrf.mxu2  ;;  %v839_v11 = vadd.f32 %v838_v10, %v811_v9  ;;  %v902_v47 = vpop.f32.mrf.mxu3 }
  0xc9   :  { %v867_v13 = vadd.f32 %v866_v54, %v839_v11 }
  0xcb   :  { %v895_v14 = vadd.f32 %v894_v58, %v867_v13 }
  0xcd   :  { %v923_v6 = vadd.f32 %v922_v12, %v895_v14 }
  0xce   :  { %v841_v17 = vpop.f32.mrf.mxu1  ;;  %v925_v19 = vpop.f32.mrf.mxu0 }
  0xcf   :  { %v876_v15 = vpop.f32.mrf.mxu2  ;;  %v842_v18 = vadd.f32 %v841_v17, %v814_v16  ;;  %v904_v20 = vpop.f32.mrf.mxu3 }
  0xd1   :  { %v870_v21 = vadd.f32 %v869_v59, %v842_v18 }
  0xd3   :  { %v898_v22 = vadd.f32 %v897_v62, %v870_v21  ;;  %v921_v62 = vadd.f32 %v920_v5, %v893_v7 }
  0xd5   :  { %v926_v16 = vadd.f32 %v925_v19, %v898_v22 }
  0xd6   :  { %v843_v25 = vpop.f32.mrf.mxu1  ;;  %v2005_v27 = vpop.f32.mrf.mxu0 }
  0xd7   :  { %v879_v23 = vpop.f32.mrf.mxu2  ;;  %v844_v26 = vadd.f32 %v843_v25, %v816_v24  ;;  %v907_v28 = vpop.f32.mrf.mxu3 }
  0xd9   :  { %v872_v29 = vadd.f32 %v871_v0, %v844_v26 }
  0xdb   :  { %v900_v30 = vadd.f32 %v899_v4, %v872_v29 }
  0xdd   :  { %v928_v26 = vadd.f32 %v2005_v27, %v900_v30 }
  0xde   :  { %v846_v33 = vpop.f32.mrf.mxu1  ;;  %v2007_v35 = vpop.f32.mrf.mxu0 }
  0xdf   :  { %v881_v31 = vpop.f32.mrf.mxu2  ;;  %v847_v34 = vadd.f32 %v846_v33, %v819_v32  ;;  %v909_v36 = vpop.f32.mrf.mxu3 }
  0xe1   :  { %v875_v37 = vadd.f32 %v874_v8, %v847_v34 }
  0xe3   :  { %v2009_v38 = vadd.f32 %v902_v47, %v875_v37 }
  0xe5   :  { %v931_v37 = vadd.f32 %v2007_v35, %v2009_v38 }
  0xe6   :  { %v848_v41 = vpop.f32.mrf.mxu1  ;;  %v2011_v43 = vpop.f32.mrf.mxu0 }
  0xe7   :  { %v976_v39 = vpop.f32.mrf.mxu2  ;;  %v849_v42 = vadd.f32 %v848_v41, %v821_v40  ;;  %v1004_v44 = vpop.f32.mrf.mxu3 }
  0xe9   :  { %v877_v46 = vadd.f32 %v876_v15, %v849_v42 }
  0xeb   :  { %v2013_v48 = vadd.f32 %v904_v20, %v877_v46 }
  0xee   :  { %v851_v51 = vpop.f32.mrf.mxu1  ;;  %v2015_v53 = vpop.f32.mrf.mxu0 }
  0xef   :  { %v978_v49 = vpop.f32.mrf.mxu2  ;;  %v852_v52 = vadd.f32 %v851_v51, %v824_v45  ;;  %v1006_v54 = vpop.f32.mrf.mxu3  ;;  %v933_v45 = vadd.f32 %v2011_v43, %v2013_v48 }
  0xf1   :  { %v880_v55 = vadd.f32 %v879_v23, %v852_v52 }
  0xf3   :  { %v2017_v57 = vadd.f32 %v907_v28, %v880_v55 }
  0xf6   :  { %v853_v50 = vpop.f32.mrf.mxu1  ;;  %v937_v59 = vpop.f32.mrf.mxu0 }
  0xf7   :  { %v981_v58 = vpop.f32.mrf.mxu2  ;;  %v1009_v60 = vpop.f32.mrf.mxu3  ;;  %v936_v59 = vadd.f32 %v2015_v53, %v2017_v57 }
  0xfe   :  { %v948_v0 = vpop.f32.mrf.mxu1  ;;  %v1032_v2 = vpop.f32.mrf.mxu0 }
  0xff   :  { %v983_v61 = vpop.f32.mrf.mxu2  ;;  %v949_v1 = vadd.f32 %v948_v0, %v921_v62  ;;  %v1011_v3 = vpop.f32.mrf.mxu3 }
 0x101   :  { %v977_v4 = vadd.f32 %v976_v39, %v949_v1 }
 0x103   :  { %v1005_v56 = vadd.f32 %v1004_v44, %v977_v4 }
 0x105   :  { %v1033_v8 = vadd.f32 %v1032_v2, %v1005_v56 }
 0x106   :  { %v950_v9 = vpop.f32.mrf.mxu1  ;;  %v1034_v47 = vpop.f32.mrf.mxu0 }
 0x107   :  { %v986_v63 = vpop.f32.mrf.mxu2  ;;  %v1051_v10 = vmax.f32 %v1033_v8, 0.0  ;;  %v951_v11 = vadd.f32 %v950_v9, %v923_v6  ;;  %v1014_v13 = vpop.f32.mrf.mxu3 }
 0x109   :  { %1058 = vst [vmem:[%s2050_s3] sm:$0xff] %v1051_v10  ;;  %v979_v15 = vadd.f32 %v978_v49, %v951_v11 }
 0x10b   :  { %v1007_v5 = vadd.f32 %v1006_v54, %v979_v15 }
 0x10d   :  { %v1035_v17 = vadd.f32 %v1034_v47, %v1007_v5 }
 0x10e   :  { %v953_v18 = vpop.f32.mrf.mxu1  ;;  %v1037_v23 = vpop.f32.mrf.mxu0 }
 0x10f   :  { %v988_v7 = vpop.f32.mrf.mxu2  ;;  %v1052_v20 = vmax.f32 %v1035_v17, 0.0  ;;  %v954_v21 = vadd.f32 %v953_v18, %v926_v16  ;;  %v1016_v12 = vpop.f32.mrf.mxu3 }
 0x111   :  { %1059 = vst [vmem:[%s2050_s3 + $0x8] sm:$0xff] %v1052_v20  ;;  %v982_v14 = vadd.f32 %v981_v58, %v954_v21 }
 0x113   :  { %v1010_v24 = vadd.f32 %v1009_v60, %v982_v14 }
 0x115   :  { %v1038_v28 = vadd.f32 %v1037_v23, %v1010_v24 }
 0x116   :  { %v955_v29 = vpop.f32.mrf.mxu1  ;;  %v1039_v19 = vpop.f32.mrf.mxu0 }
 0x117   :  { %v991_v25 = vpop.f32.mrf.mxu2  ;;  %v1053_v31 = vmax.f32 %v1038_v28, 0.0  ;;  %v956_v32 = vadd.f32 %v955_v29, %v928_v26  ;;  %v1019_v22 = vpop.f32.mrf.mxu3 }
 0x119   :  { %1060 = vst [vmem:[%s2050_s3 + $0x10] sm:$0xff] %v1053_v31  ;;  %v984_v33 = vadd.f32 %v983_v61, %v956_v32 }
 0x11b   :  { %v1012_v34 = vadd.f32 %v1011_v3, %v984_v33 }
 0x11d   :  { %v1040_v39 = vadd.f32 %v1039_v19, %v1012_v34 }
 0x11e   :  { %v958_v40 = vpop.f32.mrf.mxu1  ;;  %v1042_v30 = vpop.f32.mrf.mxu0 }
 0x11f   :  { %v993_v36 = vpop.f32.mrf.mxu2  ;;  %v1054_v41 = vmax.f32 %v1040_v39, 0.0  ;;  %v959_v27 = vadd.f32 %v958_v40, %v931_v37  ;;  %v1021_v42 = vpop.f32.mrf.mxu3 }
 0x121   :  { %1061 = vst [vmem:[%s2050_s3 + $0x18] sm:$0xff] %v1054_v41  ;;  %v987_v44 = vadd.f32 %v986_v63, %v959_v27 }
 0x123   :  { %v1015_v46 = vadd.f32 %v1014_v13, %v987_v44 }
 0x125   :  { %v1043_v51 = vadd.f32 %v1042_v30, %v1015_v46 }
 0x126   :  { %v960_v52 = vpop.f32.mrf.mxu1  ;;  %v1044_v55 = vpop.f32.mrf.mxu0 }
 0x127   :  { %v1047_v49 = vpop.f32.mrf.mxu2  ;;  %v1055_v54 = vmax.f32 %v1043_v51, 0.0  ;;  %v961_v35 = vadd.f32 %v960_v52, %v933_v45 }
 0x129   :  { %1062 = vst [vmem:[%s2050_s3 + $0x20] sm:$0xff] %v1055_v54  ;;  %v989_v38 = vadd.f32 %v988_v7, %v961_v35 }
 0x12b   :  { %v1017_v58 = vadd.f32 %v1016_v12, %v989_v38 }
 0x12d   :  { %v1045_v60 = vadd.f32 %v1044_v55, %v1017_v58 }
 0x12e   :  { %v963_v61 = vpop.f32.mrf.mxu1 }
 0x12f   :  { %v1049_v50 = vpop.f32.mrf.mxu2  ;;  %v1056_v62 = vmax.f32 %v1045_v60, 0.0  ;;  %v964_v0 = vadd.f32 %v963_v61, %v936_v59 }
 0x131   :  { %1063 = vst [vmem:[%s2050_s3 + $0x28] sm:$0xff] %v1056_v62  ;;  %v992_v43 = vadd.f32 %v991_v25, %v964_v0 }
 0x133   :  { %v1020_v48 = vadd.f32 %v1019_v22, %v992_v43 }
 0x135   :  { %v1048_v1 = vadd.f32 %v1047_v49, %v1020_v48 }
 0x136   :  { %v965_v2 = vpop.f32.mrf.mxu1 }
 0x137   :  { %v1057_v3 = vmax.f32 %v1048_v1, 0.0 }
 0x139   :  { %1064 = vst [vmem:[%s2050_s3 + $0x30] sm:$0x3] %v1057_v3 }

// kernel: deformed_conv_model_forward.15
= control target key start
LH: loop header
LB: loop body
LE: loop exit
PB: predicated region body
PF: predicated region fallthrough
CT: control target
= control target key end

     0   :  { %s236_s0 = inlined_call_operand.vmem [shape: bf16[2,128], index: 0, kind: input, shape index: {}]   ;;  %s237_s1 = inlined_call_operand.vmem [shape: bf16[128,128], index: 1, kind: input, shape index: {}]   ;;  %s238_s2 = inlined_call_operand.vmem [shape: f32[1,128], index: 2, kind: input, shape index: {}]   ;;  %s239_s3 = inlined_call_operand.hbm [shape: f32[2,128], index: 3, kind: output, shape index: {}]  }
   0x1   :  { %v153_v0 = vld [vmem:[%s237_s1 + $0x38] sm:$0xff]  ;;  %v152_v1 = vld [vmem:[%s237_s1 + $0x30] sm:$0xff] }
   0x2   :  { %84 = vmatpush.bf16.msra.mxu0 %v153_v0 }
   0x3   :  { %8 = vsyncpa [#allocation3], 0  ;;  %v151_v2 = vld [vmem:[%s237_s1 + $0x28] sm:$0xff]  ;;  %v150_v3 = vld [vmem:[%s237_s1 + $0x20] sm:$0xff]  ;;  %s182_s5 = smov [#allocation2]   ;;  %s105_s9 = sshll.u32 %s239_s3, 4  ;;  %s106_s9 = int_to_ptr.hbm [resolvable:$true] %s105_s9 }
   0x4   :  { %v149_v4 = vld [vmem:[%s237_s1 + $0x18] sm:$0xff]  ;;  %v148_v5 = vld [vmem:[%s237_s1 + $0x10] sm:$0xff]  ;;  %v147_v6 = vld [vmem:[%s237_s1 + $0x8] sm:$0xff]  ;;  %s103_s6 = sshll.u32 %s182_s5, 4  ;;  %s104_s6 = int_to_ptr.vmem [resolvable:$true] %s103_s6 }
   0x5   :  { %v146_v7 = vld [vmem:[%s237_s1] sm:$0xff] }
   0x6   :  { %85 = vmatpush.bf16.msra.mxu0 %v152_v1  ;;  %v15_v8 = vld [vmem:[%s236_s0] sm:$0x1] }
   0x7   :  { %v155_v9 = vld [vmem:[%s238_s2] ss:$0 sm:$0xff] }
   0xa   :  { %86 = vmatpush.bf16.msra.mxu0 %v151_v2 }
   0xe   :  { %87 = vmatpush.bf16.msra.mxu0 %v150_v3 }
  0x12   :  { %88 = vmatpush.bf16.msra.mxu0 %v149_v4 }
  0x16   :  { %89 = vmatpush.bf16.msra.mxu0 %v148_v5 }
  0x1a   :  { %90 = vmatpush.bf16.msra.mxu0 %v147_v6 }
  0x1e   :  { %91 = vmatpush.bf16.msra.mxu0 %v146_v7 }
  0x21   :  { %92 = vmatmul.bf16.vlgmr.msra.gmra.mxu0 %v15_v8 }
  0x9e   :  { %v93_v10 = vpop.f32.mrf.mxu0 }
  0x9f   :  { %v94_v11 = vadd.f32 %v155_v9, %v93_v10 }
  0xa1   :  { %97 = vst [vmem:[#allocation2] sm:$0x3] %v94_v11 }
  0xa2   :  { %108 = dma.vmem_to_hbm [thread:$0]  %s104_s6, 32, %s106_s9, [#allocation3]  }
  0xa6   :  { %v95_v12 = vpop.f32.mrf.mxu0 }
  0xa7   :  { %180 = dma.done.wait [#allocation3], 32  }
  0xa8   :  { %181 = vsyncadd [#allocation3], 4294967264 }
  0xa9   :  { %113 = vsyncpa [#allocation3], 1 }

</bundles_post_ra>
